<compile_context>
chip_gen: v7x
topology: tpu7x:2x2x1
jax: 0.10.0
libtpu: 0.0.40
codegen_flags: <defaults>
</compile_context>

<pallas_src>
import jax
import jax.numpy as jnp
from jax import lax
from jax.experimental import pallas as pl
from jax.experimental.pallas import tpu as pltpu

# ----------------------------- configuration --------------------------------
IMG = 16
PATCH = 4
IN_CHANS = 4
NUM_CLASSES = 10
EMBED = 32
DEPTH = 2
HEADS = 4
HEAD_DIM = EMBED // HEADS            # 8
HY = HEADS * HEAD_DIM                # 32
HOP_HIDDEN = 32
ET_STEPS = 2
HOP_BETA = 0.1
TRI_FRAC = 0.5
ATT_BETA = 1.0 / (HEAD_DIM ** 0.5)   # attention inverse temperature
ALPHA = 0.1                          # energy-descent step size
LN_EPS = 1e-5
NUM_PATCHES = (IMG // PATCH) ** 2    # 16
NTOK = NUM_PATCHES + 1               # 17 (cls + patches)
NTOK_PAD = 24                        # multiple of 8 sublanes
NUM_SIMPLICES = 32
PATCH_DIM = IN_CHANS * PATCH * PATCH  # 64
NEG_INF = -1e30

# packing requires every slab segment to have EMBED columns
assert HOP_HIDDEN == EMBED and NUM_SIMPLICES == EMBED

# ------------------- packed-parameter slab layout (rows, EMBED cols) --------
ADD_OFF = 0                               # (NTOK_PAD, D)  cls/pos/bias additive term
PE_W_OFF = ADD_OFF + NTOK_PAD             # (PATCH_DIM, D) patch-embed weight
DEPTH_OFF = PE_W_OFF + PATCH_DIM          # per-depth segments start (88)
LN_REL = 0                                # 8 rows: row0=gamma, row1=delta
WQKT_REL = 8                              # (2*HY, D) fused fwd proj  [beta*WqT ; WkT]
WBACK_REL = WQKT_REL + 2 * HY             # (2*HY, D) fused back proj alpha*[WqT ; WkT/beta]
XIT_REL = WBACK_REL + 2 * HY              # (D, HID)  beta_hop * xi^T
XIDF_REL = XIT_REL + EMBED                # (HID, D)  alpha * xi
MMT_REL = XIDF_REL + HOP_HIDDEN           # (NTOK_PAD, S) simplex membership^T
DSTRIDE = MMT_REL + NTOK_PAD              # 224 (multiple of 8)
FIN_OFF = DEPTH_OFF + DEPTH * DSTRIDE     # 536: row0=fin_gamma, row1=fin_delta, row2=head_b (lane-padded)
HWT_OFF = FIN_OFF + 8                     # (NUM_CLASSES, D) head weight^T
TOTAL_ROWS = HWT_OFF + 16                 # 560 (8-aligned)


# ------------------------------- kernel --------------------------------------
def _energy_layernorm(x, gamma, delta):
    mu = jnp.mean(x, axis=-1, keepdims=True)
    xc = x - mu
    var = jnp.mean(xc * xc, axis=-1, keepdims=True)
    return gamma * xc * lax.rsqrt(var + LN_EPS) + delta


def viset_kernel(patches_ref, par_ref, out_ref):
    # ---- patch embedding (conv-as-matmul) + cls / pos-embed additive term ---
    pe_w = par_ref[PE_W_OFF:PE_W_OFF + PATCH_DIM, :]
    add = par_ref[ADD_OFF:ADD_OFF + NTOK_PAD, :]
    x = jnp.dot(patches_ref[0], pe_w,
                preferred_element_type=jnp.float32) + add               # (Np, D)

    # ---- padded-token masks (hoisted out of all loops) ----------------------
    key_valid = lax.broadcasted_iota(jnp.int32, (1, NTOK_PAD), 1) < NTOK
    tok_mask = (lax.broadcasted_iota(jnp.int32, (NTOK_PAD, 1), 0) < NTOK
                ).astype(jnp.float32)
    qmask = jnp.concatenate([tok_mask] * HEADS, axis=0)                 # (H*Np, 1)

    for d in range(DEPTH):                       # DEPTH=2, static unroll
        base = DEPTH_OFF + d * DSTRIDE

        def et_step(_, x, base=base):
            gamma = par_ref[base + LN_REL:base + LN_REL + 1, :]         # (1, D)
            delta = par_ref[base + LN_REL + 1:base + LN_REL + 2, :]
            wqkT = par_ref[base + WQKT_REL:base + WQKT_REL + 2 * HY, :]   # (2HY, D)
            wback = par_ref[base + WBACK_REL:base + WBACK_REL + 2 * HY, :]
            xit_s = par_ref[base + XIT_REL:base + XIT_REL + EMBED, :]     # (D, HID)
            xi_df = par_ref[base + XIDF_REL:base + XIDF_REL + HOP_HIDDEN, :]
            mmt = par_ref[base + MMT_REL:base + MMT_REL + NTOK_PAD, :]    # (Np, S)

            g = _energy_layernorm(x, gamma, delta)                      # (Np, D)

            # --- fused Q/K projection, feature-major (heads on sublanes) ----
            #   rows 0..HY-1  : beta * Q^T  (per head, 8 rows each)
            #   rows HY..2HY-1: K^T
            qkT = lax.dot_general(wqkT, g, (((1,), (1,)), ((), ())),
                                  preferred_element_type=jnp.float32)  # (2HY, Np)

            # --- per-head scores, sublane-stacked into one (H*Np, Np) block --
            a_blocks = []
            for h in range(HEADS):
                qTh = qkT[h * HEAD_DIM:(h + 1) * HEAD_DIM, :]           # (Y, Np)
                kTh = qkT[HY + h * HEAD_DIM:HY + (h + 1) * HEAD_DIM, :]
                a_blocks.append(lax.dot_general(
                    qTh, kTh, (((0,), (0,)), ((), ())),
                    preferred_element_type=jnp.float32))                # (Np, Np)
            a = jnp.concatenate(a_blocks, axis=0)                       # (H*Np, Np)

            # --- one fused masked softmax for all heads ----------------------
            a = jnp.where(key_valid, a, NEG_INF)                        # mask pad keys
            a = a - jnp.max(a, axis=-1, keepdims=True)
            e = jnp.exp(a)
            p = e * pl.reciprocal(jnp.sum(e, axis=-1, keepdims=True),
                                  approx=False)
            p = p * qmask                                               # drop pad queries

            # --- per-head dq/dk (feature-major), then one fused back-proj ----
            dq_blocks = []
            dk_blocks = []
            for h in range(HEADS):
                ph = p[h * NTOK_PAD:(h + 1) * NTOK_PAD, :]              # (Np, Np)
                qTh = qkT[h * HEAD_DIM:(h + 1) * HEAD_DIM, :]
                kTh = qkT[HY + h * HEAD_DIM:HY + (h + 1) * HEAD_DIM, :]
                dq_blocks.append(lax.dot_general(                       # (P K)^T
                    kTh, ph, (((1,), (1,)), ((), ())),
                    preferred_element_type=jnp.float32))                # (Y, Np)
                dk_blocks.append(lax.dot_general(                       # (P^T Q')^T
                    qTh, ph, (((1,), (0,)), ((), ())),
                    preferred_element_type=jnp.float32))                # (Y, Np)
            dqkT = jnp.concatenate(dq_blocks + dk_blocks, axis=0)       # (2HY, Np)

            # alpha * (dq @ Wq^T + dk @ Wk^T)  == negative attention gradient
            # (alpha and the 1/beta compensation are folded into wback host-side)
            upd = lax.dot_general(dqkT, wback, (((0,), (0,)), ((), ())),
                                  preferred_element_type=jnp.float32)   # (Np, D)

            # --- simplicial Hopfield negative gradient -----------------------
            f = lax.dot_general(mmt, g, (((0,), (0,)), ((), ())),
                                preferred_element_type=jnp.float32)     # (S, D)
            hs = jnp.dot(f, xit_s, preferred_element_type=jnp.float32)  # (S, HID)
            hs = hs - jnp.max(hs, axis=-1, keepdims=True)
            eh = jnp.exp(hs)
            ph_hop = eh * pl.reciprocal(jnp.sum(eh, axis=-1, keepdims=True),
                                        approx=False)
            dfp = jnp.dot(ph_hop, xi_df,
                          preferred_element_type=jnp.float32)           # (S, D), alpha-scaled
            upd = upd + jnp.dot(mmt, dfp,
                                preferred_element_type=jnp.float32)     # (Np, D)

            # x <- x - alpha * dE/dg   (upd already holds -alpha * dE/dg;
            # padded token rows of upd are exactly zero by construction)
            return x + upd

        x = lax.fori_loop(0, ET_STEPS, et_step, x, unroll=True)

    # ---- final EnergyLayerNorm (per-token) + token-pooled classifier head ---
    cls = x[0:1, :]                                                     # (1, D)
    gcls = _energy_layernorm(cls,
                             par_ref[FIN_OFF:FIN_OFF + 1, :],
                             par_ref[FIN_OFF + 1:FIN_OFF + 2, :])
    hwT = par_ref[HWT_OFF:HWT_OFF + NUM_CLASSES, :]                     # (C, D)
    hb = par_ref[FIN_OFF + 2:FIN_OFF + 3, :][:, :NUM_CLASSES]           # (1, C)
    out_ref[0] = lax.dot_general(gcls, hwT, (((1,), (1,)), ((), ())),
                                 preferred_element_type=jnp.float32) + hb


# ----------------------------- pallas wrapper ---------------------------------
def _pack_params(params):
    """Pack all broadcast parameters into one (TOTAL_ROWS, EMBED) f32 slab."""
    buf = jnp.zeros((TOTAL_ROWS, EMBED), jnp.float32)

    # additive term: pos-embed, cls token on row 0, patch-embed bias on patch
    # rows, zeros on padded rows.  (pos_drop p=0.0 -> identity)
    add = jnp.zeros((NTOK_PAD, EMBED), jnp.float32)
    add = add.at[:NTOK].set(params["pos_embed"][0])
    add = add.at[0].add(params["cls_token"][0, 0])
    add = add.at[1:NTOK].add(params["pe_b"][0])
    buf = buf.at[ADD_OFF:ADD_OFF + NTOK_PAD].set(add)
    buf = buf.at[PE_W_OFF:PE_W_OFF + PATCH_DIM].set(params["pe_w"])

    for d, blk in enumerate(params["blocks"]):
        base = DEPTH_OFF + d * DSTRIDE
        # per-head stacked transposes: row h*Y+y, col d  ==  W[h, d, y]
        wqT = blk["wq"].transpose(0, 2, 1).reshape(HY, EMBED)
        wkT = blk["wk"].transpose(0, 2, 1).reshape(HY, EMBED)
        wqkT = jnp.concatenate([ATT_BETA * wqT, wkT], axis=0)           # fwd proj
        wback = ALPHA * jnp.concatenate([wqT, wkT / ATT_BETA], axis=0)  # back proj
        xi = blk["xi"]                                                  # (HID, D)
        mm = jnp.pad(blk["simplex"], ((0, 0), (0, NTOK_PAD - NTOK)))    # (S, Np)

        buf = buf.at[base + LN_REL].set(blk["ln_gamma"][0])
        buf = buf.at[base + LN_REL + 1].set(blk["ln_delta"][0])
        buf = buf.at[base + WQKT_REL:base + WQKT_REL + 2 * HY].set(wqkT)
        buf = buf.at[base + WBACK_REL:base + WBACK_REL + 2 * HY].set(wback)
        buf = buf.at[base + XIT_REL:base + XIT_REL + EMBED].set(HOP_BETA * xi.T)
        buf = buf.at[base + XIDF_REL:base + XIDF_REL + HOP_HIDDEN].set(ALPHA * xi)
        buf = buf.at[base + MMT_REL:base + MMT_REL + NTOK_PAD].set(mm.T)

    buf = buf.at[FIN_OFF].set(params["final_ln_gamma"][0])
    buf = buf.at[FIN_OFF + 1].set(params["final_ln_delta"][0])
    buf = buf.at[FIN_OFF + 2, :NUM_CLASSES].set(params["head_b"][0])
    buf = buf.at[HWT_OFF:HWT_OFF + NUM_CLASSES].set(params["head_w"].T)
    return buf


def viset_forward(x_img, params):
    B, C, H, W = x_img.shape
    hp, wp = H // PATCH, W // PATCH

    # conv(stride=kernel=patch) == patch extraction (c, ph, pw order) + matmul
    patches = (x_img.reshape(B, C, hp, PATCH, wp, PATCH)
               .transpose(0, 2, 4, 1, 3, 5)
               .reshape(B, hp * wp, PATCH_DIM))
    # row 0 reserved for the CLS token, rows >= NTOK are zero padding
    patches_p = jnp.pad(patches, ((0, 0), (1, NTOK_PAD - NTOK), (0, 0)))

    par = _pack_params(params)

    out = pl.pallas_call(
        viset_kernel,
        out_shape=jax.ShapeDtypeStruct((B, 1, NUM_CLASSES), jnp.float32),
        grid=(B,),
        in_specs=[
            pl.BlockSpec((1, NTOK_PAD, PATCH_DIM), lambda b: (b, 0, 0)),
            pl.BlockSpec((TOTAL_ROWS, EMBED), lambda b: (0, 0)),
        ],
        out_specs=pl.BlockSpec((1, 1, NUM_CLASSES), lambda b: (b, 0, 0)),
        compiler_params=pltpu.CompilerParams(
            dimension_semantics=("parallel",)),   # v7x: one batch elem per TC
    )(patches_p, par)
    return out[:, 0, :]


# ------------------------------ parameters -----------------------------------
def _trunc_normal(key, shape, std=0.02):
    return std * jax.random.truncated_normal(key, -2.0, 2.0, shape, jnp.float32)


def build_simplex_matrix(key, n_tokens, n_simplices, tri_frac):
    # TODO(synk): reference sampling scheme unknown; vertices sampled with
    # replacement here, so degenerate edges/triangles can occur.
    n_tri = int(round(n_simplices * tri_frac))
    n_edge = n_simplices - n_tri
    k1, k2 = jax.random.split(key)
    edges = jax.random.randint(k1, (n_edge, 2), 0, n_tokens)
    tris = jax.random.randint(k2, (n_tri, 3), 0, n_tokens)
    m = jnp.zeros((n_simplices, n_tokens), jnp.float32)
    rows_e = jnp.repeat(jnp.arange(n_edge), 2)
    m = m.at[rows_e, edges.reshape(-1)].add(0.5)
    rows_t = jnp.repeat(jnp.arange(n_tri), 3) + n_edge
    m = m.at[rows_t, tris.reshape(-1)].add(1.0 / 3.0)
    return m


def init_params(key):
    keys = jax.random.split(key, 6 + DEPTH)
    params = {
        "pe_w": _trunc_normal(keys[0], (PATCH_DIM, EMBED)),
        "pe_b": jnp.zeros((1, EMBED), jnp.float32),
        "cls_token": _trunc_normal(keys[1], (1, 1, EMBED)),
        "pos_embed": _trunc_normal(keys[2], (1, NTOK, EMBED)),
        "final_ln_gamma": jnp.ones((1, EMBED), jnp.float32),
        "final_ln_delta": jnp.zeros((1, EMBED), jnp.float32),
        "head_w": _trunc_normal(keys[3], (EMBED, NUM_CLASSES)),
        "head_b": jnp.zeros((1, NUM_CLASSES), jnp.float32),
        "blocks": [],
    }
    for d in range(DEPTH):
        bk = jax.random.split(keys[6 + d], 4)
        params["blocks"].append({
            "ln_gamma": jnp.ones((1, EMBED), jnp.float32),
            "ln_delta": jnp.zeros((1, EMBED), jnp.float32),
            "wq": _trunc_normal(bk[0], (HEADS, EMBED, HEAD_DIM)),
            "wk": _trunc_normal(bk[1], (HEADS, EMBED, HEAD_DIM)),
            "xi": _trunc_normal(bk[2], (HOP_HIDDEN, EMBED)),
            "simplex": build_simplex_matrix(bk[3], NTOK, NUM_SIMPLICES, TRI_FRAC),
        })
    return params


# --------------------------------- main ---------------------------------------
if __name__ == "__main__":
    key = jax.random.PRNGKey(0)
    pkey, xkey = jax.random.split(key)
    params = init_params(pkey)
    x = jax.random.normal(xkey, (2, IN_CHANS, IMG, IMG), jnp.float32)

    logits = jax.jit(viset_forward)(x, params)
    logits = jax.block_until_ready(logits)

    assert logits.shape == (2, NUM_CLASSES), logits.shape
    assert bool(jnp.all(jnp.isfinite(logits)))
    print("KERNEL_OK")
</pallas_src>

<mosaic_0001>
module attributes {stable_mosaic.version = 11 : i64} {
  func.func @viset_kernel(%arg0: i32, %arg1: memref<1x24x64xf32, #tpu.memory_space<vmem>>, %arg2: memref<560x32xf32, #tpu.memory_space<vmem>>, %arg3: memref<1x1x10xf32, #tpu.memory_space<vmem>>) attributes {dimension_semantics = [#tpu.dimension_semantics<parallel>], iteration_bounds = array<i64: 2>, scalar_prefetch = 0 : i64, scratch_operands = 0 : i64, tpu.core_type = #tpu.core_type<tc>, window_params = [{transform_indices = @transform_0, window_bounds = array<i64: 1, 24, 64>}, {pipeline_mode = #tpu.pipeline_mode<synchronous>, transform_indices = @transform_1, window_bounds = array<i64: 560, 32>}, {transform_indices = @transform_2, window_bounds = array<i64: 1, 1, 10>}]} {
    %c24 = arith.constant 24 : index
    %c0 = arith.constant 0 : index
    %0 = vector.load %arg2[%c24, %c0] : memref<560x32xf32, #tpu.memory_space<vmem>>, vector<64x32xf32>
    %c0_0 = arith.constant 0 : index
    %c0_1 = arith.constant 0 : index
    %1 = vector.load %arg2[%c0_0, %c0_1] : memref<560x32xf32, #tpu.memory_space<vmem>>, vector<24x32xf32>
    %c0_2 = arith.constant 0 : index
    %c0_3 = arith.constant 0 : index
    %c0_4 = arith.constant 0 : index
    %2 = vector.load %arg1[%c0_2, %c0_3, %c0_4] : memref<1x24x64xf32, #tpu.memory_space<vmem>>, vector<1x24x64xf32>
    %3 = vector.shape_cast %2 : vector<1x24x64xf32> to vector<24x64xf32>
    %cst = arith.constant dense<0.000000e+00> : vector<24x32xf32>
    %4 = tpu.matmul %3, %0, %cst {dimension_numbers = #tpu.dot_dimension_numbers<[1], [0], [0], [1], [0, 0, 1, 1], [], []>} : vector<24x64xf32>, vector<64x32xf32>, vector<24x32xf32> -> vector<24x32xf32>
    %5 = arith.addf %4, %1 : vector<24x32xf32>
    %6 = tpu.iota {dimensions = array<i32: 1>} : vector<1x24xi32>
    %c17_i32 = arith.constant 17 : i32
    %7 = vector.broadcast %c17_i32 : i32 to vector<1x24xi32>
    %8 = arith.cmpi slt, %6, %7 : vector<1x24xi32>
    %9 = tpu.iota {dimensions = array<i32: 0>} : vector<24x1xi32>
    %c17_i32_5 = arith.constant 17 : i32
    %10 = vector.broadcast %c17_i32_5 : i32 to vector<24x1xi32>
    %11 = arith.cmpi slt, %9, %10 : vector<24x1xi32>
    %12 = arith.extui %11 : vector<24x1xi1> to vector<24x1xi32>
    %13 = arith.sitofp %12 : vector<24x1xi32> to vector<24x1xf32>
    %14 = tpu.concatenate %13, %13, %13, %13 in 0 : vector<24x1xf32>, vector<24x1xf32>, vector<24x1xf32>, vector<24x1xf32> -> vector<96x1xf32>
    %c0_i32 = arith.constant 0 : i32
    %c88 = arith.constant 88 : index
    %c0_6 = arith.constant 0 : index
    %15 = vector.load %arg2[%c88, %c0_6] : memref<560x32xf32, #tpu.memory_space<vmem>>, vector<1x32xf32>
    %c89 = arith.constant 89 : index
    %c0_7 = arith.constant 0 : index
    %16 = vector.load %arg2[%c89, %c0_7] : memref<560x32xf32, #tpu.memory_space<vmem>>, vector<1x32xf32>
    %c96 = arith.constant 96 : index
    %c0_8 = arith.constant 0 : index
    %17 = vector.load %arg2[%c96, %c0_8] : memref<560x32xf32, #tpu.memory_space<vmem>>, vector<64x32xf32>
    %c160 = arith.constant 160 : index
    %c0_9 = arith.constant 0 : index
    %18 = vector.load %arg2[%c160, %c0_9] : memref<560x32xf32, #tpu.memory_space<vmem>>, vector<64x32xf32>
    %c224 = arith.constant 224 : index
    %c0_10 = arith.constant 0 : index
    %19 = vector.load %arg2[%c224, %c0_10] : memref<560x32xf32, #tpu.memory_space<vmem>>, vector<32x32xf32>
    %c256 = arith.constant 256 : index
    %c0_11 = arith.constant 0 : index
    %20 = vector.load %arg2[%c256, %c0_11] : memref<560x32xf32, #tpu.memory_space<vmem>>, vector<32x32xf32>
    %c288 = arith.constant 288 : index
    %c0_12 = arith.constant 0 : index
    %21 = vector.load %arg2[%c288, %c0_12] : memref<560x32xf32, #tpu.memory_space<vmem>>, vector<24x32xf32>
    %cst_13 = arith.constant dense<0.000000e+00> : vector<24xf32>
    %22 = vector.multi_reduction <add>, %5, %cst_13 [1] : vector<24x32xf32> to vector<24xf32>
    %23 = vector.shape_cast %22 : vector<24xf32> to vector<24x1xf32>
    %cst_14 = arith.constant 3.200000e+01 : f32
    %24 = vector.broadcast %cst_14 : f32 to vector<24x1xf32>
    %25 = arith.divf %23, %24 : vector<24x1xf32>
    %26 = vector.broadcast %25 : vector<24x1xf32> to vector<24x32xf32>
    %27 = arith.subf %5, %26 : vector<24x32xf32>
    %28 = arith.mulf %27, %27 : vector<24x32xf32>
    %cst_15 = arith.constant dense<0.000000e+00> : vector<24xf32>
    %29 = vector.multi_reduction <add>, %28, %cst_15 [1] : vector<24x32xf32> to vector<24xf32>
    %30 = vector.shape_cast %29 : vector<24xf32> to vector<24x1xf32>
    %cst_16 = arith.constant 3.200000e+01 : f32
    %31 = vector.broadcast %cst_16 : f32 to vector<24x1xf32>
    %32 = arith.divf %30, %31 : vector<24x1xf32>
    %33 = vector.broadcast %15 : vector<1x32xf32> to vector<24x32xf32>
    %34 = arith.mulf %33, %27 : vector<24x32xf32>
    %cst_17 = arith.constant 9.99999974E-6 : f32
    %35 = vector.broadcast %cst_17 : f32 to vector<24x1xf32>
    %36 = arith.addf %32, %35 : vector<24x1xf32>
    %37 = math.rsqrt %36 : vector<24x1xf32>
    %38 = vector.broadcast %37 : vector<24x1xf32> to vector<24x32xf32>
    %39 = arith.mulf %34, %38 : vector<24x32xf32>
    %40 = vector.broadcast %16 : vector<1x32xf32> to vector<24x32xf32>
    %41 = arith.addf %39, %40 : vector<24x32xf32>
    %cst_18 = arith.constant dense<0.000000e+00> : vector<64x24xf32>
    %42 = tpu.matmul %17, %41, %cst_18 {dimension_numbers = #tpu.dot_dimension_numbers<[1], [1], [0], [0], [0, 0, 1, 0], [], []>} : vector<64x32xf32>, vector<24x32xf32>, vector<64x24xf32> -> vector<64x24xf32>
    %43 = vector.extract_strided_slice %42 {offsets = [0, 0], sizes = [8, 24], strides = [1, 1]} : vector<64x24xf32> to vector<8x24xf32>
    %44 = vector.extract_strided_slice %42 {offsets = [32, 0], sizes = [8, 24], strides = [1, 1]} : vector<64x24xf32> to vector<8x24xf32>
    %cst_19 = arith.constant dense<0.000000e+00> : vector<24x24xf32>
    %45 = tpu.matmul %43, %44, %cst_19 {dimension_numbers = #tpu.dot_dimension_numbers<[0], [0], [1], [1], [0, 1, 1, 1], [], []>} : vector<8x24xf32>, vector<8x24xf32>, vector<24x24xf32> -> vector<24x24xf32>
    %46 = vector.extract_strided_slice %42 {offsets = [8, 0], sizes = [8, 24], strides = [1, 1]} : vector<64x24xf32> to vector<8x24xf32>
    %47 = vector.extract_strided_slice %42 {offsets = [40, 0], sizes = [8, 24], strides = [1, 1]} : vector<64x24xf32> to vector<8x24xf32>
    %cst_20 = arith.constant dense<0.000000e+00> : vector<24x24xf32>
    %48 = tpu.matmul %46, %47, %cst_20 {dimension_numbers = #tpu.dot_dimension_numbers<[0], [0], [1], [1], [0, 1, 1, 1], [], []>} : vector<8x24xf32>, vector<8x24xf32>, vector<24x24xf32> -> vector<24x24xf32>
    %49 = vector.extract_strided_slice %42 {offsets = [16, 0], sizes = [8, 24], strides = [1, 1]} : vector<64x24xf32> to vector<8x24xf32>
    %50 = vector.extract_strided_slice %42 {offsets = [48, 0], sizes = [8, 24], strides = [1, 1]} : vector<64x24xf32> to vector<8x24xf32>
    %cst_21 = arith.constant dense<0.000000e+00> : vector<24x24xf32>
    %51 = tpu.matmul %49, %50, %cst_21 {dimension_numbers = #tpu.dot_dimension_numbers<[0], [0], [1], [1], [0, 1, 1, 1], [], []>} : vector<8x24xf32>, vector<8x24xf32>, vector<24x24xf32> -> vector<24x24xf32>
    %52 = vector.extract_strided_slice %42 {offsets = [24, 0], sizes = [8, 24], strides = [1, 1]} : vector<64x24xf32> to vector<8x24xf32>
    %53 = vector.extract_strided_slice %42 {offsets = [56, 0], sizes = [8, 24], strides = [1, 1]} : vector<64x24xf32> to vector<8x24xf32>
    %cst_22 = arith.constant dense<0.000000e+00> : vector<24x24xf32>
    %54 = tpu.matmul %52, %53, %cst_22 {dimension_numbers = #tpu.dot_dimension_numbers<[0], [0], [1], [1], [0, 1, 1, 1], [], []>} : vector<8x24xf32>, vector<8x24xf32>, vector<24x24xf32> -> vector<24x24xf32>
    %55 = tpu.concatenate %45, %48, %51, %54 in 0 : vector<24x24xf32>, vector<24x24xf32>, vector<24x24xf32>, vector<24x24xf32> -> vector<96x24xf32>
    %cst_23 = arith.constant -1.000000e+30 : f32
    %56 = vector.shape_cast %8 : vector<1x24xi1> to vector<1x24xi1>
    %57 = vector.broadcast %56 : vector<1x24xi1> to vector<96x24xi1>
    %58 = vector.broadcast %cst_23 : f32 to vector<96x24xf32>
    %59 = arith.select %57, %55, %58 : vector<96x24xi1>, vector<96x24xf32>
    %cst_24 = arith.constant dense<0xFF800000> : vector<96xf32>
    %60 = vector.multi_reduction <maximumf>, %59, %cst_24 [1] : vector<96x24xf32> to vector<96xf32>
    %61 = vector.shape_cast %60 : vector<96xf32> to vector<96x1xf32>
    %62 = vector.broadcast %61 : vector<96x1xf32> to vector<96x24xf32>
    %63 = arith.subf %59, %62 : vector<96x24xf32>
    %64 = math.exp %63 : vector<96x24xf32>
    %cst_25 = arith.constant dense<0.000000e+00> : vector<96xf32>
    %65 = vector.multi_reduction <add>, %64, %cst_25 [1] : vector<96x24xf32> to vector<96xf32>
    %66 = vector.shape_cast %65 : vector<96xf32> to vector<96x1xf32>
    %67 = tpu.reciprocal %66 : vector<96x1xf32> -> vector<96x1xf32>
    %68 = vector.broadcast %67 : vector<96x1xf32> to vector<96x24xf32>
    %69 = arith.mulf %64, %68 : vector<96x24xf32>
    %70 = vector.broadcast %14 : vector<96x1xf32> to vector<96x24xf32>
    %71 = arith.mulf %69, %70 : vector<96x24xf32>
    %72 = vector.extract_strided_slice %71 {offsets = [0, 0], sizes = [24, 24], strides = [1, 1]} : vector<96x24xf32> to vector<24x24xf32>
    %73 = vector.extract_strided_slice %42 {offsets = [0, 0], sizes = [8, 24], strides = [1, 1]} : vector<64x24xf32> to vector<8x24xf32>
    %74 = vector.extract_strided_slice %42 {offsets = [32, 0], sizes = [8, 24], strides = [1, 1]} : vector<64x24xf32> to vector<8x24xf32>
    %cst_26 = arith.constant dense<0.000000e+00> : vector<8x24xf32>
    %75 = tpu.matmul %74, %72, %cst_26 {dimension_numbers = #tpu.dot_dimension_numbers<[1], [1], [0], [0], [0, 0, 1, 0], [], []>} : vector<8x24xf32>, vector<24x24xf32>, vector<8x24xf32> -> vector<8x24xf32>
    %cst_27 = arith.constant dense<0.000000e+00> : vector<8x24xf32>
    %76 = tpu.matmul %73, %72, %cst_27 {dimension_numbers = #tpu.dot_dimension_numbers<[1], [0], [0], [1], [0, 0, 1, 1], [], []>} : vector<8x24xf32>, vector<24x24xf32>, vector<8x24xf32> -> vector<8x24xf32>
    %77 = vector.extract_strided_slice %71 {offsets = [24, 0], sizes = [24, 24], strides = [1, 1]} : vector<96x24xf32> to vector<24x24xf32>
    %78 = vector.extract_strided_slice %42 {offsets = [8, 0], sizes = [8, 24], strides = [1, 1]} : vector<64x24xf32> to vector<8x24xf32>
    %79 = vector.extract_strided_slice %42 {offsets = [40, 0], sizes = [8, 24], strides = [1, 1]} : vector<64x24xf32> to vector<8x24xf32>
    %cst_28 = arith.constant dense<0.000000e+00> : vector<8x24xf32>
    %80 = tpu.matmul %79, %77, %cst_28 {dimension_numbers = #tpu.dot_dimension_numbers<[1], [1], [0], [0], [0, 0, 1, 0], [], []>} : vector<8x24xf32>, vector<24x24xf32>, vector<8x24xf32> -> vector<8x24xf32>
    %cst_29 = arith.constant dense<0.000000e+00> : vector<8x24xf32>
    %81 = tpu.matmul %78, %77, %cst_29 {dimension_numbers = #tpu.dot_dimension_numbers<[1], [0], [0], [1], [0, 0, 1, 1], [], []>} : vector<8x24xf32>, vector<24x24xf32>, vector<8x24xf32> -> vector<8x24xf32>
    %82 = vector.extract_strided_slice %71 {offsets = [48, 0], sizes = [24, 24], strides = [1, 1]} : vector<96x24xf32> to vector<24x24xf32>
    %83 = vector.extract_strided_slice %42 {offsets = [16, 0], sizes = [8, 24], strides = [1, 1]} : vector<64x24xf32> to vector<8x24xf32>
    %84 = vector.extract_strided_slice %42 {offsets = [48, 0], sizes = [8, 24], strides = [1, 1]} : vector<64x24xf32> to vector<8x24xf32>
    %cst_30 = arith.constant dense<0.000000e+00> : vector<8x24xf32>
    %85 = tpu.matmul %84, %82, %cst_30 {dimension_numbers = #tpu.dot_dimension_numbers<[1], [1], [0], [0], [0, 0, 1, 0], [], []>} : vector<8x24xf32>, vector<24x24xf32>, vector<8x24xf32> -> vector<8x24xf32>
    %cst_31 = arith.constant dense<0.000000e+00> : vector<8x24xf32>
    %86 = tpu.matmul %83, %82, %cst_31 {dimension_numbers = #tpu.dot_dimension_numbers<[1], [0], [0], [1], [0, 0, 1, 1], [], []>} : vector<8x24xf32>, vector<24x24xf32>, vector<8x24xf32> -> vector<8x24xf32>
    %87 = vector.extract_strided_slice %71 {offsets = [72, 0], sizes = [24, 24], strides = [1, 1]} : vector<96x24xf32> to vector<24x24xf32>
    %88 = vector.extract_strided_slice %42 {offsets = [24, 0], sizes = [8, 24], strides = [1, 1]} : vector<64x24xf32> to vector<8x24xf32>
    %89 = vector.extract_strided_slice %42 {offsets = [56, 0], sizes = [8, 24], strides = [1, 1]} : vector<64x24xf32> to vector<8x24xf32>
    %cst_32 = arith.constant dense<0.000000e+00> : vector<8x24xf32>
    %90 = tpu.matmul %89, %87, %cst_32 {dimension_numbers = #tpu.dot_dimension_numbers<[1], [1], [0], [0], [0, 0, 1, 0], [], []>} : vector<8x24xf32>, vector<24x24xf32>, vector<8x24xf32> -> vector<8x24xf32>
    %cst_33 = arith.constant dense<0.000000e+00> : vector<8x24xf32>
    %91 = tpu.matmul %88, %87, %cst_33 {dimension_numbers = #tpu.dot_dimension_numbers<[1], [0], [0], [1], [0, 0, 1, 1], [], []>} : vector<8x24xf32>, vector<24x24xf32>, vector<8x24xf32> -> vector<8x24xf32>
    %92 = tpu.concatenate %75, %80, %85, %90, %76, %81, %86, %91 in 0 : vector<8x24xf32>, vector<8x24xf32>, vector<8x24xf32>, vector<8x24xf32>, vector<8x24xf32>, vector<8x24xf32>, vector<8x24xf32>, vector<8x24xf32> -> vector<64x24xf32>
    %cst_34 = arith.constant dense<0.000000e+00> : vector<24x32xf32>
    %93 = tpu.matmul %92, %18, %cst_34 {dimension_numbers = #tpu.dot_dimension_numbers<[0], [0], [1], [1], [0, 1, 1, 1], [], []>} : vector<64x24xf32>, vector<64x32xf32>, vector<24x32xf32> -> vector<24x32xf32>
    %cst_35 = arith.constant dense<0.000000e+00> : vector<32x32xf32>
    %94 = tpu.matmul %21, %41, %cst_35 {dimension_numbers = #tpu.dot_dimension_numbers<[0], [0], [1], [1], [0, 1, 1, 1], [], []>} : vector<24x32xf32>, vector<24x32xf32>, vector<32x32xf32> -> vector<32x32xf32>
    %cst_36 = arith.constant dense<0.000000e+00> : vector<32x32xf32>
    %95 = tpu.matmul %94, %19, %cst_36 {dimension_numbers = #tpu.dot_dimension_numbers<[1], [0], [0], [1], [0, 0, 1, 1], [], []>} : vector<32x32xf32>, vector<32x32xf32>, vector<32x32xf32> -> vector<32x32xf32>
    %cst_37 = arith.constant dense<0xFF800000> : vector<32xf32>
    %96 = vector.multi_reduction <maximumf>, %95, %cst_37 [1] : vector<32x32xf32> to vector<32xf32>
    %97 = vector.shape_cast %96 : vector<32xf32> to vector<32x1xf32>
    %98 = vector.broadcast %97 : vector<32x1xf32> to vector<32x32xf32>
    %99 = arith.subf %95, %98 : vector<32x32xf32>
    %100 = math.exp %99 : vector<32x32xf32>
    %cst_38 = arith.constant dense<0.000000e+00> : vector<32xf32>
    %101 = vector.multi_reduction <add>, %100, %cst_38 [1] : vector<32x32xf32> to vector<32xf32>
    %102 = vector.shape_cast %101 : vector<32xf32> to vector<32x1xf32>
    %103 = tpu.reciprocal %102 : vector<32x1xf32> -> vector<32x1xf32>
    %104 = vector.broadcast %103 : vector<32x1xf32> to vector<32x32xf32>
    %105 = arith.mulf %100, %104 : vector<32x32xf32>
    %cst_39 = arith.constant dense<0.000000e+00> : vector<32x32xf32>
    %106 = tpu.matmul %105, %20, %cst_39 {dimension_numbers = #tpu.dot_dimension_numbers<[1], [0], [0], [1], [0, 0, 1, 1], [], []>} : vector<32x32xf32>, vector<32x32xf32>, vector<32x32xf32> -> vector<32x32xf32>
    %cst_40 = arith.constant dense<0.000000e+00> : vector<24x32xf32>
    %107 = tpu.matmul %21, %106, %cst_40 {dimension_numbers = #tpu.dot_dimension_numbers<[1], [0], [0], [1], [0, 0, 1, 1], [], []>} : vector<24x32xf32>, vector<32x32xf32>, vector<24x32xf32> -> vector<24x32xf32>
    %108 = arith.addf %93, %107 : vector<24x32xf32>
    %109 = arith.addf %5, %108 : vector<24x32xf32>
    %c1_i32 = arith.constant 1 : i32
    %c88_41 = arith.constant 88 : index
    %c0_42 = arith.constant 0 : index
    %110 = vector.load %arg2[%c88_41, %c0_42] : memref<560x32xf32, #tpu.memory_space<vmem>>, vector<1x32xf32>
    %c89_43 = arith.constant 89 : index
    %c0_44 = arith.constant 0 : index
    %111 = vector.load %arg2[%c89_43, %c0_44] : memref<560x32xf32, #tpu.memory_space<vmem>>, vector<1x32xf32>
    %c96_45 = arith.constant 96 : index
    %c0_46 = arith.constant 0 : index
    %112 = vector.load %arg2[%c96_45, %c0_46] : memref<560x32xf32, #tpu.memory_space<vmem>>, vector<64x32xf32>
    %c160_47 = arith.constant 160 : index
    %c0_48 = arith.constant 0 : index
    %113 = vector.load %arg2[%c160_47, %c0_48] : memref<560x32xf32, #tpu.memory_space<vmem>>, vector<64x32xf32>
    %c224_49 = arith.constant 224 : index
    %c0_50 = arith.constant 0 : index
    %114 = vector.load %arg2[%c224_49, %c0_50] : memref<560x32xf32, #tpu.memory_space<vmem>>, vector<32x32xf32>
    %c256_51 = arith.constant 256 : index
    %c0_52 = arith.constant 0 : index
    %115 = vector.load %arg2[%c256_51, %c0_52] : memref<560x32xf32, #tpu.memory_space<vmem>>, vector<32x32xf32>
    %c288_53 = arith.constant 288 : index
    %c0_54 = arith.constant 0 : index
    %116 = vector.load %arg2[%c288_53, %c0_54] : memref<560x32xf32, #tpu.memory_space<vmem>>, vector<24x32xf32>
    %cst_55 = arith.constant dense<0.000000e+00> : vector<24xf32>
    %117 = vector.multi_reduction <add>, %109, %cst_55 [1] : vector<24x32xf32> to vector<24xf32>
    %118 = vector.shape_cast %117 : vector<24xf32> to vector<24x1xf32>
    %cst_56 = arith.constant 3.200000e+01 : f32
    %119 = vector.broadcast %cst_56 : f32 to vector<24x1xf32>
    %120 = arith.divf %118, %119 : vector<24x1xf32>
    %121 = vector.broadcast %120 : vector<24x1xf32> to vector<24x32xf32>
    %122 = arith.subf %109, %121 : vector<24x32xf32>
    %123 = arith.mulf %122, %122 : vector<24x32xf32>
    %cst_57 = arith.constant dense<0.000000e+00> : vector<24xf32>
    %124 = vector.multi_reduction <add>, %123, %cst_57 [1] : vector<24x32xf32> to vector<24xf32>
    %125 = vector.shape_cast %124 : vector<24xf32> to vector<24x1xf32>
    %cst_58 = arith.constant 3.200000e+01 : f32
    %126 = vector.broadcast %cst_58 : f32 to vector<24x1xf32>
    %127 = arith.divf %125, %126 : vector<24x1xf32>
    %128 = vector.broadcast %110 : vector<1x32xf32> to vector<24x32xf32>
    %129 = arith.mulf %128, %122 : vector<24x32xf32>
    %cst_59 = arith.constant 9.99999974E-6 : f32
    %130 = vector.broadcast %cst_59 : f32 to vector<24x1xf32>
    %131 = arith.addf %127, %130 : vector<24x1xf32>
    %132 = math.rsqrt %131 : vector<24x1xf32>
    %133 = vector.broadcast %132 : vector<24x1xf32> to vector<24x32xf32>
    %134 = arith.mulf %129, %133 : vector<24x32xf32>
    %135 = vector.broadcast %111 : vector<1x32xf32> to vector<24x32xf32>
    %136 = arith.addf %134, %135 : vector<24x32xf32>
    %cst_60 = arith.constant dense<0.000000e+00> : vector<64x24xf32>
    %137 = tpu.matmul %112, %136, %cst_60 {dimension_numbers = #tpu.dot_dimension_numbers<[1], [1], [0], [0], [0, 0, 1, 0], [], []>} : vector<64x32xf32>, vector<24x32xf32>, vector<64x24xf32> -> vector<64x24xf32>
    %138 = vector.extract_strided_slice %137 {offsets = [0, 0], sizes = [8, 24], strides = [1, 1]} : vector<64x24xf32> to vector<8x24xf32>
    %139 = vector.extract_strided_slice %137 {offsets = [32, 0], sizes = [8, 24], strides = [1, 1]} : vector<64x24xf32> to vector<8x24xf32>
    %cst_61 = arith.constant dense<0.000000e+00> : vector<24x24xf32>
    %140 = tpu.matmul %138, %139, %cst_61 {dimension_numbers = #tpu.dot_dimension_numbers<[0], [0], [1], [1], [0, 1, 1, 1], [], []>} : vector<8x24xf32>, vector<8x24xf32>, vector<24x24xf32> -> vector<24x24xf32>
    %141 = vector.extract_strided_slice %137 {offsets = [8, 0], sizes = [8, 24], strides = [1, 1]} : vector<64x24xf32> to vector<8x24xf32>
    %142 = vector.extract_strided_slice %137 {offsets = [40, 0], sizes = [8, 24], strides = [1, 1]} : vector<64x24xf32> to vector<8x24xf32>
    %cst_62 = arith.constant dense<0.000000e+00> : vector<24x24xf32>
    %143 = tpu.matmul %141, %142, %cst_62 {dimension_numbers = #tpu.dot_dimension_numbers<[0], [0], [1], [1], [0, 1, 1, 1], [], []>} : vector<8x24xf32>, vector<8x24xf32>, vector<24x24xf32> -> vector<24x24xf32>
    %144 = vector.extract_strided_slice %137 {offsets = [16, 0], sizes = [8, 24], strides = [1, 1]} : vector<64x24xf32> to vector<8x24xf32>
    %145 = vector.extract_strided_slice %137 {offsets = [48, 0], sizes = [8, 24], strides = [1, 1]} : vector<64x24xf32> to vector<8x24xf32>
    %cst_63 = arith.constant dense<0.000000e+00> : vector<24x24xf32>
    %146 = tpu.matmul %144, %145, %cst_63 {dimension_numbers = #tpu.dot_dimension_numbers<[0], [0], [1], [1], [0, 1, 1, 1], [], []>} : vector<8x24xf32>, vector<8x24xf32>, vector<24x24xf32> -> vector<24x24xf32>
    %147 = vector.extract_strided_slice %137 {offsets = [24, 0], sizes = [8, 24], strides = [1, 1]} : vector<64x24xf32> to vector<8x24xf32>
    %148 = vector.extract_strided_slice %137 {offsets = [56, 0], sizes = [8, 24], strides = [1, 1]} : vector<64x24xf32> to vector<8x24xf32>
    %cst_64 = arith.constant dense<0.000000e+00> : vector<24x24xf32>
    %149 = tpu.matmul %147, %148, %cst_64 {dimension_numbers = #tpu.dot_dimension_numbers<[0], [0], [1], [1], [0, 1, 1, 1], [], []>} : vector<8x24xf32>, vector<8x24xf32>, vector<24x24xf32> -> vector<24x24xf32>
    %150 = tpu.concatenate %140, %143, %146, %149 in 0 : vector<24x24xf32>, vector<24x24xf32>, vector<24x24xf32>, vector<24x24xf32> -> vector<96x24xf32>
    %cst_65 = arith.constant -1.000000e+30 : f32
    %151 = vector.shape_cast %8 : vector<1x24xi1> to vector<1x24xi1>
    %152 = vector.broadcast %151 : vector<1x24xi1> to vector<96x24xi1>
    %153 = vector.broadcast %cst_65 : f32 to vector<96x24xf32>
    %154 = arith.select %152, %150, %153 : vector<96x24xi1>, vector<96x24xf32>
    %cst_66 = arith.constant dense<0xFF800000> : vector<96xf32>
    %155 = vector.multi_reduction <maximumf>, %154, %cst_66 [1] : vector<96x24xf32> to vector<96xf32>
    %156 = vector.shape_cast %155 : vector<96xf32> to vector<96x1xf32>
    %157 = vector.broadcast %156 : vector<96x1xf32> to vector<96x24xf32>
    %158 = arith.subf %154, %157 : vector<96x24xf32>
    %159 = math.exp %158 : vector<96x24xf32>
    %cst_67 = arith.constant dense<0.000000e+00> : vector<96xf32>
    %160 = vector.multi_reduction <add>, %159, %cst_67 [1] : vector<96x24xf32> to vector<96xf32>
    %161 = vector.shape_cast %160 : vector<96xf32> to vector<96x1xf32>
    %162 = tpu.reciprocal %161 : vector<96x1xf32> -> vector<96x1xf32>
    %163 = vector.broadcast %162 : vector<96x1xf32> to vector<96x24xf32>
    %164 = arith.mulf %159, %163 : vector<96x24xf32>
    %165 = vector.broadcast %14 : vector<96x1xf32> to vector<96x24xf32>
    %166 = arith.mulf %164, %165 : vector<96x24xf32>
    %167 = vector.extract_strided_slice %166 {offsets = [0, 0], sizes = [24, 24], strides = [1, 1]} : vector<96x24xf32> to vector<24x24xf32>
    %168 = vector.extract_strided_slice %137 {offsets = [0, 0], sizes = [8, 24], strides = [1, 1]} : vector<64x24xf32> to vector<8x24xf32>
    %169 = vector.extract_strided_slice %137 {offsets = [32, 0], sizes = [8, 24], strides = [1, 1]} : vector<64x24xf32> to vector<8x24xf32>
    %cst_68 = arith.constant dense<0.000000e+00> : vector<8x24xf32>
    %170 = tpu.matmul %169, %167, %cst_68 {dimension_numbers = #tpu.dot_dimension_numbers<[1], [1], [0], [0], [0, 0, 1, 0], [], []>} : vector<8x24xf32>, vector<24x24xf32>, vector<8x24xf32> -> vector<8x24xf32>
    %cst_69 = arith.constant dense<0.000000e+00> : vector<8x24xf32>
    %171 = tpu.matmul %168, %167, %cst_69 {dimension_numbers = #tpu.dot_dimension_numbers<[1], [0], [0], [1], [0, 0, 1, 1], [], []>} : vector<8x24xf32>, vector<24x24xf32>, vector<8x24xf32> -> vector<8x24xf32>
    %172 = vector.extract_strided_slice %166 {offsets = [24, 0], sizes = [24, 24], strides = [1, 1]} : vector<96x24xf32> to vector<24x24xf32>
    %173 = vector.extract_strided_slice %137 {offsets = [8, 0], sizes = [8, 24], strides = [1, 1]} : vector<64x24xf32> to vector<8x24xf32>
    %174 = vector.extract_strided_slice %137 {offsets = [40, 0], sizes = [8, 24], strides = [1, 1]} : vector<64x24xf32> to vector<8x24xf32>
    %cst_70 = arith.constant dense<0.000000e+00> : vector<8x24xf32>
    %175 = tpu.matmul %174, %172, %cst_70 {dimension_numbers = #tpu.dot_dimension_numbers<[1], [1], [0], [0], [0, 0, 1, 0], [], []>} : vector<8x24xf32>, vector<24x24xf32>, vector<8x24xf32> -> vector<8x24xf32>
    %cst_71 = arith.constant dense<0.000000e+00> : vector<8x24xf32>
    %176 = tpu.matmul %173, %172, %cst_71 {dimension_numbers = #tpu.dot_dimension_numbers<[1], [0], [0], [1], [0, 0, 1, 1], [], []>} : vector<8x24xf32>, vector<24x24xf32>, vector<8x24xf32> -> vector<8x24xf32>
    %177 = vector.extract_strided_slice %166 {offsets = [48, 0], sizes = [24, 24], strides = [1, 1]} : vector<96x24xf32> to vector<24x24xf32>
    %178 = vector.extract_strided_slice %137 {offsets = [16, 0], sizes = [8, 24], strides = [1, 1]} : vector<64x24xf32> to vector<8x24xf32>
    %179 = vector.extract_strided_slice %137 {offsets = [48, 0], sizes = [8, 24], strides = [1, 1]} : vector<64x24xf32> to vector<8x24xf32>
    %cst_72 = arith.constant dense<0.000000e+00> : vector<8x24xf32>
    %180 = tpu.matmul %179, %177, %cst_72 {dimension_numbers = #tpu.dot_dimension_numbers<[1], [1], [0], [0], [0, 0, 1, 0], [], []>} : vector<8x24xf32>, vector<24x24xf32>, vector<8x24xf32> -> vector<8x24xf32>
    %cst_73 = arith.constant dense<0.000000e+00> : vector<8x24xf32>
    %181 = tpu.matmul %178, %177, %cst_73 {dimension_numbers = #tpu.dot_dimension_numbers<[1], [0], [0], [1], [0, 0, 1, 1], [], []>} : vector<8x24xf32>, vector<24x24xf32>, vector<8x24xf32> -> vector<8x24xf32>
    %182 = vector.extract_strided_slice %166 {offsets = [72, 0], sizes = [24, 24], strides = [1, 1]} : vector<96x24xf32> to vector<24x24xf32>
    %183 = vector.extract_strided_slice %137 {offsets = [24, 0], sizes = [8, 24], strides = [1, 1]} : vector<64x24xf32> to vector<8x24xf32>
    %184 = vector.extract_strided_slice %137 {offsets = [56, 0], sizes = [8, 24], strides = [1, 1]} : vector<64x24xf32> to vector<8x24xf32>
    %cst_74 = arith.constant dense<0.000000e+00> : vector<8x24xf32>
    %185 = tpu.matmul %184, %182, %cst_74 {dimension_numbers = #tpu.dot_dimension_numbers<[1], [1], [0], [0], [0, 0, 1, 0], [], []>} : vector<8x24xf32>, vector<24x24xf32>, vector<8x24xf32> -> vector<8x24xf32>
    %cst_75 = arith.constant dense<0.000000e+00> : vector<8x24xf32>
    %186 = tpu.matmul %183, %182, %cst_75 {dimension_numbers = #tpu.dot_dimension_numbers<[1], [0], [0], [1], [0, 0, 1, 1], [], []>} : vector<8x24xf32>, vector<24x24xf32>, vector<8x24xf32> -> vector<8x24xf32>
    %187 = tpu.concatenate %170, %175, %180, %185, %171, %176, %181, %186 in 0 : vector<8x24xf32>, vector<8x24xf32>, vector<8x24xf32>, vector<8x24xf32>, vector<8x24xf32>, vector<8x24xf32>, vector<8x24xf32>, vector<8x24xf32> -> vector<64x24xf32>
    %cst_76 = arith.constant dense<0.000000e+00> : vector<24x32xf32>
    %188 = tpu.matmul %187, %113, %cst_76 {dimension_numbers = #tpu.dot_dimension_numbers<[0], [0], [1], [1], [0, 1, 1, 1], [], []>} : vector<64x24xf32>, vector<64x32xf32>, vector<24x32xf32> -> vector<24x32xf32>
    %cst_77 = arith.constant dense<0.000000e+00> : vector<32x32xf32>
    %189 = tpu.matmul %116, %136, %cst_77 {dimension_numbers = #tpu.dot_dimension_numbers<[0], [0], [1], [1], [0, 1, 1, 1], [], []>} : vector<24x32xf32>, vector<24x32xf32>, vector<32x32xf32> -> vector<32x32xf32>
    %cst_78 = arith.constant dense<0.000000e+00> : vector<32x32xf32>
    %190 = tpu.matmul %189, %114, %cst_78 {dimension_numbers = #tpu.dot_dimension_numbers<[1], [0], [0], [1], [0, 0, 1, 1], [], []>} : vector<32x32xf32>, vector<32x32xf32>, vector<32x32xf32> -> vector<32x32xf32>
    %cst_79 = arith.constant dense<0xFF800000> : vector<32xf32>
    %191 = vector.multi_reduction <maximumf>, %190, %cst_79 [1] : vector<32x32xf32> to vector<32xf32>
    %192 = vector.shape_cast %191 : vector<32xf32> to vector<32x1xf32>
    %193 = vector.broadcast %192 : vector<32x1xf32> to vector<32x32xf32>
    %194 = arith.subf %190, %193 : vector<32x32xf32>
    %195 = math.exp %194 : vector<32x32xf32>
    %cst_80 = arith.constant dense<0.000000e+00> : vector<32xf32>
    %196 = vector.multi_reduction <add>, %195, %cst_80 [1] : vector<32x32xf32> to vector<32xf32>
    %197 = vector.shape_cast %196 : vector<32xf32> to vector<32x1xf32>
    %198 = tpu.reciprocal %197 : vector<32x1xf32> -> vector<32x1xf32>
    %199 = vector.broadcast %198 : vector<32x1xf32> to vector<32x32xf32>
    %200 = arith.mulf %195, %199 : vector<32x32xf32>
    %cst_81 = arith.constant dense<0.000000e+00> : vector<32x32xf32>
    %201 = tpu.matmul %200, %115, %cst_81 {dimension_numbers = #tpu.dot_dimension_numbers<[1], [0], [0], [1], [0, 0, 1, 1], [], []>} : vector<32x32xf32>, vector<32x32xf32>, vector<32x32xf32> -> vector<32x32xf32>
    %cst_82 = arith.constant dense<0.000000e+00> : vector<24x32xf32>
    %202 = tpu.matmul %116, %201, %cst_82 {dimension_numbers = #tpu.dot_dimension_numbers<[1], [0], [0], [1], [0, 0, 1, 1], [], []>} : vector<24x32xf32>, vector<32x32xf32>, vector<24x32xf32> -> vector<24x32xf32>
    %203 = arith.addf %188, %202 : vector<24x32xf32>
    %204 = arith.addf %109, %203 : vector<24x32xf32>
    %c0_i32_83 = arith.constant 0 : i32
    %c312 = arith.constant 312 : index
    %c0_84 = arith.constant 0 : index
    %205 = vector.load %arg2[%c312, %c0_84] : memref<560x32xf32, #tpu.memory_space<vmem>>, vector<1x32xf32>
    %c313 = arith.constant 313 : index
    %c0_85 = arith.constant 0 : index
    %206 = vector.load %arg2[%c313, %c0_85] : memref<560x32xf32, #tpu.memory_space<vmem>>, vector<1x32xf32>
    %c320 = arith.constant 320 : index
    %c0_86 = arith.constant 0 : index
    %207 = vector.load %arg2[%c320, %c0_86] : memref<560x32xf32, #tpu.memory_space<vmem>>, vector<64x32xf32>
    %c384 = arith.constant 384 : index
    %c0_87 = arith.constant 0 : index
    %208 = vector.load %arg2[%c384, %c0_87] : memref<560x32xf32, #tpu.memory_space<vmem>>, vector<64x32xf32>
    %c448 = arith.constant 448 : index
    %c0_88 = arith.constant 0 : index
    %209 = vector.load %arg2[%c448, %c0_88] : memref<560x32xf32, #tpu.memory_space<vmem>>, vector<32x32xf32>
    %c480 = arith.constant 480 : index
    %c0_89 = arith.constant 0 : index
    %210 = vector.load %arg2[%c480, %c0_89] : memref<560x32xf32, #tpu.memory_space<vmem>>, vector<32x32xf32>
    %c512 = arith.constant 512 : index
    %c0_90 = arith.constant 0 : index
    %211 = vector.load %arg2[%c512, %c0_90] : memref<560x32xf32, #tpu.memory_space<vmem>>, vector<24x32xf32>
    %cst_91 = arith.constant dense<0.000000e+00> : vector<24xf32>
    %212 = vector.multi_reduction <add>, %204, %cst_91 [1] : vector<24x32xf32> to vector<24xf32>
    %213 = vector.shape_cast %212 : vector<24xf32> to vector<24x1xf32>
    %cst_92 = arith.constant 3.200000e+01 : f32
    %214 = vector.broadcast %cst_92 : f32 to vector<24x1xf32>
    %215 = arith.divf %213, %214 : vector<24x1xf32>
    %216 = vector.broadcast %215 : vector<24x1xf32> to vector<24x32xf32>
    %217 = arith.subf %204, %216 : vector<24x32xf32>
    %218 = arith.mulf %217, %217 : vector<24x32xf32>
    %cst_93 = arith.constant dense<0.000000e+00> : vector<24xf32>
    %219 = vector.multi_reduction <add>, %218, %cst_93 [1] : vector<24x32xf32> to vector<24xf32>
    %220 = vector.shape_cast %219 : vector<24xf32> to vector<24x1xf32>
    %cst_94 = arith.constant 3.200000e+01 : f32
    %221 = vector.broadcast %cst_94 : f32 to vector<24x1xf32>
    %222 = arith.divf %220, %221 : vector<24x1xf32>
    %223 = vector.broadcast %205 : vector<1x32xf32> to vector<24x32xf32>
    %224 = arith.mulf %223, %217 : vector<24x32xf32>
    %cst_95 = arith.constant 9.99999974E-6 : f32
    %225 = vector.broadcast %cst_95 : f32 to vector<24x1xf32>
    %226 = arith.addf %222, %225 : vector<24x1xf32>
    %227 = math.rsqrt %226 : vector<24x1xf32>
    %228 = vector.broadcast %227 : vector<24x1xf32> to vector<24x32xf32>
    %229 = arith.mulf %224, %228 : vector<24x32xf32>
    %230 = vector.broadcast %206 : vector<1x32xf32> to vector<24x32xf32>
    %231 = arith.addf %229, %230 : vector<24x32xf32>
    %cst_96 = arith.constant dense<0.000000e+00> : vector<64x24xf32>
    %232 = tpu.matmul %207, %231, %cst_96 {dimension_numbers = #tpu.dot_dimension_numbers<[1], [1], [0], [0], [0, 0, 1, 0], [], []>} : vector<64x32xf32>, vector<24x32xf32>, vector<64x24xf32> -> vector<64x24xf32>
    %233 = vector.extract_strided_slice %232 {offsets = [0, 0], sizes = [8, 24], strides = [1, 1]} : vector<64x24xf32> to vector<8x24xf32>
    %234 = vector.extract_strided_slice %232 {offsets = [32, 0], sizes = [8, 24], strides = [1, 1]} : vector<64x24xf32> to vector<8x24xf32>
    %cst_97 = arith.constant dense<0.000000e+00> : vector<24x24xf32>
    %235 = tpu.matmul %233, %234, %cst_97 {dimension_numbers = #tpu.dot_dimension_numbers<[0], [0], [1], [1], [0, 1, 1, 1], [], []>} : vector<8x24xf32>, vector<8x24xf32>, vector<24x24xf32> -> vector<24x24xf32>
    %236 = vector.extract_strided_slice %232 {offsets = [8, 0], sizes = [8, 24], strides = [1, 1]} : vector<64x24xf32> to vector<8x24xf32>
    %237 = vector.extract_strided_slice %232 {offsets = [40, 0], sizes = [8, 24], strides = [1, 1]} : vector<64x24xf32> to vector<8x24xf32>
    %cst_98 = arith.constant dense<0.000000e+00> : vector<24x24xf32>
    %238 = tpu.matmul %236, %237, %cst_98 {dimension_numbers = #tpu.dot_dimension_numbers<[0], [0], [1], [1], [0, 1, 1, 1], [], []>} : vector<8x24xf32>, vector<8x24xf32>, vector<24x24xf32> -> vector<24x24xf32>
    %239 = vector.extract_strided_slice %232 {offsets = [16, 0], sizes = [8, 24], strides = [1, 1]} : vector<64x24xf32> to vector<8x24xf32>
    %240 = vector.extract_strided_slice %232 {offsets = [48, 0], sizes = [8, 24], strides = [1, 1]} : vector<64x24xf32> to vector<8x24xf32>
    %cst_99 = arith.constant dense<0.000000e+00> : vector<24x24xf32>
    %241 = tpu.matmul %239, %240, %cst_99 {dimension_numbers = #tpu.dot_dimension_numbers<[0], [0], [1], [1], [0, 1, 1, 1], [], []>} : vector<8x24xf32>, vector<8x24xf32>, vector<24x24xf32> -> vector<24x24xf32>
    %242 = vector.extract_strided_slice %232 {offsets = [24, 0], sizes = [8, 24], strides = [1, 1]} : vector<64x24xf32> to vector<8x24xf32>
    %243 = vector.extract_strided_slice %232 {offsets = [56, 0], sizes = [8, 24], strides = [1, 1]} : vector<64x24xf32> to vector<8x24xf32>
    %cst_100 = arith.constant dense<0.000000e+00> : vector<24x24xf32>
    %244 = tpu.matmul %242, %243, %cst_100 {dimension_numbers = #tpu.dot_dimension_numbers<[0], [0], [1], [1], [0, 1, 1, 1], [], []>} : vector<8x24xf32>, vector<8x24xf32>, vector<24x24xf32> -> vector<24x24xf32>
    %245 = tpu.concatenate %235, %238, %241, %244 in 0 : vector<24x24xf32>, vector<24x24xf32>, vector<24x24xf32>, vector<24x24xf32> -> vector<96x24xf32>
    %cst_101 = arith.constant -1.000000e+30 : f32
    %246 = vector.shape_cast %8 : vector<1x24xi1> to vector<1x24xi1>
    %247 = vector.broadcast %246 : vector<1x24xi1> to vector<96x24xi1>
    %248 = vector.broadcast %cst_101 : f32 to vector<96x24xf32>
    %249 = arith.select %247, %245, %248 : vector<96x24xi1>, vector<96x24xf32>
    %cst_102 = arith.constant dense<0xFF800000> : vector<96xf32>
    %250 = vector.multi_reduction <maximumf>, %249, %cst_102 [1] : vector<96x24xf32> to vector<96xf32>
    %251 = vector.shape_cast %250 : vector<96xf32> to vector<96x1xf32>
    %252 = vector.broadcast %251 : vector<96x1xf32> to vector<96x24xf32>
    %253 = arith.subf %249, %252 : vector<96x24xf32>
    %254 = math.exp %253 : vector<96x24xf32>
    %cst_103 = arith.constant dense<0.000000e+00> : vector<96xf32>
    %255 = vector.multi_reduction <add>, %254, %cst_103 [1] : vector<96x24xf32> to vector<96xf32>
    %256 = vector.shape_cast %255 : vector<96xf32> to vector<96x1xf32>
    %257 = tpu.reciprocal %256 : vector<96x1xf32> -> vector<96x1xf32>
    %258 = vector.broadcast %257 : vector<96x1xf32> to vector<96x24xf32>
    %259 = arith.mulf %254, %258 : vector<96x24xf32>
    %260 = vector.broadcast %14 : vector<96x1xf32> to vector<96x24xf32>
    %261 = arith.mulf %259, %260 : vector<96x24xf32>
    %262 = vector.extract_strided_slice %261 {offsets = [0, 0], sizes = [24, 24], strides = [1, 1]} : vector<96x24xf32> to vector<24x24xf32>
    %263 = vector.extract_strided_slice %232 {offsets = [0, 0], sizes = [8, 24], strides = [1, 1]} : vector<64x24xf32> to vector<8x24xf32>
    %264 = vector.extract_strided_slice %232 {offsets = [32, 0], sizes = [8, 24], strides = [1, 1]} : vector<64x24xf32> to vector<8x24xf32>
    %cst_104 = arith.constant dense<0.000000e+00> : vector<8x24xf32>
    %265 = tpu.matmul %264, %262, %cst_104 {dimension_numbers = #tpu.dot_dimension_numbers<[1], [1], [0], [0], [0, 0, 1, 0], [], []>} : vector<8x24xf32>, vector<24x24xf32>, vector<8x24xf32> -> vector<8x24xf32>
    %cst_105 = arith.constant dense<0.000000e+00> : vector<8x24xf32>
    %266 = tpu.matmul %263, %262, %cst_105 {dimension_numbers = #tpu.dot_dimension_numbers<[1], [0], [0], [1], [0, 0, 1, 1], [], []>} : vector<8x24xf32>, vector<24x24xf32>, vector<8x24xf32> -> vector<8x24xf32>
    %267 = vector.extract_strided_slice %261 {offsets = [24, 0], sizes = [24, 24], strides = [1, 1]} : vector<96x24xf32> to vector<24x24xf32>
    %268 = vector.extract_strided_slice %232 {offsets = [8, 0], sizes = [8, 24], strides = [1, 1]} : vector<64x24xf32> to vector<8x24xf32>
    %269 = vector.extract_strided_slice %232 {offsets = [40, 0], sizes = [8, 24], strides = [1, 1]} : vector<64x24xf32> to vector<8x24xf32>
    %cst_106 = arith.constant dense<0.000000e+00> : vector<8x24xf32>
    %270 = tpu.matmul %269, %267, %cst_106 {dimension_numbers = #tpu.dot_dimension_numbers<[1], [1], [0], [0], [0, 0, 1, 0], [], []>} : vector<8x24xf32>, vector<24x24xf32>, vector<8x24xf32> -> vector<8x24xf32>
    %cst_107 = arith.constant dense<0.000000e+00> : vector<8x24xf32>
    %271 = tpu.matmul %268, %267, %cst_107 {dimension_numbers = #tpu.dot_dimension_numbers<[1], [0], [0], [1], [0, 0, 1, 1], [], []>} : vector<8x24xf32>, vector<24x24xf32>, vector<8x24xf32> -> vector<8x24xf32>
    %272 = vector.extract_strided_slice %261 {offsets = [48, 0], sizes = [24, 24], strides = [1, 1]} : vector<96x24xf32> to vector<24x24xf32>
    %273 = vector.extract_strided_slice %232 {offsets = [16, 0], sizes = [8, 24], strides = [1, 1]} : vector<64x24xf32> to vector<8x24xf32>
    %274 = vector.extract_strided_slice %232 {offsets = [48, 0], sizes = [8, 24], strides = [1, 1]} : vector<64x24xf32> to vector<8x24xf32>
    %cst_108 = arith.constant dense<0.000000e+00> : vector<8x24xf32>
    %275 = tpu.matmul %274, %272, %cst_108 {dimension_numbers = #tpu.dot_dimension_numbers<[1], [1], [0], [0], [0, 0, 1, 0], [], []>} : vector<8x24xf32>, vector<24x24xf32>, vector<8x24xf32> -> vector<8x24xf32>
    %cst_109 = arith.constant dense<0.000000e+00> : vector<8x24xf32>
    %276 = tpu.matmul %273, %272, %cst_109 {dimension_numbers = #tpu.dot_dimension_numbers<[1], [0], [0], [1], [0, 0, 1, 1], [], []>} : vector<8x24xf32>, vector<24x24xf32>, vector<8x24xf32> -> vector<8x24xf32>
    %277 = vector.extract_strided_slice %261 {offsets = [72, 0], sizes = [24, 24], strides = [1, 1]} : vector<96x24xf32> to vector<24x24xf32>
    %278 = vector.extract_strided_slice %232 {offsets = [24, 0], sizes = [8, 24], strides = [1, 1]} : vector<64x24xf32> to vector<8x24xf32>
    %279 = vector.extract_strided_slice %232 {offsets = [56, 0], sizes = [8, 24], strides = [1, 1]} : vector<64x24xf32> to vector<8x24xf32>
    %cst_110 = arith.constant dense<0.000000e+00> : vector<8x24xf32>
    %280 = tpu.matmul %279, %277, %cst_110 {dimension_numbers = #tpu.dot_dimension_numbers<[1], [1], [0], [0], [0, 0, 1, 0], [], []>} : vector<8x24xf32>, vector<24x24xf32>, vector<8x24xf32> -> vector<8x24xf32>
    %cst_111 = arith.constant dense<0.000000e+00> : vector<8x24xf32>
    %281 = tpu.matmul %278, %277, %cst_111 {dimension_numbers = #tpu.dot_dimension_numbers<[1], [0], [0], [1], [0, 0, 1, 1], [], []>} : vector<8x24xf32>, vector<24x24xf32>, vector<8x24xf32> -> vector<8x24xf32>
    %282 = tpu.concatenate %265, %270, %275, %280, %266, %271, %276, %281 in 0 : vector<8x24xf32>, vector<8x24xf32>, vector<8x24xf32>, vector<8x24xf32>, vector<8x24xf32>, vector<8x24xf32>, vector<8x24xf32>, vector<8x24xf32> -> vector<64x24xf32>
    %cst_112 = arith.constant dense<0.000000e+00> : vector<24x32xf32>
    %283 = tpu.matmul %282, %208, %cst_112 {dimension_numbers = #tpu.dot_dimension_numbers<[0], [0], [1], [1], [0, 1, 1, 1], [], []>} : vector<64x24xf32>, vector<64x32xf32>, vector<24x32xf32> -> vector<24x32xf32>
    %cst_113 = arith.constant dense<0.000000e+00> : vector<32x32xf32>
    %284 = tpu.matmul %211, %231, %cst_113 {dimension_numbers = #tpu.dot_dimension_numbers<[0], [0], [1], [1], [0, 1, 1, 1], [], []>} : vector<24x32xf32>, vector<24x32xf32>, vector<32x32xf32> -> vector<32x32xf32>
    %cst_114 = arith.constant dense<0.000000e+00> : vector<32x32xf32>
    %285 = tpu.matmul %284, %209, %cst_114 {dimension_numbers = #tpu.dot_dimension_numbers<[1], [0], [0], [1], [0, 0, 1, 1], [], []>} : vector<32x32xf32>, vector<32x32xf32>, vector<32x32xf32> -> vector<32x32xf32>
    %cst_115 = arith.constant dense<0xFF800000> : vector<32xf32>
    %286 = vector.multi_reduction <maximumf>, %285, %cst_115 [1] : vector<32x32xf32> to vector<32xf32>
    %287 = vector.shape_cast %286 : vector<32xf32> to vector<32x1xf32>
    %288 = vector.broadcast %287 : vector<32x1xf32> to vector<32x32xf32>
    %289 = arith.subf %285, %288 : vector<32x32xf32>
    %290 = math.exp %289 : vector<32x32xf32>
    %cst_116 = arith.constant dense<0.000000e+00> : vector<32xf32>
    %291 = vector.multi_reduction <add>, %290, %cst_116 [1] : vector<32x32xf32> to vector<32xf32>
    %292 = vector.shape_cast %291 : vector<32xf32> to vector<32x1xf32>
    %293 = tpu.reciprocal %292 : vector<32x1xf32> -> vector<32x1xf32>
    %294 = vector.broadcast %293 : vector<32x1xf32> to vector<32x32xf32>
    %295 = arith.mulf %290, %294 : vector<32x32xf32>
    %cst_117 = arith.constant dense<0.000000e+00> : vector<32x32xf32>
    %296 = tpu.matmul %295, %210, %cst_117 {dimension_numbers = #tpu.dot_dimension_numbers<[1], [0], [0], [1], [0, 0, 1, 1], [], []>} : vector<32x32xf32>, vector<32x32xf32>, vector<32x32xf32> -> vector<32x32xf32>
    %cst_118 = arith.constant dense<0.000000e+00> : vector<24x32xf32>
    %297 = tpu.matmul %211, %296, %cst_118 {dimension_numbers = #tpu.dot_dimension_numbers<[1], [0], [0], [1], [0, 0, 1, 1], [], []>} : vector<24x32xf32>, vector<32x32xf32>, vector<24x32xf32> -> vector<24x32xf32>
    %298 = arith.addf %283, %297 : vector<24x32xf32>
    %299 = arith.addf %204, %298 : vector<24x32xf32>
    %c1_i32_119 = arith.constant 1 : i32
    %c312_120 = arith.constant 312 : index
    %c0_121 = arith.constant 0 : index
    %300 = vector.load %arg2[%c312_120, %c0_121] : memref<560x32xf32, #tpu.memory_space<vmem>>, vector<1x32xf32>
    %c313_122 = arith.constant 313 : index
    %c0_123 = arith.constant 0 : index
    %301 = vector.load %arg2[%c313_122, %c0_123] : memref<560x32xf32, #tpu.memory_space<vmem>>, vector<1x32xf32>
    %c320_124 = arith.constant 320 : index
    %c0_125 = arith.constant 0 : index
    %302 = vector.load %arg2[%c320_124, %c0_125] : memref<560x32xf32, #tpu.memory_space<vmem>>, vector<64x32xf32>
    %c384_126 = arith.constant 384 : index
    %c0_127 = arith.constant 0 : index
    %303 = vector.load %arg2[%c384_126, %c0_127] : memref<560x32xf32, #tpu.memory_space<vmem>>, vector<64x32xf32>
    %c448_128 = arith.constant 448 : index
    %c0_129 = arith.constant 0 : index
    %304 = vector.load %arg2[%c448_128, %c0_129] : memref<560x32xf32, #tpu.memory_space<vmem>>, vector<32x32xf32>
    %c480_130 = arith.constant 480 : index
    %c0_131 = arith.constant 0 : index
    %305 = vector.load %arg2[%c480_130, %c0_131] : memref<560x32xf32, #tpu.memory_space<vmem>>, vector<32x32xf32>
    %c512_132 = arith.constant 512 : index
    %c0_133 = arith.constant 0 : index
    %306 = vector.load %arg2[%c512_132, %c0_133] : memref<560x32xf32, #tpu.memory_space<vmem>>, vector<24x32xf32>
    %cst_134 = arith.constant dense<0.000000e+00> : vector<24xf32>
    %307 = vector.multi_reduction <add>, %299, %cst_134 [1] : vector<24x32xf32> to vector<24xf32>
    %308 = vector.shape_cast %307 : vector<24xf32> to vector<24x1xf32>
    %cst_135 = arith.constant 3.200000e+01 : f32
    %309 = vector.broadcast %cst_135 : f32 to vector<24x1xf32>
    %310 = arith.divf %308, %309 : vector<24x1xf32>
    %311 = vector.broadcast %310 : vector<24x1xf32> to vector<24x32xf32>
    %312 = arith.subf %299, %311 : vector<24x32xf32>
    %313 = arith.mulf %312, %312 : vector<24x32xf32>
    %cst_136 = arith.constant dense<0.000000e+00> : vector<24xf32>
    %314 = vector.multi_reduction <add>, %313, %cst_136 [1] : vector<24x32xf32> to vector<24xf32>
    %315 = vector.shape_cast %314 : vector<24xf32> to vector<24x1xf32>
    %cst_137 = arith.constant 3.200000e+01 : f32
    %316 = vector.broadcast %cst_137 : f32 to vector<24x1xf32>
    %317 = arith.divf %315, %316 : vector<24x1xf32>
    %318 = vector.broadcast %300 : vector<1x32xf32> to vector<24x32xf32>
    %319 = arith.mulf %318, %312 : vector<24x32xf32>
    %cst_138 = arith.constant 9.99999974E-6 : f32
    %320 = vector.broadcast %cst_138 : f32 to vector<24x1xf32>
    %321 = arith.addf %317, %320 : vector<24x1xf32>
    %322 = math.rsqrt %321 : vector<24x1xf32>
    %323 = vector.broadcast %322 : vector<24x1xf32> to vector<24x32xf32>
    %324 = arith.mulf %319, %323 : vector<24x32xf32>
    %325 = vector.broadcast %301 : vector<1x32xf32> to vector<24x32xf32>
    %326 = arith.addf %324, %325 : vector<24x32xf32>
    %cst_139 = arith.constant dense<0.000000e+00> : vector<64x24xf32>
    %327 = tpu.matmul %302, %326, %cst_139 {dimension_numbers = #tpu.dot_dimension_numbers<[1], [1], [0], [0], [0, 0, 1, 0], [], []>} : vector<64x32xf32>, vector<24x32xf32>, vector<64x24xf32> -> vector<64x24xf32>
    %328 = vector.extract_strided_slice %327 {offsets = [0, 0], sizes = [8, 24], strides = [1, 1]} : vector<64x24xf32> to vector<8x24xf32>
    %329 = vector.extract_strided_slice %327 {offsets = [32, 0], sizes = [8, 24], strides = [1, 1]} : vector<64x24xf32> to vector<8x24xf32>
    %cst_140 = arith.constant dense<0.000000e+00> : vector<24x24xf32>
    %330 = tpu.matmul %328, %329, %cst_140 {dimension_numbers = #tpu.dot_dimension_numbers<[0], [0], [1], [1], [0, 1, 1, 1], [], []>} : vector<8x24xf32>, vector<8x24xf32>, vector<24x24xf32> -> vector<24x24xf32>
    %331 = vector.extract_strided_slice %327 {offsets = [8, 0], sizes = [8, 24], strides = [1, 1]} : vector<64x24xf32> to vector<8x24xf32>
    %332 = vector.extract_strided_slice %327 {offsets = [40, 0], sizes = [8, 24], strides = [1, 1]} : vector<64x24xf32> to vector<8x24xf32>
    %cst_141 = arith.constant dense<0.000000e+00> : vector<24x24xf32>
    %333 = tpu.matmul %331, %332, %cst_141 {dimension_numbers = #tpu.dot_dimension_numbers<[0], [0], [1], [1], [0, 1, 1, 1], [], []>} : vector<8x24xf32>, vector<8x24xf32>, vector<24x24xf32> -> vector<24x24xf32>
    %334 = vector.extract_strided_slice %327 {offsets = [16, 0], sizes = [8, 24], strides = [1, 1]} : vector<64x24xf32> to vector<8x24xf32>
    %335 = vector.extract_strided_slice %327 {offsets = [48, 0], sizes = [8, 24], strides = [1, 1]} : vector<64x24xf32> to vector<8x24xf32>
    %cst_142 = arith.constant dense<0.000000e+00> : vector<24x24xf32>
    %336 = tpu.matmul %334, %335, %cst_142 {dimension_numbers = #tpu.dot_dimension_numbers<[0], [0], [1], [1], [0, 1, 1, 1], [], []>} : vector<8x24xf32>, vector<8x24xf32>, vector<24x24xf32> -> vector<24x24xf32>
    %337 = vector.extract_strided_slice %327 {offsets = [24, 0], sizes = [8, 24], strides = [1, 1]} : vector<64x24xf32> to vector<8x24xf32>
    %338 = vector.extract_strided_slice %327 {offsets = [56, 0], sizes = [8, 24], strides = [1, 1]} : vector<64x24xf32> to vector<8x24xf32>
    %cst_143 = arith.constant dense<0.000000e+00> : vector<24x24xf32>
    %339 = tpu.matmul %337, %338, %cst_143 {dimension_numbers = #tpu.dot_dimension_numbers<[0], [0], [1], [1], [0, 1, 1, 1], [], []>} : vector<8x24xf32>, vector<8x24xf32>, vector<24x24xf32> -> vector<24x24xf32>
    %340 = tpu.concatenate %330, %333, %336, %339 in 0 : vector<24x24xf32>, vector<24x24xf32>, vector<24x24xf32>, vector<24x24xf32> -> vector<96x24xf32>
    %cst_144 = arith.constant -1.000000e+30 : f32
    %341 = vector.shape_cast %8 : vector<1x24xi1> to vector<1x24xi1>
    %342 = vector.broadcast %341 : vector<1x24xi1> to vector<96x24xi1>
    %343 = vector.broadcast %cst_144 : f32 to vector<96x24xf32>
    %344 = arith.select %342, %340, %343 : vector<96x24xi1>, vector<96x24xf32>
    %cst_145 = arith.constant dense<0xFF800000> : vector<96xf32>
    %345 = vector.multi_reduction <maximumf>, %344, %cst_145 [1] : vector<96x24xf32> to vector<96xf32>
    %346 = vector.shape_cast %345 : vector<96xf32> to vector<96x1xf32>
    %347 = vector.broadcast %346 : vector<96x1xf32> to vector<96x24xf32>
    %348 = arith.subf %344, %347 : vector<96x24xf32>
    %349 = math.exp %348 : vector<96x24xf32>
    %cst_146 = arith.constant dense<0.000000e+00> : vector<96xf32>
    %350 = vector.multi_reduction <add>, %349, %cst_146 [1] : vector<96x24xf32> to vector<96xf32>
    %351 = vector.shape_cast %350 : vector<96xf32> to vector<96x1xf32>
    %352 = tpu.reciprocal %351 : vector<96x1xf32> -> vector<96x1xf32>
    %353 = vector.broadcast %352 : vector<96x1xf32> to vector<96x24xf32>
    %354 = arith.mulf %349, %353 : vector<96x24xf32>
    %355 = vector.broadcast %14 : vector<96x1xf32> to vector<96x24xf32>
    %356 = arith.mulf %354, %355 : vector<96x24xf32>
    %357 = vector.extract_strided_slice %356 {offsets = [0, 0], sizes = [24, 24], strides = [1, 1]} : vector<96x24xf32> to vector<24x24xf32>
    %358 = vector.extract_strided_slice %327 {offsets = [0, 0], sizes = [8, 24], strides = [1, 1]} : vector<64x24xf32> to vector<8x24xf32>
    %359 = vector.extract_strided_slice %327 {offsets = [32, 0], sizes = [8, 24], strides = [1, 1]} : vector<64x24xf32> to vector<8x24xf32>
    %cst_147 = arith.constant dense<0.000000e+00> : vector<8x24xf32>
    %360 = tpu.matmul %359, %357, %cst_147 {dimension_numbers = #tpu.dot_dimension_numbers<[1], [1], [0], [0], [0, 0, 1, 0], [], []>} : vector<8x24xf32>, vector<24x24xf32>, vector<8x24xf32> -> vector<8x24xf32>
    %cst_148 = arith.constant dense<0.000000e+00> : vector<8x24xf32>
    %361 = tpu.matmul %358, %357, %cst_148 {dimension_numbers = #tpu.dot_dimension_numbers<[1], [0], [0], [1], [0, 0, 1, 1], [], []>} : vector<8x24xf32>, vector<24x24xf32>, vector<8x24xf32> -> vector<8x24xf32>
    %362 = vector.extract_strided_slice %356 {offsets = [24, 0], sizes = [24, 24], strides = [1, 1]} : vector<96x24xf32> to vector<24x24xf32>
    %363 = vector.extract_strided_slice %327 {offsets = [8, 0], sizes = [8, 24], strides = [1, 1]} : vector<64x24xf32> to vector<8x24xf32>
    %364 = vector.extract_strided_slice %327 {offsets = [40, 0], sizes = [8, 24], strides = [1, 1]} : vector<64x24xf32> to vector<8x24xf32>
    %cst_149 = arith.constant dense<0.000000e+00> : vector<8x24xf32>
    %365 = tpu.matmul %364, %362, %cst_149 {dimension_numbers = #tpu.dot_dimension_numbers<[1], [1], [0], [0], [0, 0, 1, 0], [], []>} : vector<8x24xf32>, vector<24x24xf32>, vector<8x24xf32> -> vector<8x24xf32>
    %cst_150 = arith.constant dense<0.000000e+00> : vector<8x24xf32>
    %366 = tpu.matmul %363, %362, %cst_150 {dimension_numbers = #tpu.dot_dimension_numbers<[1], [0], [0], [1], [0, 0, 1, 1], [], []>} : vector<8x24xf32>, vector<24x24xf32>, vector<8x24xf32> -> vector<8x24xf32>
    %367 = vector.extract_strided_slice %356 {offsets = [48, 0], sizes = [24, 24], strides = [1, 1]} : vector<96x24xf32> to vector<24x24xf32>
    %368 = vector.extract_strided_slice %327 {offsets = [16, 0], sizes = [8, 24], strides = [1, 1]} : vector<64x24xf32> to vector<8x24xf32>
    %369 = vector.extract_strided_slice %327 {offsets = [48, 0], sizes = [8, 24], strides = [1, 1]} : vector<64x24xf32> to vector<8x24xf32>
    %cst_151 = arith.constant dense<0.000000e+00> : vector<8x24xf32>
    %370 = tpu.matmul %369, %367, %cst_151 {dimension_numbers = #tpu.dot_dimension_numbers<[1], [1], [0], [0], [0, 0, 1, 0], [], []>} : vector<8x24xf32>, vector<24x24xf32>, vector<8x24xf32> -> vector<8x24xf32>
    %cst_152 = arith.constant dense<0.000000e+00> : vector<8x24xf32>
    %371 = tpu.matmul %368, %367, %cst_152 {dimension_numbers = #tpu.dot_dimension_numbers<[1], [0], [0], [1], [0, 0, 1, 1], [], []>} : vector<8x24xf32>, vector<24x24xf32>, vector<8x24xf32> -> vector<8x24xf32>
    %372 = vector.extract_strided_slice %356 {offsets = [72, 0], sizes = [24, 24], strides = [1, 1]} : vector<96x24xf32> to vector<24x24xf32>
    %373 = vector.extract_strided_slice %327 {offsets = [24, 0], sizes = [8, 24], strides = [1, 1]} : vector<64x24xf32> to vector<8x24xf32>
    %374 = vector.extract_strided_slice %327 {offsets = [56, 0], sizes = [8, 24], strides = [1, 1]} : vector<64x24xf32> to vector<8x24xf32>
    %cst_153 = arith.constant dense<0.000000e+00> : vector<8x24xf32>
    %375 = tpu.matmul %374, %372, %cst_153 {dimension_numbers = #tpu.dot_dimension_numbers<[1], [1], [0], [0], [0, 0, 1, 0], [], []>} : vector<8x24xf32>, vector<24x24xf32>, vector<8x24xf32> -> vector<8x24xf32>
    %cst_154 = arith.constant dense<0.000000e+00> : vector<8x24xf32>
    %376 = tpu.matmul %373, %372, %cst_154 {dimension_numbers = #tpu.dot_dimension_numbers<[1], [0], [0], [1], [0, 0, 1, 1], [], []>} : vector<8x24xf32>, vector<24x24xf32>, vector<8x24xf32> -> vector<8x24xf32>
    %377 = tpu.concatenate %360, %365, %370, %375, %361, %366, %371, %376 in 0 : vector<8x24xf32>, vector<8x24xf32>, vector<8x24xf32>, vector<8x24xf32>, vector<8x24xf32>, vector<8x24xf32>, vector<8x24xf32>, vector<8x24xf32> -> vector<64x24xf32>
    %cst_155 = arith.constant dense<0.000000e+00> : vector<24x32xf32>
    %378 = tpu.matmul %377, %303, %cst_155 {dimension_numbers = #tpu.dot_dimension_numbers<[0], [0], [1], [1], [0, 1, 1, 1], [], []>} : vector<64x24xf32>, vector<64x32xf32>, vector<24x32xf32> -> vector<24x32xf32>
    %cst_156 = arith.constant dense<0.000000e+00> : vector<32x32xf32>
    %379 = tpu.matmul %306, %326, %cst_156 {dimension_numbers = #tpu.dot_dimension_numbers<[0], [0], [1], [1], [0, 1, 1, 1], [], []>} : vector<24x32xf32>, vector<24x32xf32>, vector<32x32xf32> -> vector<32x32xf32>
    %cst_157 = arith.constant dense<0.000000e+00> : vector<32x32xf32>
    %380 = tpu.matmul %379, %304, %cst_157 {dimension_numbers = #tpu.dot_dimension_numbers<[1], [0], [0], [1], [0, 0, 1, 1], [], []>} : vector<32x32xf32>, vector<32x32xf32>, vector<32x32xf32> -> vector<32x32xf32>
    %cst_158 = arith.constant dense<0xFF800000> : vector<32xf32>
    %381 = vector.multi_reduction <maximumf>, %380, %cst_158 [1] : vector<32x32xf32> to vector<32xf32>
    %382 = vector.shape_cast %381 : vector<32xf32> to vector<32x1xf32>
    %383 = vector.broadcast %382 : vector<32x1xf32> to vector<32x32xf32>
    %384 = arith.subf %380, %383 : vector<32x32xf32>
    %385 = math.exp %384 : vector<32x32xf32>
    %cst_159 = arith.constant dense<0.000000e+00> : vector<32xf32>
    %386 = vector.multi_reduction <add>, %385, %cst_159 [1] : vector<32x32xf32> to vector<32xf32>
    %387 = vector.shape_cast %386 : vector<32xf32> to vector<32x1xf32>
    %388 = tpu.reciprocal %387 : vector<32x1xf32> -> vector<32x1xf32>
    %389 = vector.broadcast %388 : vector<32x1xf32> to vector<32x32xf32>
    %390 = arith.mulf %385, %389 : vector<32x32xf32>
    %cst_160 = arith.constant dense<0.000000e+00> : vector<32x32xf32>
    %391 = tpu.matmul %390, %305, %cst_160 {dimension_numbers = #tpu.dot_dimension_numbers<[1], [0], [0], [1], [0, 0, 1, 1], [], []>} : vector<32x32xf32>, vector<32x32xf32>, vector<32x32xf32> -> vector<32x32xf32>
    %cst_161 = arith.constant dense<0.000000e+00> : vector<24x32xf32>
    %392 = tpu.matmul %306, %391, %cst_161 {dimension_numbers = #tpu.dot_dimension_numbers<[1], [0], [0], [1], [0, 0, 1, 1], [], []>} : vector<24x32xf32>, vector<32x32xf32>, vector<24x32xf32> -> vector<24x32xf32>
    %393 = arith.addf %378, %392 : vector<24x32xf32>
    %394 = arith.addf %299, %393 : vector<24x32xf32>
    %395 = vector.extract_strided_slice %394 {offsets = [0, 0], sizes = [1, 32], strides = [1, 1]} : vector<24x32xf32> to vector<1x32xf32>
    %c536 = arith.constant 536 : index
    %c0_162 = arith.constant 0 : index
    %396 = vector.load %arg2[%c536, %c0_162] : memref<560x32xf32, #tpu.memory_space<vmem>>, vector<1x32xf32>
    %c537 = arith.constant 537 : index
    %c0_163 = arith.constant 0 : index
    %397 = vector.load %arg2[%c537, %c0_163] : memref<560x32xf32, #tpu.memory_space<vmem>>, vector<1x32xf32>
    %cst_164 = arith.constant dense<0.000000e+00> : vector<1xf32>
    %398 = vector.multi_reduction <add>, %395, %cst_164 [1] : vector<1x32xf32> to vector<1xf32>
    %399 = vector.shape_cast %398 : vector<1xf32> to vector<1x1xf32>
    %cst_165 = arith.constant 3.200000e+01 : f32
    %400 = vector.broadcast %cst_165 : f32 to vector<1x1xf32>
    %401 = arith.divf %399, %400 : vector<1x1xf32>
    %402 = vector.broadcast %401 : vector<1x1xf32> to vector<1x32xf32>
    %403 = arith.subf %395, %402 : vector<1x32xf32>
    %404 = arith.mulf %403, %403 : vector<1x32xf32>
    %cst_166 = arith.constant dense<0.000000e+00> : vector<1xf32>
    %405 = vector.multi_reduction <add>, %404, %cst_166 [1] : vector<1x32xf32> to vector<1xf32>
    %406 = vector.shape_cast %405 : vector<1xf32> to vector<1x1xf32>
    %cst_167 = arith.constant 3.200000e+01 : f32
    %407 = vector.broadcast %cst_167 : f32 to vector<1x1xf32>
    %408 = arith.divf %406, %407 : vector<1x1xf32>
    %409 = arith.mulf %396, %403 : vector<1x32xf32>
    %cst_168 = arith.constant 9.99999974E-6 : f32
    %410 = vector.broadcast %cst_168 : f32 to vector<1x1xf32>
    %411 = arith.addf %408, %410 : vector<1x1xf32>
    %412 = math.rsqrt %411 : vector<1x1xf32>
    %413 = vector.broadcast %412 : vector<1x1xf32> to vector<1x32xf32>
    %414 = arith.mulf %409, %413 : vector<1x32xf32>
    %415 = arith.addf %414, %397 : vector<1x32xf32>
    %c544 = arith.constant 544 : index
    %c0_169 = arith.constant 0 : index
    %416 = vector.load %arg2[%c544, %c0_169] : memref<560x32xf32, #tpu.memory_space<vmem>>, vector<10x32xf32>
    %c538 = arith.constant 538 : index
    %c0_170 = arith.constant 0 : index
    %417 = vector.load %arg2[%c538, %c0_170] : memref<560x32xf32, #tpu.memory_space<vmem>>, vector<1x32xf32>
    %418 = vector.extract_strided_slice %417 {offsets = [0, 0], sizes = [1, 10], strides = [1, 1]} : vector<1x32xf32> to vector<1x10xf32>
    %cst_171 = arith.constant dense<0.000000e+00> : vector<1x10xf32>
    %419 = tpu.matmul %415, %416, %cst_171 {dimension_numbers = #tpu.dot_dimension_numbers<[1], [1], [0], [0], [0, 0, 1, 0], [], []>} : vector<1x32xf32>, vector<10x32xf32>, vector<1x10xf32> -> vector<1x10xf32>
    %420 = arith.addf %419, %418 : vector<1x10xf32>
    %c0_172 = arith.constant 0 : index
    %c0_173 = arith.constant 0 : index
    %c0_174 = arith.constant 0 : index
    %421 = vector.load %arg3[%c0_172, %c0_173, %c0_174] : memref<1x1x10xf32, #tpu.memory_space<vmem>>, vector<1x1x10xf32>
    %422 = vector.shape_cast %421 : vector<1x1x10xf32> to vector<1x10xf32>
    %423 = vector.shape_cast %420 : vector<1x10xf32> to vector<1x1x10xf32>
    tpu.vector_store %arg3[%c0_172, %c0_173, %c0_174], %423 {strides = array<i32>} : memref<1x1x10xf32, #tpu.memory_space<vmem>>, vector<1x1x10xf32>,
    return
  }
  func.func @transform_0(%arg0: i32) -> (i32, i32, i32) {
    %c0_i32 = arith.constant 0 : i32
    %c0_i32_0 = arith.constant 0 : i32
    %c0_i32_1 = arith.constant 0 : i32
    return %arg0, %c0_i32, %c0_i32_0 : i32, i32, i32
  }
  func.func @transform_1(%arg0: i32) -> (i32, i32) {
    %c0_i32 = arith.constant 0 : i32
    %c0_i32_0 = arith.constant 0 : i32
    %c0_i32_1 = arith.constant 0 : i32
    return %c0_i32, %c0_i32_0 : i32, i32
  }
  func.func @transform_2(%arg0: i32) -> (i32, i32, i32) {
    %c0_i32 = arith.constant 0 : i32
    %c0_i32_0 = arith.constant 0 : i32
    %c0_i32_1 = arith.constant 0 : i32
    return %arg0, %c0_i32, %c0_i32_0 : i32, i32, i32
  }
}

</mosaic_0001>

<bundles_post_ra>
// kernel: viset_forward.1
= control target key start
LH: loop header
LB: loop body
LE: loop exit
PB: predicated region body
PF: predicated region fallthrough
CT: control target
= control target key end

     0   :  { %7 = vsyncpa [#allocation3], 0  ;;  %s12779_s0 = inlined_call_operand.vmem [shape: f32[2,24,64], index: 0, kind: input, shape index: {}]   ;;  %s12780_s1 = inlined_call_operand.vmem [shape: f32[560,32], index: 1, kind: input, shape index: {}]   ;;  %s12781_s2 = inlined_call_operand.hbm [shape: f32[2,1,10], index: 2, kind: output, shape index: {}]  }
   0x1   :  { %9 = vsyncpa [#allocation3 + $0x1], 0  ;;  %s10780_s9 = smov 0   ;;  %s10782_s10 = smov 0  }
   0x2   :  { %s10784_s11 = smov 0   ;;  %s10786_s12 = smov 0  }
   0x3 LB: > { %s10801_s13 = sadd.s32 4294967295, %s10757_s12   ;;  %s8458_s14 = sadd.s32 4294967294, %s10757_s12   ;;  %s10757_s12 = sphi %s10786_s12, %s12791_s12   ;;  %s10753_s11 = sphi %s10784_s11, %s12790_s11   ;;  %s10749_s10 = sphi %s10782_s10, %s12789_s10   ;;  %s10745_s9 = sphi %s10780_s9, %s12788_s9  }
   0x4   : > { %s10805_s15 = sadd.s32 1, %s10757_s12   ;;  %s69_s16 = sadd.s32 1, %s10753_s11 }
   0x5   : > { %s66_s17 = ssub.s32 %s10757_s12, %s10805_s15  ;;  %p79_p0 = scmp.ne.s32.totalorder %s10753_s11, %s10749_s10 }
   0x6   : > { %p67_p1 = scmp.eq.s32.totalorder %s66_s17, 0  ;;  %p80_p2 = scmp.eq.s32.totalorder %s10801_s13, 1 }
   0x7   : > { %p85_p3 = scmp.ne.s32.totalorder %s10749_s10, %s10745_s9  ;;  %p86_p4 = scmp.eq.s32.totalorder %s8458_s14, 1 }
   0x8   : > { %s10816_s18 = scalar_select %p67_p1, %s10753_s11, %s69_s16  }
   0x9   : > { %p10818_p5 = por %p80_p2, %p79_p0  ;;  %p10822_p6 = por %p86_p4, %p85_p3 }
   0xa   : > { %p8461_p7 = scmp.ge.s32.totalorder %s10757_s12, 1  ;;  %p115_p8 = scmp.lt.s32.totalorder %s10757_s12, 3 }
   0xc   : > { %p116_p9 = pnand %p8461_p7, %p115_p8 }
   0xd   : > { %v141_v0 = vld [vmem:[%s12780_s1 + $0x18] sm:$0xff] (!%p116_p9)  ;;  %v142_v1 = vld [vmem:[%s12780_s1 + $0x20] sm:$0xff] (!%p116_p9)  ;;  %v143_v2 = vld [vmem:[%s12780_s1 + $0x28] sm:$0xff] (!%p116_p9)  ;;  %v10759_v3 = vmov (!%p116_p9), 0.0|0.0   ;;  %vm10760_vm0 = vmmov (!%p116_p9), 0   ;;  %v10761_v6 = vmov (!%p116_p9), 0.0  }
   0xe   : > { %119 = sbr.rel (%p116_p9) target bundleno = 10562 (0x2942), region = 28  ;;  %10031 = vmatprep.subr.bf16.mxu0 (!%p116_p9), %v10759_v3  ;;  %v10032_v4 = vpack.c.bf16 (!%p116_p9), %v142_v1, %v141_v0  ;;  %v144_v5 = vld [vmem:[%s12780_s1 + $0x30] sm:$0xff] (!%p116_p9)  ;;  %9151 = vmatprep.mubr.msk.f32.mxu0 (!%p116_p9), %vm10760_vm0, %v10761_v6  ;;  %p136_p10 = scmp.lt.s32.totalorder (!%p116_p9), %s10801_s13, 1  ;;  %v145_v8 = vld [vmem:[%s12780_s1 + $0x38] sm:$0xff] (!%p116_p9)  ;;  %v146_v9 = vld [vmem:[%s12780_s1 + $0x40] sm:$0xff] (!%p116_p9)  ;;  %vm155_vm1 = vcmask (!%p116_p9), 523264  }
   0xf   : > { %v10035_v7 = vpack.c.bf16 (!%p116_p9), %v144_v5, %v143_v2  ;;  %v10038_v10 = vpack.c.bf16 (!%p116_p9), %v146_v9, %v145_v8  ;;  %v147_v11 = vld [vmem:[%s12780_s1 + $0x48] sm:$0xff] (!%p116_p9)  ;;  %v148_v12 = vld [vmem:[%s12780_s1 + $0x50] sm:$0xff] (!%p116_p9)  ;;  %v149_v17 = vld [vmem:[%s12780_s1] sm:$0xff] (!%p116_p9)  ;;  %vm290_vm2 = vcmask (!%p116_p9), 261120   ;;  %vm515_vm4 = vcmask (!%p116_p9), 64512   ;;  %s134_s6 = sand.u32 (!%p116_p9), 1, %s10749_s10  }
  0x10   : > { %10033 = vmatpush3.bf16.msra.mxu0 (!%p116_p9), %v10032_v4  ;;  %v10041_v13 = vpack.c.bf16 (!%p116_p9), %v148_v12, %v147_v11  ;;  %v150_v21 = vld [vmem:[%s12780_s1 + $0x8] sm:$0xff] (!%p116_p9)  ;;  %v151_v26 = vld [vmem:[%s12780_s1 + $0x10] sm:$0xff] (!%p116_p9)  ;;  %v263_v47 = vld [vmem:[%s12780_s1 + $0x60] sm:$0xff] (!%p116_p9)  ;;  %vm982_vm6 = vcmask (!%p116_p9), 195584   ;;  %vm8290_vm9 = vcmask (!%p116_p9), 253952   ;;  %s8718_s14 = sshll.u32 (!%p116_p9), %s10801_s13, 4 }
  0x11   : > { %10034 = vmatprep.subr.bf16.mxu0 (!%p116_p9), %v10759_v3  ;;  %9166 = vmatprep.mubr.msk.f32.mxu1 (!%p116_p9), %vm290_vm2, %v263_v47  ;;  %v8467_v57 = vld [vmem:[%s12780_s1 + $0x58] ss:$0 sm:$0xff] (!%p116_p9)  ;;  %v8468_v63 = vld [vmem:[%s12780_s1 + $0x59] ss:$0 sm:$0xff] (!%p116_p9)  ;;  %vm10912_vm3 = vmpackc.low (!%p116_p9), %vm290_vm2, %vm290_vm2  ;;  %vm8388_vm10 = vcmask (!%p116_p9), 73728   ;;  %s12737_s23 = scalar_lea.hbm (!%p116_p9), %s12781_s2, %s8718_s14  ;;  %s8391_s24 = scalar_lea.sflag (!%p116_p9), [#allocation3], %s134_s6 }
  0x12   : > { %v264_v11 = vld [vmem:[%s12780_s1 + $0x68] sm:$0xff] (!%p116_p9)  ;;  %v265_v12 = vld [vmem:[%s12780_s1 + $0x70] sm:$0xff] (!%p116_p9)  ;;  %vm11171_vm8 = vmpackc.low (!%p116_p9), %vm982_vm6, %vm982_vm6 }
  0x14   : > { %10036 = vmatpush3.bf16.msra.mxu0 (!%p116_p9), %v10035_v7  ;;  %v8288_v7 = vld [vmem:[%s12780_s1 + $0x218] sm:$0x1] (!%p116_p9) }
  0x15   : > { %s137_s5 = scalar_select %p136_p10, %s10801_s13, 1  ;;  %10037 = vmatprep.subr.bf16.mxu0 %v10759_v3 }
  0x16   : > { %s10764_s13 = smov [#allocation2]  }
  0x17   : > { %s10335_s16 = smul.u32 24, %s137_s5  ;;  %s10699_s26 = sshll.u32 %s10764_s13, 4  ;;  %s10700_s26 = int_to_ptr.vmem [resolvable:$false] %s10699_s26 }
  0x18   : > { %10039 = vmatpush3.bf16.msra.mxu0 %v10038_v10  ;;  %s10701_s27 = scalar_lea.vmem %s10700_s26, 32 }
  0x19   : > { %10040 = vmatprep.subr.bf16.mxu0 %v10759_v3  ;;  %s140_s22 = scalar_lea.vmem %s12779_s0, %s10335_s16  ;;  %s135_s16 = scalar_lea.vmem [#allocation2], %s134_s6 }
  0x1a   : > { %v152_v14 = vld [vmem:[%s140_s22] sm:$0xff]  ;;  %v153_v15 = vld [vmem:[%s140_s22 + $0x8] sm:$0xff]  ;;  %v154_v16 = vld [vmem:[%s140_s22 + $0x10] sm:$0xff]  ;;  %s8403_s17 = sshll.u32 %s135_s16, 4  ;;  %s12739_s17 = int_to_ptr.vmem [resolvable:$true] %s8403_s17 }
  0x1b   : > { %s10695_s25 = scalar_lea.vmem %s12739_s17, 16  ;;  %p10702_p0 = scmp.lt.s32.totalorder %s12739_s17, %s10700_s26 }
  0x1c   : > { %10042 = vmatpush3.bf16.msra.mxu0 %v10041_v13  ;;  %v266_v13 = vld [vmem:[%s12780_s1 + $0x78] sm:$0xff]  ;;  %p10696_p11 = scmp.ne.s32.totalorder %s12739_s17, %s10695_s25  ;;  %p10703_p1 = scmp.lt.s32.totalorder %s10701_s27, %s10695_s25 }
  0x1d   : > { %9178 = vmatprep.subr.mxu0 %v10761_v6 }
  0x1e   : > { %p10697_p12 = pnand %p10696_p11, %p10818_p5  ;;  %p10704_p2 = por %p10703_p1, %p10702_p0 }
  0x1f   : > { %9152 = vmatmul.mubr.msk.f32.vlgmr.msra.gmra.mrb[0].mxu0 %vm155_vm1, %v152_v14  ;;  %v267_v14 = vld [vmem:[%s12780_s1 + $0x80] sm:$0xff] }
  0x20   : > { %9154 = vmatprep.mubr.msk.f32.mxu0 %vm10760_vm0, %v10761_v6  ;;  %p10698_p13 = pneg %p10697_p12 }
  0x22   : > { %p10705_p3 = pnand %p10704_p2, %p10698_p13 }
  0x23   : > { %9155 = vmatmul.mubr.msk.f32.gmra.mrb[2].mxu0 %vm155_vm1, %v153_v15  ;;  %v268_v15 = vld [vmem:[%s12780_s1 + $0x88] sm:$0xff] }
  0x24   : > { %9157 = vmatprep.mubr.msk.f32.mxu0 %vm10760_vm0, %v10761_v6 }
  0x27   : > { %9158 = vmatmul.mubr.msk.f32.gmra.mrb[4].mxu0 %vm155_vm1, %v154_v16  ;;  %v269_v16 = vld [vmem:[%s12780_s1 + $0x90] sm:$0xff] }
  0x28   : > { %9180 = vmatprep.mubr.msk.f32.mxu0 %vm10760_vm0, %v10761_v6 }
  0xf2   : > { %v231_v18 = vpop.f32.mrb[0].mxu0 }
  0xf3   : > { %v10876_v19 = vadd.f32 %v231_v18, %v149_v17  ;;  %v9153_v20 = vpop.f32.mrb[1].mxu0  ;;  %v270_v17 = vld [vmem:[%s12780_s1 + $0x98] sm:$0xff] }
  0xf5   : > { %v291_v22 = vsel %vm290_vm2, %v10876_v19, 0.0 }
  0xf6   : > { %292 = vadd.xlane.f32.xlu0 %v291_v22  ;;  %v236_v23 = vpop.f32.mrb[2].mxu0 }
  0xf7   : > { %v10883_v24 = vadd.f32 %v236_v23, %v150_v21  ;;  %v9156_v25 = vpop.f32.mrb[3].mxu0 }
  0xf9   : > { %v294_v27 = vsel %vm290_vm2, %v10883_v24, 0.0 }
  0xfa   : > { %295 = vadd.xlane.f32.xlu0 %v294_v27  ;;  %v241_v28 = vpop.f32.mrb[4].mxu0 }
  0xfb   : > { %v10890_v29 = vadd.f32 %v241_v28, %v151_v26  ;;  %v9159_v30 = vpop.f32.mrb[5].mxu0 }
  0xfd   : > { %v297_v31 = vsel %vm290_vm2, %v10890_v29, 0.0 }
  0xfe   : > { %298 = vadd.xlane.f32.xlu1 %v297_v31 }
 0x183   : > { %v293_v32 = vpop.xlane.xlu0 %292 }
 0x184   : > { %v301_v33 = vmul.f32 0.03125, %v293_v32 }
 0x186   : > { %v304_v34 = vsub.f32 %v10876_v19, %v301_v33 }
 0x187   : > { %v296_v35 = vpop.xlane.xlu0 %295 }
 0x188   : > { %v302_v36 = vmul.f32 0.03125, %v296_v35  ;;  %v307_v37 = vmul.f32 %v304_v34, %v304_v34  ;;  %v326_v59 = vmul.f32 %v8467_v57, %v304_v34 }
 0x18a   : > { %v305_v38 = vsub.f32 %v10883_v24, %v302_v36  ;;  %v310_v39 = vsel %vm290_vm2, %v307_v37, 0.0 }
 0x18b   : > { %311 = vadd.xlane.f32.xlu1 %v310_v39  ;;  %v299_v40 = vpop.xlane.xlu1 %298 }
 0x18c   : > { %v303_v41 = vmul.f32 0.03125, %v299_v40  ;;  %v308_v42 = vmul.f32 %v305_v38, %v305_v38  ;;  %v327_v60 = vmul.f32 %v8467_v57, %v305_v38 }
 0x18e   : > { %v306_v43 = vsub.f32 %v10890_v29, %v303_v41  ;;  %v313_v44 = vsel %vm290_vm2, %v308_v42, 0.0  ;;  %v245_v41 = vlaneseq }
 0x18f   : > { %314 = vadd.xlane.f32.xlu0 %v313_v44 }
 0x190   : > { %v309_v45 = vmul.f32 %v306_v43, %v306_v43  ;;  %v328_v1 = vmul.f32 %v8467_v57, %v306_v43  ;;  %v11026_v42 = vand.u32 127, %v245_v41 }
 0x192   : > { %v316_v46 = vsel %vm290_vm2, %v309_v45, 0.0  ;;  %vm247_vm5 = vcmp.lt.s32.totalorder %v11026_v42, 17 }
 0x193   : > { %317 = vadd.xlane.f32.xlu1 %v316_v46 }
 0x218   : > { %v312_v48 = vpop.xlane.xlu1 %311 }
 0x219   : > { %v319_v49 = vmul.f32 0.03125, %v312_v48 }
 0x21b   : > { %v329_v50 = vadd.f32 1e-05, %v319_v49 }
 0x21c   : > { %v315_v51 = vpop.xlane.xlu0 %314 }
 0x21d   : > { %10387 = vrsqrt.f32 %v329_v50  ;;  %v320_v52 = vmul.f32 0.03125, %v315_v51 }
 0x21f   : > { %v330_v53 = vadd.f32 1e-05, %v320_v52 }
 0x220   : > { %v318_v54 = vpop.xlane.xlu1 %317 }
 0x221   : > { %10389 = vrsqrt.f32 %v330_v53  ;;  %v321_v55 = vmul.f32 0.03125, %v318_v54 }
 0x223   : > { %v331_v56 = vadd.f32 1e-05, %v321_v55 }
 0x225   : > { %10391 = vrsqrt.f32 %v331_v56 }
 0x227   : > { %v10388_v58 = vpop.eup %10387 }
 0x228   : > { %v335_v61 = vmul.f32 %v10388_v58, %v326_v59 }
 0x22a   : > { %v342_v2 = vadd.f32 %v8468_v63, %v335_v61 }
 0x22b   : > { %v10390_v62 = vpop.eup %10389 }
 0x22c   : > { %v336_v0 = vmul.f32 %v10390_v62, %v327_v60 }
 0x22e   : > { %v343_v4 = vadd.f32 %v8468_v63, %v336_v0 }
 0x22f   : > { %v10392_v5 = vpop.eup %10391 }
 0x230   : > { %v10916_v8 = vpack.c.bf16 %v343_v4, %v342_v2  ;;  %v337_v9 = vmul.f32 %v10392_v5, %v328_v1 }
 0x232   : > { %10045 = vmatprep.subr.msk.bf16.mxu1 %vm10912_vm3, %v10916_v8  ;;  %v10921_v10 = vadd.f32 %v8468_v63, %v337_v9 }
 0x233   : > { %10048 = vmatpush3.bf16.xpose.msk.msra.mxu1 %vm10912_vm3, %v10916_v8 }
 0x234   : > { %9164 = vmatprep.subr.msk.mxu1 %vm290_vm2, %v10921_v10 }
 0x23b   : > { %9165 = vmatpush3.xpose.msk.msra.mxu1 %vm290_vm2, %v10921_v10 }
 0x23c   : > { %9189 = vmatprep.subr.mxu1 %v10761_v6 }
 0x23e   : > { %9167 = vmatmul.mubr.msk.f32.vlgmr.msra.gmra.mrb[0].mxu1 %vm290_vm2, %v264_v11 }
 0x23f   : > { %9169 = vmatprep.mubr.msk.f32.mxu1 %vm290_vm2, %v265_v12 }
 0x242   : > { %9170 = vmatmul.mubr.msk.f32.gmra.mrb[2].mxu1 %vm290_vm2, %v266_v13 }
 0x243   : > { %9172 = vmatprep.mubr.msk.f32.mxu1 %vm290_vm2, %v267_v14 }
 0x246   : > { %9173 = vmatmul.mubr.msk.f32.gmra.mrb[4].mxu1 %vm290_vm2, %v268_v15 }
 0x247   : > { %9175 = vmatprep.mubr.msk.f32.mxu1 %vm290_vm2, %v269_v16 }
 0x24a   : > { %9176 = vmatmul.mubr.msk.f32.gmra.mrb[6].mxu1 %vm290_vm2, %v270_v17 }
 0x24b   : > { %9191 = vmatprep.mubr.msk.f32.mxu1 %vm10760_vm0, %v10761_v6 }
 0x311   : > { %v10961_v18 = vpop.f32.mrb[0].mxu1 }
 0x312   : > { %605 = vxpose.xlu1.b32.start.end [1/1] (short) (narrow) %v10961_v18, 24  ;;  %v10964_v20 = vpop.f32.mrb[1].mxu1 }
 0x313   : > { %483 = vxpose.xlu0.b32.start.end [1/1] (short) (narrow) %v10964_v20, 24 }
 0x315   : > { %v10967_v21 = vpop.f32.mrb[2].mxu1 }
 0x316   : > { %v10969_v22 = vpop.f32.mrb[3].mxu1 }
 0x319   : > { %v10971_v23 = vpop.f32.mrb[4].mxu1 }
 0x31a   : > { %v10973_v25 = vpop.f32.mrb[5].mxu1  ;;  %9190 = vmatpush3.msra.mxu1 %v10971_v23 }
 0x31b   : > { %847 = vxpose.xlu1.b32.start.end [1/1] (short) (narrow) %v10967_v21, 24  ;;  %9179 = vmatpush3.msra.mxu0 %v10973_v25 }
 0x31c   : > { %726 = vxpose.xlu0.b32.start.end [1/1] (short) (narrow) %v10969_v22, 24  ;;  %9200 = vmatprep.subr.mxu0 %v10761_v6 }
 0x31d   : > { %v10980_v26 = vpop.f32.mrb[6].mxu1  ;;  %9211 = vmatprep.subr.mxu1 %v10761_v6 }
 0x31e   : > { %v10983_v27 = vpop.f32.mrb[7].mxu1 }
 0x392   : > { %v621_v28 = vpop.trf.xlu1 }
 0x393   : > { %v499_v30 = vpop.trf.xlu0  ;;  %9192 = vmatmul.mubr.msk.f32.vlgmr.msra.gmra.mrb[8].mxu1 %vm515_vm4, %v621_v28 }
 0x394   : > { %9181 = vmatmul.mubr.msk.f32.vlgmr.msra.gmra.mrb[6].mxu0 %vm515_vm4, %v499_v30  ;;  %9212 = vmatpush3.msra.mxu1 %v10980_v26 }
 0x395   : > { %9183 = vmatprep.mubr.msk.f32.mxu0 %vm10760_vm0, %v10761_v6  ;;  %9201 = vmatpush3.msra.mxu0 %v10983_v27 }
 0x396   : > { %v622_v31 = vpop.trf.xlu1  ;;  %9194 = vmatprep.mubr.msk.f32.mxu1 %vm10760_vm0, %v10761_v6  ;;  %10049 = vmatprep.subr.bf16.mxu0 %v10759_v3 }
 0x397   : > { %v500_v32 = vpop.trf.xlu0  ;;  %9195 = vmatmul.mubr.msk.f32.gmra.mrb[10].mxu1 %vm515_vm4, %v622_v31  ;;  %10053 = vmatprep.subr.bf16.mxu1 %v10759_v3 }
 0x398   : > { %9184 = vmatmul.mubr.msk.f32.gmra.mrb[8].mxu0 %vm515_vm4, %v500_v32  ;;  %9197 = vmatprep.mubr.msk.f32.mxu1 %vm10760_vm0, %v10761_v6 }
 0x399   : > { %9186 = vmatprep.mubr.msk.f32.mxu0 %vm10760_vm0, %v10761_v6 }
 0x39a   : > { %v623_v33 = vpop.trf.xlu1 }
 0x39b   : > { %v501_v34 = vpop.trf.xlu0  ;;  %9198 = vmatmul.mubr.msk.f32.gmra.mrb[12].mxu1 %vm515_vm4, %v623_v33 }
 0x39c   : > { %9187 = vmatmul.mubr.msk.f32.gmra.mrb[10].mxu0 %vm515_vm4, %v501_v34  ;;  %9213 = vmatprep.mubr.msk.f32.mxu1 %vm10760_vm0, %v10761_v6 }
 0x39d   : > { %9202 = vmatprep.mubr.msk.f32.mxu0 %vm10760_vm0, %v10761_v6 }
 0x39e   : > { %v863_v35 = vpop.trf.xlu1 }
 0x39f   : > { %v742_v36 = vpop.trf.xlu0  ;;  %9214 = vmatmul.mubr.msk.f32.vlgmr.msra.gmra.mrb[14].mxu1 %vm515_vm4, %v863_v35 }
 0x3a0   : > { %9203 = vmatmul.mubr.msk.f32.vlgmr.msra.gmra.mrb[12].mxu0 %vm515_vm4, %v742_v36  ;;  %9216 = vmatprep.mubr.msk.f32.mxu1 %vm10760_vm0, %v10761_v6 }
 0x3a1   : > { %9205 = vmatprep.mubr.msk.f32.mxu0 %vm10760_vm0, %v10761_v6 }
 0x3a2   : > { %v864_v37 = vpop.trf.xlu1 }
 0x3a3   : > { %v743_v38 = vpop.trf.xlu0  ;;  %9217 = vmatmul.mubr.msk.f32.gmra.mrb[16].mxu1 %vm515_vm4, %v864_v37 }
 0x3a4   : > { %9206 = vmatmul.mubr.msk.f32.gmra.mrb[14].mxu0 %vm515_vm4, %v743_v38  ;;  %9219 = vmatprep.mubr.msk.f32.mxu1 %vm10760_vm0, %v10761_v6 }
 0x3a5   : > { %9208 = vmatprep.mubr.msk.f32.mxu0 %vm10760_vm0, %v10761_v6 }
 0x3a6   : > { %v865_v39 = vpop.trf.xlu1 }
 0x3a7   : > { %v744_v40 = vpop.trf.xlu0  ;;  %9220 = vmatmul.mubr.msk.f32.gmra.mrb[18].mxu1 %vm515_vm4, %v865_v39 }
 0x3a8   : > { %9209 = vmatmul.mubr.msk.f32.gmra.mrb[16].mxu0 %vm515_vm4, %v744_v40  ;;  %9237 = vmatprep.mubr.msk.f32.mxu1 %vm10760_vm0, %v10761_v6 }
 0x3a9   : > { %9228 = vmatprep.mubr.msk.f32.mxu0 %vm10760_vm0, %v10761_v6 }
 0x466   : > { %v712_v43 = vpop.f32.mrb[8].mxu1 }
 0x467   : > { %v591_v44 = vpop.f32.mrb[6].mxu0  ;;  %v9193_v45 = vpop.f32.mrb[9].mxu1  ;;  %v973_v54 = vsel %vm247_vm5, %v712_v43, -1e+30 }
 0x468   : > { %v970_v46 = vsel %vm247_vm5, %v591_v44, -1e+30  ;;  %v9182_v47 = vpop.f32.mrb[7].mxu0  ;;  %v992_v59 = vsel %vm982_vm6, %v973_v54, -inf  ;;  %v10762_v45 = vmov 0  }
 0x469   : > { %v983_v48 = vsel %vm982_vm6, %v970_v46, -inf  ;;  %10386 = vset.pattern.permute.xlu1 %v10762_v45  ;;  %10380 = vset.pattern.permute.xlu0 %v10762_v45 }
 0x46a   : > { %984 = vmax.xlane.f32.xlu0 %v983_v48  ;;  %v717_v49 = vpop.f32.mrb[10].mxu1 }
 0x46b   : > { %v596_v50 = vpop.f32.mrb[8].mxu0  ;;  %v9196_v51 = vpop.f32.mrb[11].mxu1  ;;  %v11039_v58 = vsel %vm247_vm5, %v717_v49, -1e+30 }
 0x46c   : > { %v971_v52 = vsel %vm247_vm5, %v596_v50, -1e+30  ;;  %v9185_v53 = vpop.f32.mrb[9].mxu0  ;;  %v995_v5 = vsel %vm982_vm6, %v11039_v58, -inf }
 0x46d   : > { %v986_v55 = vsel %vm982_vm6, %v971_v52, -inf }
 0x46e   : > { %987 = vmax.xlane.f32.xlu1 %v986_v55  ;;  %v722_v56 = vpop.f32.mrb[12].mxu1 }
 0x46f   : > { %v601_v57 = vpop.f32.mrb[10].mxu0  ;;  %v9199_v60 = vpop.f32.mrb[13].mxu1  ;;  %v975_v63 = vsel %vm247_vm5, %v722_v56, -1e+30 }
 0x470   : > { %v11044_v61 = vsel %vm247_vm5, %v601_v57, -1e+30  ;;  %v9188_v62 = vpop.f32.mrb[11].mxu0  ;;  %v998_v4 = vsel %vm982_vm6, %v975_v63, -inf }
 0x471   : > { %v989_v0 = vsel %vm982_vm6, %v11044_v61, -inf }
 0x472   : > { %993 = vmax.xlane.f32.xlu1 %v992_v59  ;;  %990 = vmax.xlane.f32.xlu0 %v989_v0  ;;  %v954_v1 = vpop.f32.mrb[14].mxu1 }
 0x473   : > { %v833_v2 = vpop.f32.mrb[12].mxu0  ;;  %v9215_v9 = vpop.f32.mrb[15].mxu1  ;;  %v11059_v15 = vsel %vm247_vm5, %v954_v1, -1e+30 }
 0x474   : > { %v11055_v11 = vsel %vm247_vm5, %v833_v2, -1e+30  ;;  %v9204_v12 = vpop.f32.mrb[13].mxu0  ;;  %v1010_v35 = vsel %vm982_vm6, %v11059_v15, -inf }
 0x475   : > { %v1001_v16 = vsel %vm982_vm6, %v11055_v11, -inf }
 0x476   : > { %999 = vmax.xlane.f32.xlu1 %v998_v4  ;;  %996 = vmax.xlane.f32.xlu0 %v995_v5  ;;  %v959_v13 = vpop.f32.mrb[16].mxu1 }
 0x477   : > { %v838_v14 = vpop.f32.mrb[14].mxu0  ;;  %v9218_v17 = vpop.f32.mrb[17].mxu1  ;;  %v11067_v31 = vsel %vm247_vm5, %v959_v13, -1e+30 }
 0x478   : > { %v977_v28 = vsel %vm247_vm5, %v838_v14, -1e+30  ;;  %v9207_v30 = vpop.f32.mrb[15].mxu0  ;;  %v1013_v34 = vsel %vm982_vm6, %v11067_v31, -inf }
 0x479   : > { %v1004_v32 = vsel %vm982_vm6, %v977_v28, -inf }
 0x47a   : > { %1002 = vmax.xlane.f32.xlu0 %v1001_v16  ;;  %1005 = vmax.xlane.f32.xlu1 %v1004_v32  ;;  %v964_v33 = vpop.f32.mrb[18].mxu1 }
 0x47b   : > { %v843_v36 = vpop.f32.mrb[16].mxu0  ;;  %v9221_v37 = vpop.f32.mrb[19].mxu1  ;;  %v11080_v39 = vsel %vm247_vm5, %v964_v33, -1e+30 }
 0x47c   : > { %v11076_v38 = vsel %vm247_vm5, %v843_v36, -1e+30  ;;  %v9210_v40 = vpop.f32.mrb[17].mxu0  ;;  %v1016_v43 = vsel %vm982_vm6, %v11080_v39, -inf }
 0x47d   : > { %v1007_v44 = vsel %vm982_vm6, %v11076_v38, -inf }
 0x47e   : > { %1014 = vmax.xlane.f32.xlu0 %v1013_v34  ;;  %1011 = vmax.xlane.f32.xlu1 %v1010_v35 }
 0x482   : > { %1017 = vmax.xlane.f32.xlu1 %v1016_v43  ;;  %1008 = vmax.xlane.f32.xlu0 %v1007_v44  ;;  %v249_v44 = vshrl.u32 %v245_v41, 7 }
 0x484   : > { %v251_v45 = vadd.s32 16, %v249_v44 }
 0x486   : > { %vm254_vm7 = vcmp.lt.s32.totalorder %v251_v45, 17 }
 0x4f7   : > { %v985_v47 = vpop.xlane.xlu0 %984 }
 0x4f8   : > { %v1019_v48 = vsub.f32 %v970_v46, %v985_v47  ;;  %v8466_v47 = vsel %vm254_vm7, 1.0, %v10761_v6 }
 0x4fa   : > { %v1031_v49 = vmul.f32 1.442695, %v1019_v48 }
 0x4fb   : > { %v988_v50 = vpop.xlane.xlu1 %987 }
 0x4fc   : > { %10393 = vpow2.f32 %v1031_v49  ;;  %v1020_v51 = vsub.f32 %v971_v52, %v988_v50  ;;  %v10763_v49 = vmov 1.0|1.0  }
 0x4fe   : > { %v1033_v57 = vmul.f32 1.442695, %v1020_v51 }
 0x4ff   : > { %v994_v53 = vpop.xlane.xlu1 %993  ;;  %v991_v55 = vpop.xlane.xlu0 %990 }
 0x500   : > { %v1022_v56 = vsub.f32 %v973_v54, %v994_v53  ;;  %v1021_v60 = vsub.f32 %v11044_v61, %v991_v55 }
 0x502   : > { %v1037_v59 = vmul.f32 1.442695, %v1022_v56  ;;  %v1035_v9 = vmul.f32 1.442695, %v1021_v60 }
 0x503   : > { %v1000_v62 = vpop.xlane.xlu1 %999  ;;  %v997_v0 = vpop.xlane.xlu0 %996 }
 0x504   : > { %10395 = vpow2.f32 %v1037_v59  ;;  %v1024_v1 = vsub.f32 %v975_v63, %v1000_v62  ;;  %v1023_v2 = vsub.f32 %v11039_v58, %v997_v0 }
 0x505   : > { %10397 = vpow2.f32 %v1033_v57 }
 0x506   : > { %v11088_v4 = vpop.eup %10393  ;;  %v1041_v46 = vmul.f32 1.442695, %v1024_v1  ;;  %v1039_v5 = vmul.f32 1.442695, %v1023_v2 }
 0x507   : > { %v1003_v52 = vpop.xlane.xlu0 %1002  ;;  %v1006_v12 = vpop.xlane.xlu1 %1005  ;;  %v1055_v54 = vsel %vm982_vm6, %v11088_v4, 0.0 }
 0x508   : > { %v1025_v13 = vsub.f32 %v11055_v11, %v1003_v52  ;;  %v1026_v61 = vsub.f32 %v977_v28, %v1006_v12  ;;  %1056 = vadd.xlane.f32.xlu0 %v1055_v54  ;;  %10399 = vpow2.f32 %v1039_v5  ;;  %v11152_v52 = vld [vmem:[%s12780_s1 + $0x128] sm:$0xff]  ;;  %v11158_v12 = vld [vmem:[%s12780_s1 + $0x130] sm:$0xff] }
 0x509   : > { %10401 = vpow2.f32 %v1041_v46 }
 0x50a   : > { %v1045_v63 = vmul.f32 1.442695, %v1026_v61  ;;  %10403 = vpow2.f32 %v1035_v9  ;;  %v1043_v58 = vmul.f32 1.442695, %v1025_v13  ;;  %v11146_v9 = vld [vmem:[%s12780_s1 + $0x120] sm:$0xff] }
 0x50b   : > { %v1015_v48 = vpop.xlane.xlu0 %1014  ;;  %v1012_v51 = vpop.xlane.xlu1 %1011 }
 0x50c   : > { %10405 = vpow2.f32 %v1045_v63  ;;  %v1028_v55 = vsub.f32 %v11059_v15, %v1012_v51  ;;  %v1029_v56 = vsub.f32 %v11067_v31, %v1015_v48 }
 0x50d   : > { %10407 = vpow2.f32 %v1043_v58 }
 0x50e   : > { %v11093_v14 = vpop.eup %10395  ;;  %v1049_v59 = vmul.f32 1.442695, %v1028_v55  ;;  %v1051_v41 = vmul.f32 1.442695, %v1029_v56 }
 0x50f   : > { %v1064_v16 = vsel %vm982_vm6, %v11093_v14, 0.0  ;;  %v11097_v17 = vpop.eup %10397  ;;  %v1009_v50 = vpop.xlane.xlu0 %1008 }
 0x510   : > { %1065 = vadd.xlane.f32.xlu1 %v1064_v16  ;;  %v1058_v11 = vsel %vm982_vm6, %v11097_v17, 0.0  ;;  %v1027_v53 = vsub.f32 %v11076_v38, %v1009_v50  ;;  %v1018_v60 = vpop.xlane.xlu1 %1017 }
 0x511   : > { %v1030_v62 = vsub.f32 %v11080_v39, %v1018_v60 }
 0x512   : > { %v11099_v30 = vpop.eup %10399  ;;  %v1047_v57 = vmul.f32 1.442695, %v1027_v53 }
 0x513   : > { %v11103_v28 = vpop.eup %10401  ;;  %v1067_v32 = vsel %vm982_vm6, %v11099_v30, 0.0  ;;  %v1053_v0 = vmul.f32 1.442695, %v1030_v62 }
 0x514   : > { %1059 = vadd.xlane.f32.xlu1 %v1058_v11  ;;  %v11107_v33 = vpop.eup %10403  ;;  %1068 = vadd.xlane.f32.xlu0 %v1067_v32  ;;  %v1070_v34 = vsel %vm982_vm6, %v11103_v28, 0.0  ;;  %10409 = vpow2.f32 %v1047_v57 }
 0x515   : > { %v1061_v36 = vsel %vm982_vm6, %v11107_v33, 0.0  ;;  %10411 = vpow2.f32 %v1049_v59 }
 0x516   : > { %v11111_v35 = vpop.eup %10405  ;;  %10413 = vpow2.f32 %v1051_v41 }
 0x517   : > { %v11115_v37 = vpop.eup %10407  ;;  %v1076_v40 = vsel %vm982_vm6, %v11111_v35, 0.0  ;;  %10415 = vpow2.f32 %v1053_v0 }
 0x518   : > { %1071 = vadd.xlane.f32.xlu1 %v1070_v34  ;;  %1062 = vadd.xlane.f32.xlu0 %v1061_v36  ;;  %v1073_v43 = vsel %vm982_vm6, %v11115_v37, 0.0 }
 0x51c   : > { %1077 = vadd.xlane.f32.xlu1 %v1076_v40  ;;  %1074 = vadd.xlane.f32.xlu0 %v1073_v43 }
 0x51e   : > { %v11127_v1 = vpop.eup %10409 }
 0x51f   : > { %v11129_v2 = vpop.eup %10411  ;;  %v1079_v15 = vsel %vm982_vm6, %v11127_v1, 0.0 }
 0x520   : > { %v11133_v38 = vpop.eup %10413  ;;  %v1082_v31 = vsel %vm982_vm6, %v11129_v2, 0.0 }
 0x521   : > { %v1085_v39 = vsel %vm982_vm6, %v11133_v38, 0.0  ;;  %v11139_v46 = vpop.eup %10415 }
 0x522   : > { %v1088_v5 = vsel %vm982_vm6, %v11139_v46, 0.0 }
 0x52d   : > { %1127 = vperm.xlu1 %10386, %v8466_v47  }
 0x532   : > { %10382 = vperm.xlu0 %10380, %v10763_v49  }
 0x551   : > { %1080 = vadd.xlane.f32.xlu1 %v1079_v15  ;;  %1083 = vadd.xlane.f32.xlu0 %v1082_v31 }
 0x555   : > { %1086 = vadd.xlane.f32.xlu1 %v1085_v39 }
 0x559   : > { %1089 = vadd.xlane.f32.xlu1 %v1088_v5 }
 0x58c   : > { %1762 = vxpose.xlu1.b32.start [1/3] (short) (narrow) %v11146_v9, 32 }
 0x590   : > { %1763 = vxpose.xlu1.b32.cont [2/3] (short) (narrow) %v11152_v52, 32 }
 0x594   : > { %1764 = vxpose.xlu1.b32.end [3/3] (short) (narrow) %v11158_v12, 32 }
 0x595   : > { %v1057_v13 = vpop.xlane.xlu0 %1056 }
 0x596   : > { %10417 = vrcp.f32 %v1057_v13 }
 0x59d   : > { %v1066_v54 = vpop.xlane.xlu1 %1065 }
 0x5a0   : > { %v10418_v32 = vpop.eup %10417 }
 0x5a1   : > { %v1069_v61 = vpop.xlane.xlu0 %1068  ;;  %v1060_v63 = vpop.xlane.xlu1 %1059  ;;  %v1103_v43 = vmul.f32 %v10418_v32, %v11088_v4 }
 0x5a2   : > { %10419 = vrcp.f32 %v1060_v63 }
 0x5a3   : > { %10421 = vrcp.f32 %v1066_v54 }
 0x5a4   : > { %10423 = vrcp.f32 %v1069_v61 }
 0x5a5   : > { %v1063_v58 = vpop.xlane.xlu0 %1062  ;;  %v1072_v16 = vpop.xlane.xlu1 %1071 }
 0x5a6   : > { %10425 = vrcp.f32 %v1063_v58 }
 0x5a7   : > { %10427 = vrcp.f32 %v1072_v16 }
 0x5a9   : > { %v1075_v11 = vpop.xlane.xlu0 %1074  ;;  %v1078_v34 = vpop.xlane.xlu1 %1077 }
 0x5aa   : > { %10429 = vrcp.f32 %v1078_v34 }
 0x5ab   : > { %10431 = vrcp.f32 %v1075_v11 }
 0x5ac   : > { %v10420_v36 = vpop.eup %10419 }
 0x5ad   : > { %v10422_v40 = vpop.eup %10421  ;;  %v1104_v47 = vmul.f32 %v10420_v36, %v11097_v17  ;;  %v11182_v62 = vpop.permute.xlu1 %1127  ;;  %v281_v36 = vld [vmem:[%s12780_s1 + $0xf0] sm:$0xff] }
 0x5ae   : > { %v10424_v45 = vpop.eup %10423  ;;  %v1106_v17 = vmul.f32 %v10422_v40, %v11093_v14 }
 0x5af   : > { %v1107_v57 = vmul.f32 %v10424_v45, %v11099_v30 }
 0x5b0   : > { %v10426_v50 = vpop.eup %10425 }
 0x5b1   : > { %v10383_v44 = vpop.permute.xlu0 %10382  ;;  %v1105_v56 = vmul.f32 %v10426_v50, %v11107_v33  ;;  %v10428_v41 = vpop.eup %10427 }
 0x5b2   : > { %v11163_v48 = vunpack.i.h.bf16 %v10383_v44  ;;  %v11165_v49 = vunpack.i.l.bf16 %v10383_v44  ;;  %v1108_v15 = vmul.f32 %v10428_v41, %v11103_v28 }
 0x5b3   : > { %v1132_v33 = vmul.f32 %v11182_v62, %v1105_v56 }
 0x5b4   : > { %v1130_v51 = vmul.f32 %v11165_v49, %v1103_v43  ;;  %v1131_v53 = vmul.f32 %v11163_v48, %v1104_v47  ;;  %v1133_v59 = vmul.f32 %v11165_v49, %v1106_v17  ;;  %v1134_v60 = vmul.f32 %v11163_v48, %v1107_v57  ;;  %v10430_v14 = vpop.eup %10429  ;;  %v282_v43 = vld [vmem:[%s12780_s1 + $0xf8] sm:$0xff] }
 0x5b5   : > { %v10432_v0 = vpop.eup %10431  ;;  %v1110_v31 = vmul.f32 %v10430_v14, %v11111_v35  ;;  %v1135_v5 = vmul.f32 %v11182_v62, %v1108_v15  ;;  %v11285_v44 = vpack.c.bf16 %v282_v43, %v281_v36 }
 0x5b6   : > { %v10050_v4 = vpack.c.bf16 %v1131_v53, %v1130_v51  ;;  %v10057_v30 = vpack.c.bf16 %v1134_v60, %v1133_v59  ;;  %v1109_v39 = vmul.f32 %v10432_v0, %v11115_v37 }
 0x5b7   : > { %v1137_v28 = vmul.f32 %v11163_v48, %v1110_v31 }
 0x5b8   : > { %10052 = vmatpush3.bf16.xpose.msk.msra.mxu0 %vm11171_vm8, %v10050_v4  ;;  %10055 = vmatpush3.bf16.msra.mxu1 %v10050_v4 }
 0x5b9   : > { %9235 = vmatprep.subr.mxu1 %v10761_v6  ;;  %9226 = vmatprep.subr.mxu0 %v10761_v6 }
 0x5bc   : > { %9236 = vmatpush3.msra.mxu1 %v1132_v33 }
 0x5bd   : > { %9238 = vmatmul.mubr.msk.f32.vlgmr.msra.gmra.mrb[20].mxu1 %vm982_vm6, %v10964_v20  ;;  %10060 = vmatprep.subr.bf16.mxu1 %v10759_v3  ;;  %v1136_v20 = vmul.f32 %v11165_v49, %v1109_v39 }
 0x5be   : > { %10062 = vmatpush3.bf16.msra.mxu1 %v10057_v30  ;;  %9255 = vmatprep.mubr.msk.f32.mxu1 %vm10760_vm0, %v10761_v6 }
 0x5bf   : > { %9253 = vmatprep.subr.mxu1 %v10761_v6 }
 0x5c0   : > { %9227 = vmatpush3.xpose.msk.msra.mxu0 %vm982_vm6, %v1132_v33 }
 0x5c1   : > { %10056 = vmatprep.subr.bf16.mxu0 %v10759_v3 }
 0x5c2   : > { %9254 = vmatpush3.msra.mxu1 %v1135_v5 }
 0x5c3   : > { %9229 = vmatmul.mubr.msk.f32.vlgmr.msra.gmra.mrb[18].mxu0 %vm982_vm6, %v10973_v25  ;;  %9256 = vmatmul.mubr.msk.f32.vlgmr.msra.gmra.mrb[22].mxu1 %vm982_vm6, %v10961_v18  ;;  %v10064_v25 = vpack.c.bf16 %v1137_v28, %v1136_v20 }
 0x5c4   : > { %10059 = vmatpush3.bf16.xpose.msk.msra.mxu0 %vm11171_vm8, %v10057_v30  ;;  %10063 = vmatprep.subr.bf16.mxu1 %v10759_v3 }
 0x5c5   : > { %9244 = vmatprep.subr.mxu0 %v10761_v6  ;;  %9246 = vmatprep.mubr.msk.f32.mxu0 %vm10760_vm0, %v10761_v6 }
 0x5c6   : > { %9264 = vmatprep.mubr.msk.f32.mxu1 %vm10760_vm0, %v10761_v6 }
 0x5c9   : > { %10066 = vmatpush3.bf16.xpose.msk.msra.mxu1 %vm11171_vm8, %v10064_v25 }
 0x5ca   : > { %9262 = vmatprep.subr.mxu1 %v10761_v6 }
 0x5cc   : > { %9245 = vmatpush3.xpose.msk.msra.mxu0 %vm982_vm6, %v1135_v5 }
 0x5cd   : > { %10067 = vmatprep.subr.bf16.mxu0 %v10759_v3 }
 0x5cf   : > { %9247 = vmatmul.mubr.msk.f32.vlgmr.msra.gmra.mrb[20].mxu0 %vm982_vm6, %v10971_v23 }
 0x5d0   : > { %10069 = vmatpush3.bf16.msra.mxu0 %v10064_v25  ;;  %9273 = vmatprep.mubr.msk.f32.mxu0 %vm10760_vm0, %v10761_v6 }
 0x5d1   : > { %9271 = vmatprep.subr.mxu0 %v10761_v6 }
 0x5de   : > { %v1081_v18 = vpop.xlane.xlu1 %1080  ;;  %v1084_v35 = vpop.xlane.xlu0 %1083 }
 0x5df   : > { %10433 = vrcp.f32 %v1081_v18 }
 0x5e0   : > { %10435 = vrcp.f32 %v1084_v35 }
 0x5e2   : > { %v1087_v37 = vpop.xlane.xlu1 %1086 }
 0x5e3   : > { %10437 = vrcp.f32 %v1087_v37 }
 0x5e6   : > { %v1090_v54 = vpop.xlane.xlu1 %1089 }
 0x5e7   : > { %10439 = vrcp.f32 %v1090_v54 }
 0x5e9   : > { %v10434_v13 = vpop.eup %10433 }
 0x5ea   : > { %v10436_v61 = vpop.eup %10435  ;;  %v1111_v63 = vmul.f32 %v10434_v13, %v11127_v1 }
 0x5eb   : > { %v1112_v58 = vmul.f32 %v10436_v61, %v11129_v2 }
 0x5ec   : > { %v1138_v23 = vmul.f32 %v11182_v62, %v1111_v63 }
 0x5ed   : > { %v10438_v16 = vpop.eup %10437  ;;  %v1139_v32 = vmul.f32 %v11165_v49, %v1112_v58 }
 0x5ee   : > { %9263 = vmatpush3.xpose.msk.msra.mxu1 %vm982_vm6, %v1138_v23  ;;  %9272 = vmatpush3.msra.mxu0 %v1138_v23  ;;  %v1113_v11 = vmul.f32 %v10438_v16, %v11133_v38 }
 0x5ef   : > { %9274 = vmatmul.mubr.msk.f32.vlgmr.msra.gmra.mrb[22].mxu0 %vm982_vm6, %v10969_v22  ;;  %10074 = vmatprep.subr.bf16.mxu1 %v10759_v3 }
 0x5f0   : > { %10070 = vmatprep.subr.bf16.mxu0 %v10759_v3  ;;  %v1140_v1 = vmul.f32 %v11163_v48, %v1113_v11  ;;  %9282 = vmatprep.mubr.msk.f32.mxu0 %vm10760_vm0, %v10761_v6 }
 0x5f1   : > { %v10440_v2 = vpop.eup %10439  ;;  %9265 = vmatmul.mubr.msk.f32.vlgmr.msra.gmra.mrb[24].mxu1 %vm982_vm6, %v10983_v27 }
 0x5f2   : > { %v10071_v34 = vpack.c.bf16 %v1140_v1, %v1139_v32  ;;  %v1114_v38 = vmul.f32 %v10440_v2, %v11139_v46  ;;  %9291 = vmatprep.mubr.msk.f32.mxu1 %vm10760_vm0, %v10761_v6 }
 0x5f4   : > { %10076 = vmatpush3.bf16.msra.mxu1 %v10071_v34  ;;  %v1141_v22 = vmul.f32 %v11182_v62, %v1114_v38 }
 0x5f5   : > { %10073 = vmatpush3.bf16.xpose.msk.msra.mxu0 %vm11171_vm8, %v10071_v34  ;;  %9289 = vmatprep.subr.mxu1 %v10761_v6 }
 0x5f6   : > { %9280 = vmatprep.subr.mxu0 %v10761_v6 }
 0x5f8   : > { %9290 = vmatpush3.msra.mxu1 %v1141_v22 }
 0x5f9   : > { %9292 = vmatmul.mubr.msk.f32.vlgmr.msra.gmra.mrb[26].mxu1 %vm982_vm6, %v10967_v21  ;;  %10078 = vmatprep.subr.bf16.mxu1 %v10916_v8 }
 0x5fa   : > { %10080 = vmatpush3.bf16.msra.mxu1 %v10916_v8 }
 0x5fb   : > { %9298 = vmatprep.subr.mxu1 %v10921_v10 }
 0x5fd   : > { %9281 = vmatpush3.xpose.msk.msra.mxu0 %vm982_vm6, %v1141_v22 }
 0x5fe   : > { %9299 = vmatpush3.msra.mxu1 %v10921_v10  ;;  %v279_v10 = vld [vmem:[%s12780_s1 + $0xe0] sm:$0xff] }
 0x600   : > { %9283 = vmatmul.mubr.msk.f32.vlgmr.msra.gmra.mrb[24].mxu0 %vm982_vm6, %v10980_v26  ;;  %v280_v26 = vld [vmem:[%s12780_s1 + $0xe8] sm:$0xff] }
 0x601   : > { %v11280_v40 = vpack.c.bf16 %v280_v26, %v279_v10 }
 0x603   : > { %10082 = vmatprep.subr.bf16.mxu0 %v11280_v40 }
 0x604   : > { %10084 = vmatpush3.bf16.msra.mxu0 %v11280_v40 }
 0x605   : > { %10086 = vmatprep.subr.bf16.mxu0 %v11285_v44 }
 0x608   : > { %10088 = vmatpush3.bf16.msra.mxu0 %v11285_v44 }
 0x609   : > { %10097 = vmatprep.subr.bf16.mxu0 %v10759_v3 }
 0x60c   : > { %v11255_v27 = vpop.trf.xlu1 }
 0x60d   : > { %9300 = vmatprep.mubr.msk.f32.mxu1 %vm982_vm6, %v11255_v27 }
 0x610   : > { %v11259_v46 = vpop.trf.xlu1 }
 0x611   : > { %9301 = vmatmul.mubr.msk.f32.vlgmr.msra.gmra.mrb[28].mxu1 %vm982_vm6, %v11259_v46 }
 0x614   : > { %v11263_v8 = vpop.trf.xlu1 }
 0x615   : > { %9303 = vmatprep.mubr.msk.f32.mxu1 %vm982_vm6, %v11263_v8 }
 0x618   : > { %v11267_v21 = vpop.trf.xlu1 }
 0x619   : > { %9304 = vmatmul.mubr.msk.f32.gmra.mrb[30].mxu1 %vm982_vm6, %v11267_v21 }
 0x690   : > { %v11292_v45 = vpop.f32.mrb[20].mxu1 }
 0x691   : > { %v9239_v47 = vpop.f32.mrb[21].mxu1 }
 0x696   : > { %v11294_v50 = vpop.f32.mrb[18].mxu0  ;;  %v11296_v51 = vpop.f32.mrb[22].mxu1 }
 0x697   : > { %v9230_v53 = vpop.f32.mrb[19].mxu0  ;;  %v9257_v4 = vpop.f32.mrb[23].mxu1 }
 0x6a2   : > { %v11298_v56 = vpop.f32.mrb[20].mxu0 }
 0x6a3   : > { %v9248_v17 = vpop.f32.mrb[21].mxu0 }
 0x6c2   : > { %v11300_v57 = vpop.f32.mrb[22].mxu0 }
 0x6c3   : > { %v9275_v59 = vpop.f32.mrb[23].mxu0 }
 0x6c4   : > { %v11302_v60 = vpop.f32.mrb[24].mxu1  ;;  %v283_v59 = vld [vmem:[%s12780_s1 + $0x100] sm:$0xff] }
 0x6c5   : > { %v9266_v41 = vpop.f32.mrb[25].mxu1 }
 0x6c6   : > { %v284_v41 = vld [vmem:[%s12780_s1 + $0x108] sm:$0xff] }
 0x6cc   : > { %v11304_v33 = vpop.f32.mrb[26].mxu1 }
 0x6cd   : > { %v9293_v14 = vpop.f32.mrb[27].mxu1 }
 0x6ce   : > { %v11328_v14 = vpack.c.bf16 %v284_v41, %v283_v59 }
 0x6d0   : > { %10090 = vmatprep.subr.bf16.mxu1 %v11328_v14 }
 0x6d1   : > { %10092 = vmatpush3.bf16.msra.mxu1 %v11328_v14 }
 0x6d3   : > { %v11306_v0 = vpop.f32.mrb[24].mxu0 }
 0x6d4   : > { %v9284_v30 = vpop.f32.mrb[25].mxu0 }
 0x6d5   : > { %v285_v30 = vld [vmem:[%s12780_s1 + $0x110] sm:$0xff] }
 0x6e4   : > { %v9302_v15 = vpop.f32.mrb[28].mxu1 }
 0x6e5   : > { %v1872_v31 = vpop.f32.mrb[29].mxu1 }
 0x6e6   : > { %9314 = vmatprep.mubr.msk.f32.mxu0 %vm290_vm2, %v1872_v31 }
 0x6e7   : > { %9315 = vmatmul.mubr.msk.f32.vlgmr.msra.gmra.mrb[26].mxu0 %vm290_vm2, %v9302_v15  ;;  %v286_v15 = vld [vmem:[%s12780_s1 + $0x118] sm:$0xff] }
 0x6e8   : > { %v11338_v31 = vpack.c.bf16 %v286_v15, %v285_v30 }
 0x6ea   : > { %10094 = vmatprep.subr.bf16.mxu1 %v11338_v31 }
 0x6eb   : > { %10096 = vmatpush3.bf16.msra.mxu1 %v11338_v31 }
 0x6ec   : > { %v9305_v39 = vpop.f32.mrb[30].mxu1  ;;  %10103 = vmatprep.subr.bf16.mxu1 %v10759_v3 }
 0x6ed   : > { %v1882_v5 = vpop.f32.mrb[31].mxu1 }
 0x6ee   : > { %9317 = vmatprep.mubr.msk.f32.mxu0 %vm290_vm2, %v1882_v5 }
 0x6ef   : > { %9318 = vmatmul.mubr.msk.f32.gmra.mrb[28].mxu0 %vm290_vm2, %v9305_v39 }
 0x6f0   : > { %9342 = vmatprep.mubr.msk.f32.mxu0 %vm10760_vm0, %v10761_v6 }
 0x7ba   : > { %v9316_v20 = vpop.f32.mrb[26].mxu0 }
 0x7bb   : > { %v1969_v28 = vpop.f32.mrb[27].mxu0  ;;  %v1991_v25 = vsel %vm290_vm2, %v9316_v20, -inf }
 0x7bc   : > { %1992 = vmax.xlane.f32.xlu0 %v1991_v25  ;;  %v1988_v18 = vsel %vm290_vm2, %v1969_v28, -inf }
 0x7c0   : > { %1989 = vmax.xlane.f32.xlu0 %v1988_v18 }
 0x7c2   : > { %v9319_v35 = vpop.f32.mrb[28].mxu0 }
 0x7c3   : > { %v1979_v37 = vpop.f32.mrb[29].mxu0  ;;  %v1997_v13 = vsel %vm290_vm2, %v9319_v35, -inf }
 0x7c4   : > { %v1994_v54 = vsel %vm290_vm2, %v1979_v37, -inf }
 0x7c5   : > { %1995 = vmax.xlane.f32.xlu0 %v1994_v54  ;;  %v274_v54 = vld [vmem:[%s12780_s1 + $0xb8] sm:$0xff] }
 0x7c9   : > { %1998 = vmax.xlane.f32.xlu0 %v1997_v13 }
 0x849   : > { %v1993_v61 = vpop.xlane.xlu0 %1992 }
 0x84a   : > { %v2001_v63 = vsub.f32 %v9316_v20, %v1993_v61  ;;  %v275_v61 = vld [vmem:[%s12780_s1 + $0xc0] sm:$0xff] }
 0x84c   : > { %v2006_v23 = vmul.f32 1.442695, %v2001_v63  ;;  %v276_v63 = vld [vmem:[%s12780_s1 + $0xc8] sm:$0xff] }
 0x84d   : > { %v1990_v58 = vpop.xlane.xlu0 %1989 }
 0x84e   : > { %10441 = vpow2.f32 %v2006_v23  ;;  %v2000_v16 = vsub.f32 %v1969_v28, %v1990_v58  ;;  %v11382_v23 = vpack.c.bf16 %v276_v63, %v275_v61  ;;  %v277_v58 = vld [vmem:[%s12780_s1 + $0xd0] sm:$0xff] }
 0x850   : > { %v2004_v11 = vmul.f32 1.442695, %v2000_v16  ;;  %v278_v16 = vld [vmem:[%s12780_s1 + $0xd8] sm:$0xff] }
 0x852   : > { %10443 = vpow2.f32 %v2004_v11  ;;  %v1996_v32 = vpop.xlane.xlu0 %1995  ;;  %v11393_v11 = vpack.c.bf16 %v278_v16, %v277_v58 }
 0x853   : > { %v2002_v1 = vsub.f32 %v1979_v37, %v1996_v32  ;;  %v273_v37 = vld [vmem:[%s12780_s1 + $0xb0] sm:$0xff] }
 0x854   : > { %v11373_v13 = vpack.c.bf16 %v274_v54, %v273_v37 }
 0x855   : > { %v2008_v2 = vmul.f32 1.442695, %v2002_v1 }
 0x856   : > { %v1999_v34 = vpop.xlane.xlu0 %1998 }
 0x857   : > { %10445 = vpow2.f32 %v2008_v2  ;;  %v2003_v38 = vsub.f32 %v9319_v35, %v1999_v34 }
 0x858   : > { %v10442_v22 = vpop.eup %10441 }
 0x859   : > { %v2010_v10 = vmul.f32 1.442695, %v2003_v38  ;;  %v2015_v26 = vsel %vm290_vm2, %v10442_v22, 0.0 }
 0x85a   : > { %2016 = vadd.xlane.f32.xlu0 %v2015_v26 }
 0x85b   : > { %10447 = vpow2.f32 %v2010_v10 }
 0x85c   : > { %v10444_v36 = vpop.eup %10443 }
 0x85d   : > { %v2012_v43 = vsel %vm290_vm2, %v10444_v36, 0.0 }
 0x85e   : > { %2013 = vadd.xlane.f32.xlu0 %v2012_v43  ;;  %v10669_v43 = vld [vmem:[%s12780_s1 + $0x60] sm:$0xff] }
 0x861   : > { %v10446_v47 = vpop.eup %10445 }
 0x862   : > { %v2018_v53 = vsel %vm290_vm2, %v10446_v47, 0.0 }
 0x863   : > { %2019 = vadd.xlane.f32.xlu0 %v2018_v53 }
 0x865   : > { %v10448_v4 = vpop.eup %10447 }
 0x866   : > { %v2021_v17 = vsel %vm290_vm2, %v10448_v4, 0.0 }
 0x867   : > { %2022 = vadd.xlane.f32.xlu0 %v2021_v17 }
 0x894   : > { %2218 = vxpose.xlu0.b32.start [1/8] (short) (narrow) %v11294_v50, 24 }
 0x898   : > { %2219 = vxpose.xlu0.b32.cont [2/8] (short) (narrow) %v11298_v56, 24  ;;  %v271_v56 = vld [vmem:[%s12780_s1 + $0xa0] sm:$0xff] }
 0x89c   : > { %2220 = vxpose.xlu0.b32.cont [3/8] (short) (narrow) %v11302_v60, 24 }
 0x8a0   : > { %2221 = vxpose.xlu0.b32.cont [4/8] (short) (narrow) %v11306_v0, 24 }
 0x8a4   : > { %2222 = vxpose.xlu0.b32.cont [5/8] (short) (narrow) %v11292_v45, 24  ;;  %v272_v45 = vld [vmem:[%s12780_s1 + $0xa8] sm:$0xff] }
 0x8a8   : > { %2223 = vxpose.xlu0.b32.cont [6/8] (short) (narrow) %v11296_v51, 24 }
 0x8ac   : > { %2224 = vxpose.xlu0.b32.cont [7/8] (short) (narrow) %v11300_v57, 24 }
 0x8b0   : > { %2225 = vxpose.xlu0.b32.end [8/8] (short) (narrow) %v11304_v33, 24  ;;  %v11357_v33 = vpack.c.bf16 %v272_v45, %v271_v56 }
 0x8e7   : > { %v2017_v39 = vpop.xlane.xlu0 %2016 }
 0x8e8   : > { %10449 = vrcp.f32 %v2017_v39 }
 0x8eb   : > { %v2014_v5 = vpop.xlane.xlu0 %2013 }
 0x8ec   : > { %10451 = vrcp.f32 %v2014_v5 }
 0x8f0   : > { %v2020_v20 = vpop.xlane.xlu0 %2019 }
 0x8f1   : > { %10453 = vrcp.f32 %v2020_v20 }
 0x8f2   : > { %v10450_v51 = vpop.eup %10449 }
 0x8f3   : > { %v2029_v0 = vmul.f32 %v10450_v51, %v10442_v22 }
 0x8f4   : > { %v2023_v50 = vpop.xlane.xlu0 %2022 }
 0x8f5   : > { %10455 = vrcp.f32 %v2023_v50 }
 0x8f6   : > { %v10452_v57 = vpop.eup %10451 }
 0x8f7   : > { %v2028_v60 = vmul.f32 %v10452_v57, %v10444_v36 }
 0x8f9   : > { %9328 = vmatprep.mubr.msk.f32.mxu1 %vm290_vm2, %v2028_v60 }
 0x8fa   : > { %9329 = vmatmul.mubr.msk.f32.vlgmr.msra.gmra.mrb[32].mxu1 %vm290_vm2, %v2029_v0 }
 0x8fb   : > { %v10454_v28 = vpop.eup %10453  ;;  %10105 = vmatpush3.bf16.msra.mxu1 %v11357_v33 }
 0x8fc   : > { %v2030_v25 = vmul.f32 %v10454_v28, %v10446_v47  ;;  %10106 = vmatprep.subr.bf16.mxu1 %v10759_v3 }
 0x8fe   : > { %9331 = vmatprep.mubr.msk.f32.mxu1 %vm290_vm2, %v2030_v25 }
 0x8ff   : > { %v10456_v18 = vpop.eup %10455  ;;  %10108 = vmatpush3.bf16.msra.mxu1 %v11373_v13 }
 0x900   : > { %v2031_v35 = vmul.f32 %v10456_v18, %v10448_v4  ;;  %10109 = vmatprep.subr.bf16.mxu1 %v10759_v3 }
 0x902   : > { %9332 = vmatmul.mubr.msk.f32.gmra.mrb[34].mxu1 %vm290_vm2, %v2031_v35 }
 0x903   : > { %9367 = vmatprep.mubr.msk.f32.mxu1 %vm10760_vm0, %v10761_v6  ;;  %10111 = vmatpush3.bf16.msra.mxu1 %v11382_v23 }
 0x904   : > { %10112 = vmatprep.subr.bf16.mxu1 %v10759_v3 }
 0x907   : > { %10114 = vmatpush3.bf16.msra.mxu1 %v11393_v11 }
 0x908   : > { %9394 = vmatprep.subr.mxu1 %v10761_v6 }
 0x914   : > { %v2234_v32 = vpop.trf.xlu0 }
 0x915   : > { %9368 = vmatmul.mubr.msk.f32.vlgmr.msra.gmra.mrb[36].mxu1 %vm155_vm1, %v2234_v32 }
 0x916   : > { %9370 = vmatprep.mubr.msk.f32.mxu1 %vm10760_vm0, %v10761_v6 }
 0x918   : > { %v2235_v1 = vpop.trf.xlu0 }
 0x919   : > { %9371 = vmatmul.mubr.msk.f32.gmra.mrb[38].mxu1 %vm155_vm1, %v2235_v1 }
 0x91a   : > { %9373 = vmatprep.mubr.msk.f32.mxu1 %vm10760_vm0, %v10761_v6 }
 0x91c   : > { %v2236_v2 = vpop.trf.xlu0 }
 0x91d   : > { %9374 = vmatmul.mubr.msk.f32.gmra.mrb[40].mxu1 %vm155_vm1, %v2236_v2 }
 0x91e   : > { %9396 = vmatprep.mubr.msk.f32.mxu1 %vm10760_vm0, %v10761_v6 }
 0x9cd   : > { %v9330_v34 = vpop.f32.mrb[32].mxu1 }
 0x9ce   : > { %v2110_v38 = vpop.f32.mrb[33].mxu1 }
 0x9cf   : > { %v10098_v22 = vpack.c.bf16 %v9330_v34, %v2110_v38 }
 0x9d1   : > { %10099 = vmatpush3.bf16.msra.mxu0 %v10098_v22 }
 0x9d2   : > { %10100 = vmatprep.subr.bf16.mxu0 %v10759_v3 }
 0x9d5   : > { %v9333_v10 = vpop.f32.mrb[34].mxu1 }
 0x9d6   : > { %v2120_v26 = vpop.f32.mrb[35].mxu1 }
 0x9d7   : > { %v10101_v36 = vpack.c.bf16 %v9333_v10, %v2120_v26 }
 0x9d9   : > { %10102 = vmatpush3.bf16.msra.mxu0 %v10101_v36 }
 0x9dc   : > { %9343 = vmatmul.mubr.msk.f32.vlgmr.msra.gmra.mrb[30].mxu0 %vm290_vm2, %v11146_v9 }
 0x9dd   : > { %9345 = vmatprep.mubr.msk.f32.mxu0 %vm10760_vm0, %v10761_v6 }
 0x9e0   : > { %9346 = vmatmul.mubr.msk.f32.gmra.mrb[32].mxu0 %vm290_vm2, %v11152_v52 }
 0x9e1   : > { %9348 = vmatprep.mubr.msk.f32.mxu0 %vm10760_vm0, %v10761_v6 }
 0x9e4   : > { %9349 = vmatmul.mubr.msk.f32.gmra.mrb[34].mxu0 %vm290_vm2, %v11158_v12 }
 0x9e5   : > { %9382 = vmatprep.mubr.msk.f32.mxu0 %vm290_vm2, %v10669_v43 }
 0x9e8   : > { %v2325_v47 = vpop.f32.mrb[36].mxu1 }
 0x9e9   : > { %v9369_v9 = vpop.f32.mrb[37].mxu1 }
 0x9ec   : > { %v2330_v53 = vpop.f32.mrb[38].mxu1 }
 0x9ed   : > { %v9372_v4 = vpop.f32.mrb[39].mxu1 }
 0x9f0   : > { %v2335_v17 = vpop.f32.mrb[40].mxu1 }
 0x9f1   : > { %v9375_v59 = vpop.f32.mrb[41].mxu1 }
 0xaaf   : > { %v2204_v41 = vpop.f32.mrb[30].mxu0 }
 0xab0   : > { %v2326_v52 = vadd.f32 %v2325_v47, %v2204_v41  ;;  %v9344_v30 = vpop.f32.mrb[31].mxu0 }
 0xab2   : > { %v11422_v15 = vadd.f32 %v2326_v52, %v10876_v19 }
 0xab3   : > { %v2209_v39 = vpop.f32.mrb[32].mxu0 }
 0xab4   : > { %v2331_v12 = vadd.f32 %v2330_v53, %v2209_v39  ;;  %v9347_v5 = vpop.f32.mrb[33].mxu0  ;;  %v2342_v20 = vsel %vm290_vm2, %v11422_v15, 0.0  ;;  %v10670_v53 = vld [vmem:[%s12780_s1 + $0x58] ss:$0 sm:$0xff]  ;;  %v10671_v39 = vld [vmem:[%s12780_s1 + $0x59] ss:$0 sm:$0xff] }
 0xab5   : > { %2343 = vadd.xlane.f32.xlu1 %v2342_v20 }
 0xab6   : > { %v11427_v50 = vadd.f32 %v2331_v12, %v10883_v24 }
 0xab7   : > { %v2214_v56 = vpop.f32.mrb[34].mxu0 }
 0xab8   : > { %v2336_v45 = vadd.f32 %v2335_v17, %v2214_v56  ;;  %v2345_v51 = vsel %vm290_vm2, %v11427_v50, 0.0  ;;  %v9350_v57 = vpop.f32.mrb[35].mxu0 }
 0xab9   : > { %2346 = vadd.xlane.f32.xlu1 %v2345_v51  ;;  %v10672_v57 = vld [vmem:[%s12780_s1 + $0x68] sm:$0xff] }
 0xaba   : > { %v11432_v19 = vadd.f32 %v2336_v45, %v10890_v29 }
 0xabc   : > { %v2348_v60 = vsel %vm290_vm2, %v11432_v19, 0.0 }
 0xabd   : > { %2349 = vadd.xlane.f32.xlu1 %v2348_v60  ;;  %v10673_v60 = vld [vmem:[%s12780_s1 + $0x70] sm:$0xff] }
 0xb42   : > { %v2344_v0 = vpop.xlane.xlu1 %2343 }
 0xb43   : > { %v2351_v28 = vmul.f32 0.03125, %v2344_v0  ;;  %v10674_v0 = vld [vmem:[%s12780_s1 + $0x78] sm:$0xff] }
 0xb45   : > { %v2354_v25 = vsub.f32 %v11422_v15, %v2351_v28  ;;  %v10675_v28 = vld [vmem:[%s12780_s1 + $0x80] sm:$0xff] }
 0xb46   : > { %v2347_v24 = vpop.xlane.xlu1 %2346 }
 0xb47   : > { %v2352_v18 = vmul.f32 0.03125, %v2347_v24  ;;  %v2357_v35 = vmul.f32 %v2354_v25, %v2354_v25  ;;  %v2372_v4 = vmul.f32 %v10670_v53, %v2354_v25  ;;  %v10676_v25 = vld [vmem:[%s12780_s1 + $0x88] sm:$0xff]  ;;  %v10677_v24 = vld [vmem:[%s12780_s1 + $0x90] sm:$0xff] }
 0xb49   : > { %v2355_v37 = vsub.f32 %v11427_v50, %v2352_v18  ;;  %v2360_v54 = vsel %vm290_vm2, %v2357_v35, 0.0  ;;  %v10678_v18 = vld [vmem:[%s12780_s1 + $0x98] sm:$0xff] }
 0xb4a   : > { %2361 = vadd.xlane.f32.xlu1 %v2360_v54  ;;  %v2350_v61 = vpop.xlane.xlu1 %2349 }
 0xb4b   : > { %v2353_v63 = vmul.f32 0.03125, %v2350_v61  ;;  %v2358_v29 = vmul.f32 %v2355_v37, %v2355_v37  ;;  %v2373_v17 = vmul.f32 %v10670_v53, %v2355_v37 }
 0xb4d   : > { %v2356_v58 = vsub.f32 %v11432_v19, %v2353_v63  ;;  %v2363_v16 = vsel %vm290_vm2, %v2358_v29, 0.0 }
 0xb4e   : > { %2364 = vadd.xlane.f32.xlu1 %v2363_v16 }
 0xb4f   : > { %v2359_v32 = vmul.f32 %v2356_v58, %v2356_v58  ;;  %v2374_v30 = vmul.f32 %v10670_v53, %v2356_v58 }
 0xb51   : > { %v2366_v1 = vsel %vm290_vm2, %v2359_v32, 0.0 }
 0xb52   : > { %2367 = vadd.xlane.f32.xlu1 %v2366_v1 }
 0xbd7   : > { %v2362_v2 = vpop.xlane.xlu1 %2361 }
 0xbd8   : > { %v2369_v34 = vmul.f32 0.03125, %v2362_v2 }
 0xbda   : > { %v2375_v38 = vadd.f32 1e-05, %v2369_v34 }
 0xbdb   : > { %v2365_v22 = vpop.xlane.xlu1 %2364 }
 0xbdc   : > { %10457 = vrsqrt.f32 %v2375_v38  ;;  %v2370_v10 = vmul.f32 0.03125, %v2365_v22 }
 0xbde   : > { %v2376_v26 = vadd.f32 1e-05, %v2370_v10 }
 0xbdf   : > { %v2368_v36 = vpop.xlane.xlu1 %2367 }
 0xbe0   : > { %10459 = vrsqrt.f32 %v2376_v26  ;;  %v2371_v43 = vmul.f32 0.03125, %v2368_v36 }
 0xbe2   : > { %v2377_v47 = vadd.f32 1e-05, %v2371_v43 }
 0xbe4   : > { %10461 = vrsqrt.f32 %v2377_v47 }
 0xbe6   : > { %v10458_v9 = vpop.eup %10457 }
 0xbe7   : > { %v2381_v59 = vmul.f32 %v10458_v9, %v2372_v4 }
 0xbe9   : > { %v2384_v12 = vadd.f32 %v10671_v39, %v2381_v59 }
 0xbea   : > { %v10460_v41 = vpop.eup %10459 }
 0xbeb   : > { %v2382_v52 = vmul.f32 %v10460_v41, %v2373_v17 }
 0xbed   : > { %v2385_v5 = vadd.f32 %v10671_v39, %v2382_v52 }
 0xbee   : > { %v10462_v20 = vpop.eup %10461 }
 0xbef   : > { %v11448_v56 = vpack.c.bf16 %v2385_v5, %v2384_v12  ;;  %v2383_v45 = vmul.f32 %v10462_v20, %v2374_v30 }
 0xbf1   : > { %10117 = vmatprep.subr.msk.bf16.mxu0 %vm10912_vm3, %v11448_v56  ;;  %v11453_v51 = vadd.f32 %v10671_v39, %v2383_v45 }
 0xbf2   : > { %10120 = vmatpush3.bf16.xpose.msk.msra.mxu0 %vm10912_vm3, %v11448_v56 }
 0xbf3   : > { %9380 = vmatprep.subr.msk.mxu0 %vm290_vm2, %v11453_v51 }
 0xbfa   : > { %9381 = vmatpush3.xpose.msk.msra.mxu0 %vm290_vm2, %v11453_v51 }
 0xbfb   : > { %9405 = vmatprep.subr.mxu0 %v10761_v6 }
 0xbfd   : > { %9383 = vmatmul.mubr.msk.f32.vlgmr.msra.gmra.mrb[36].mxu0 %vm290_vm2, %v10672_v57 }
 0xbfe   : > { %9385 = vmatprep.mubr.msk.f32.mxu0 %vm290_vm2, %v10673_v60 }
 0xc01   : > { %9386 = vmatmul.mubr.msk.f32.gmra.mrb[38].mxu0 %vm290_vm2, %v10674_v0 }
 0xc02   : > { %9388 = vmatprep.mubr.msk.f32.mxu0 %vm290_vm2, %v10675_v28 }
 0xc05   : > { %9389 = vmatmul.mubr.msk.f32.gmra.mrb[40].mxu0 %vm290_vm2, %v10676_v25 }
 0xc06   : > { %9391 = vmatprep.mubr.msk.f32.mxu0 %vm290_vm2, %v10677_v24 }
 0xc09   : > { %9392 = vmatmul.mubr.msk.f32.gmra.mrb[42].mxu0 %vm290_vm2, %v10678_v18 }
 0xc0a   : > { %9407 = vmatprep.mubr.msk.f32.mxu0 %vm10760_vm0, %v10761_v6 }
 0xcd0   : > { %v11493_v35 = vpop.f32.mrb[36].mxu0 }
 0xcd1   : > { %2622 = vxpose.xlu1.b32.start.end [1/1] (short) (narrow) %v11493_v35, 24  ;;  %v11496_v37 = vpop.f32.mrb[37].mxu0 }
 0xcd2   : > { %2501 = vxpose.xlu0.b32.start.end [1/1] (short) (narrow) %v11496_v37, 24 }
 0xcd4   : > { %v11499_v54 = vpop.f32.mrb[38].mxu0 }
 0xcd5   : > { %v11501_v61 = vpop.f32.mrb[39].mxu0 }
 0xcd8   : > { %v11503_v63 = vpop.f32.mrb[40].mxu0 }
 0xcd9   : > { %v11505_v29 = vpop.f32.mrb[41].mxu0  ;;  %9406 = vmatpush3.msra.mxu0 %v11503_v63 }
 0xcda   : > { %9395 = vmatpush3.msra.mxu1 %v11505_v29  ;;  %9427 = vmatprep.subr.mxu0 %v10761_v6 }
 0xcdb   : > { %2743 = vxpose.xlu0.b32.start.end [1/1] (short) (narrow) %v11501_v61, 24  ;;  %9416 = vmatprep.subr.mxu1 %v10761_v6 }
 0xcdc   : > { %v11512_v58 = vpop.f32.mrb[42].mxu0 }
 0xcdd   : > { %v11514_v16 = vpop.f32.mrb[43].mxu0 }
 0xce4   : > { %2864 = vxpose.xlu0.b32.start.end [1/1] (short) (narrow) %v11499_v54, 24 }
 0xd51   : > { %v2638_v32 = vpop.trf.xlu1 }
 0xd52   : > { %v2517_v1 = vpop.trf.xlu0  ;;  %9408 = vmatmul.mubr.msk.f32.vlgmr.msra.gmra.mrb[44].mxu0 %vm515_vm4, %v2638_v32 }
 0xd53   : > { %9397 = vmatmul.mubr.msk.f32.vlgmr.msra.gmra.mrb[42].mxu1 %vm515_vm4, %v2517_v1  ;;  %9410 = vmatprep.mubr.msk.f32.mxu0 %vm10760_vm0, %v10761_v6 }
 0xd54   : > { %9399 = vmatprep.mubr.msk.f32.mxu1 %vm10760_vm0, %v10761_v6  ;;  %9417 = vmatpush3.msra.mxu1 %v11514_v16 }
 0xd55   : > { %v2639_v2 = vpop.trf.xlu1  ;;  %9428 = vmatpush3.msra.mxu0 %v11512_v58  ;;  %10121 = vmatprep.subr.bf16.mxu1 %v10759_v3 }
 0xd56   : > { %v2518_v34 = vpop.trf.xlu0  ;;  %9411 = vmatmul.mubr.msk.f32.gmra.mrb[46].mxu0 %vm515_vm4, %v2639_v2  ;;  %10128 = vmatprep.subr.bf16.mxu0 %v10759_v3 }
 0xd57   : > { %9400 = vmatmul.mubr.msk.f32.gmra.mrb[44].mxu1 %vm515_vm4, %v2518_v34  ;;  %9413 = vmatprep.mubr.msk.f32.mxu0 %vm10760_vm0, %v10761_v6 }
 0xd58   : > { %9402 = vmatprep.mubr.msk.f32.mxu1 %vm10760_vm0, %v10761_v6 }
 0xd59   : > { %v2640_v38 = vpop.trf.xlu1 }
 0xd5a   : > { %v2519_v22 = vpop.trf.xlu0  ;;  %9414 = vmatmul.mubr.msk.f32.gmra.mrb[48].mxu0 %vm515_vm4, %v2640_v38 }
 0xd5b   : > { %9403 = vmatmul.mubr.msk.f32.gmra.mrb[46].mxu1 %vm515_vm4, %v2519_v22  ;;  %9429 = vmatprep.mubr.msk.f32.mxu0 %vm10760_vm0, %v10761_v6 }
 0xd5c   : > { %9418 = vmatprep.mubr.msk.f32.mxu1 %vm10760_vm0, %v10761_v6 }
 0xd5e   : > { %v2759_v10 = vpop.trf.xlu0 }
 0xd5f   : > { %9419 = vmatmul.mubr.msk.f32.vlgmr.msra.gmra.mrb[48].mxu1 %vm515_vm4, %v2759_v10 }
 0xd60   : > { %9421 = vmatprep.mubr.msk.f32.mxu1 %vm10760_vm0, %v10761_v6 }
 0xd62   : > { %v2760_v26 = vpop.trf.xlu0 }
 0xd63   : > { %9422 = vmatmul.mubr.msk.f32.gmra.mrb[50].mxu1 %vm515_vm4, %v2760_v26 }
 0xd64   : > { %9424 = vmatprep.mubr.msk.f32.mxu1 %vm10760_vm0, %v10761_v6 }
 0xd66   : > { %v2761_v36 = vpop.trf.xlu0 }
 0xd67   : > { %9425 = vmatmul.mubr.msk.f32.gmra.mrb[52].mxu1 %vm515_vm4, %v2761_v36 }
 0xd68   : > { %9444 = vmatprep.mubr.msk.f32.mxu1 %vm10760_vm0, %v10761_v6 }
 0xd6a   : > { %v2880_v43 = vpop.trf.xlu0 }
 0xd6b   : > { %9430 = vmatmul.mubr.msk.f32.vlgmr.msra.gmra.mrb[50].mxu0 %vm515_vm4, %v2880_v43 }
 0xd6c   : > { %9432 = vmatprep.mubr.msk.f32.mxu0 %vm10760_vm0, %v10761_v6 }
 0xd6e   : > { %v2881_v47 = vpop.trf.xlu0 }
 0xd6f   : > { %9433 = vmatmul.mubr.msk.f32.gmra.mrb[52].mxu0 %vm515_vm4, %v2881_v47 }
 0xd70   : > { %9435 = vmatprep.mubr.msk.f32.mxu0 %vm10760_vm0, %v10761_v6 }
 0xd72   : > { %v2882_v9 = vpop.trf.xlu0 }
 0xd73   : > { %9436 = vmatmul.mubr.msk.f32.gmra.mrb[54].mxu0 %vm515_vm4, %v2882_v9 }
 0xd74   : > { %9462 = vmatprep.mubr.msk.f32.mxu0 %vm10760_vm0, %v10761_v6 }
 0xe25   : > { %v2729_v53 = vpop.f32.mrb[44].mxu0 }
 0xe26   : > { %v2988_v4 = vsel %vm247_vm5, %v2729_v53, -1e+30  ;;  %v11559_v17 = vpop.f32.mrb[42].mxu1  ;;  %v9409_v59 = vpop.f32.mrb[45].mxu0 }
 0xe27   : > { %v9398_v41 = vpop.f32.mrb[43].mxu1  ;;  %v3006_v52 = vsel %vm982_vm6, %v2988_v4, -inf }
 0xe28   : > { %3007 = vmax.xlane.f32.xlu0 %v3006_v52 }
 0xe29   : > { %v2734_v30 = vpop.f32.mrb[46].mxu0 }
 0xe2a   : > { %v2989_v39 = vsel %vm247_vm5, %v2734_v30, -1e+30  ;;  %v11564_v12 = vpop.f32.mrb[44].mxu1  ;;  %v9412_v5 = vpop.f32.mrb[47].mxu0 }
 0xe2b   : > { %v9401_v20 = vpop.f32.mrb[45].mxu1  ;;  %v3009_v45 = vsel %vm982_vm6, %v2989_v39, -inf }
 0xe2c   : > { %3010 = vmax.xlane.f32.xlu1 %v3009_v45 }
 0xe2d   : > { %v2739_v57 = vpop.f32.mrb[48].mxu0 }
 0xe2e   : > { %v2990_v60 = vsel %vm247_vm5, %v2739_v57, -1e+30  ;;  %v11569_v0 = vpop.f32.mrb[46].mxu1  ;;  %v9415_v28 = vpop.f32.mrb[49].mxu0 }
 0xe2f   : > { %v9404_v25 = vpop.f32.mrb[47].mxu1  ;;  %v3012_v24 = vsel %vm982_vm6, %v2990_v60, -inf }
 0xe30   : > { %3013 = vmax.xlane.f32.xlu0 %v3012_v24 }
 0xe32   : > { %v2850_v18 = vpop.f32.mrb[48].mxu1 }
 0xe33   : > { %v2991_v32 = vsel %vm247_vm5, %v2850_v18, -1e+30  ;;  %v9420_v1 = vpop.f32.mrb[49].mxu1 }
 0xe34   : > { %v3015_v2 = vsel %vm982_vm6, %v2991_v32, -inf }
 0xe35   : > { %3016 = vmax.xlane.f32.xlu0 %v3015_v2 }
 0xe36   : > { %v2855_v34 = vpop.f32.mrb[50].mxu1 }
 0xe37   : > { %v2992_v38 = vsel %vm247_vm5, %v2855_v34, -1e+30  ;;  %v9423_v22 = vpop.f32.mrb[51].mxu1 }
 0xe38   : > { %v3018_v10 = vsel %vm982_vm6, %v2992_v38, -inf }
 0xe39   : > { %3019 = vmax.xlane.f32.xlu0 %v3018_v10 }
 0xe3a   : > { %v2860_v26 = vpop.f32.mrb[52].mxu1 }
 0xe3b   : > { %v9426_v36 = vpop.f32.mrb[53].mxu1  ;;  %v2993_v59 = vsel %vm247_vm5, %v2860_v26, -1e+30 }
 0xe3c   : > { %v3021_v5 = vsel %vm982_vm6, %v2993_v59, -inf }
 0xe3e   : > { %v2971_v43 = vpop.f32.mrb[50].mxu0 }
 0xe3f   : > { %v2994_v47 = vsel %vm247_vm5, %v2971_v43, -1e+30  ;;  %v9431_v9 = vpop.f32.mrb[51].mxu0 }
 0xe40   : > { %v3024_v53 = vsel %vm982_vm6, %v2994_v47, -inf }
 0xe41   : > { %3025 = vmax.xlane.f32.xlu0 %v3024_v53 }
 0xe42   : > { %v2976_v41 = vpop.f32.mrb[52].mxu0 }
 0xe43   : > { %v2995_v52 = vsel %vm247_vm5, %v2976_v41, -1e+30  ;;  %v9434_v30 = vpop.f32.mrb[53].mxu0 }
 0xe44   : > { %v3027_v20 = vsel %vm982_vm6, %v2995_v52, -inf }
 0xe45   : > { %3022 = vmax.xlane.f32.xlu0 %v3021_v5 }
 0xe46   : > { %v2981_v45 = vpop.f32.mrb[54].mxu0 }
 0xe47   : > { %v2996_v57 = vsel %vm247_vm5, %v2981_v45, -1e+30  ;;  %v9437_v28 = vpop.f32.mrb[55].mxu0 }
 0xe48   : > { %v3030_v25 = vsel %vm982_vm6, %v2996_v57, -inf }
 0xe49   : > { %3028 = vmax.xlane.f32.xlu0 %v3027_v20 }
 0xe4d   : > { %3031 = vmax.xlane.f32.xlu0 %v3030_v25 }
 0xeb5   : > { %v3008_v24 = vpop.xlane.xlu0 %3007 }
 0xeb6   : > { %v3036_v18 = vsub.f32 %v2988_v4, %v3008_v24 }
 0xeb8   : > { %v3051_v1 = vmul.f32 1.442695, %v3036_v18 }
 0xeb9   : > { %v3011_v2 = vpop.xlane.xlu1 %3010 }
 0xeba   : > { %10463 = vpow2.f32 %v3051_v1  ;;  %v3037_v34 = vsub.f32 %v2989_v39, %v3011_v2 }
 0xebc   : > { %v3053_v22 = vmul.f32 1.442695, %v3037_v34 }
 0xebd   : > { %v3014_v10 = vpop.xlane.xlu0 %3013 }
 0xebe   : > { %10465 = vpow2.f32 %v3053_v22  ;;  %v3038_v26 = vsub.f32 %v2990_v60, %v3014_v10 }
 0xec0   : > { %v3055_v36 = vmul.f32 1.442695, %v3038_v26 }
 0xec2   : > { %10467 = vpow2.f32 %v3055_v36  ;;  %v3017_v43 = vpop.xlane.xlu0 %3016 }
 0xec3   : > { %v3039_v9 = vsub.f32 %v2991_v32, %v3017_v43 }
 0xec4   : > { %v11590_v53 = vpop.eup %10463 }
 0xec5   : > { %v3057_v41 = vmul.f32 1.442695, %v3039_v9  ;;  %v3078_v30 = vsel %vm982_vm6, %v11590_v53, 0.0 }
 0xec6   : > { %3079 = vadd.xlane.f32.xlu1 %v3078_v30  ;;  %v3020_v4 = vpop.xlane.xlu0 %3019 }
 0xec7   : > { %10469 = vpow2.f32 %v3057_v41  ;;  %v3040_v5 = vsub.f32 %v2992_v38, %v3020_v4 }
 0xec8   : > { %v10466_v20 = vpop.eup %10465 }
 0xec9   : > { %v3059_v39 = vmul.f32 1.442695, %v3040_v5  ;;  %v3081_v45 = vsel %vm982_vm6, %v10466_v20, 0.0 }
 0xeca   : > { %3082 = vadd.xlane.f32.xlu0 %v3081_v45 }
 0xecb   : > { %10471 = vpow2.f32 %v3059_v39 }
 0xecc   : > { %v11595_v60 = vpop.eup %10467 }
 0xecd   : > { %v3084_v32 = vsel %vm982_vm6, %v11595_v60, 0.0 }
 0xece   : > { %3085 = vadd.xlane.f32.xlu1 %v3084_v32  ;;  %v3026_v28 = vpop.xlane.xlu0 %3025 }
 0xecf   : > { %v3042_v25 = vsub.f32 %v2994_v47, %v3026_v28 }
 0xed1   : > { %v11599_v24 = vpop.eup %10469  ;;  %v3063_v18 = vmul.f32 1.442695, %v3042_v25  ;;  %v11627_v25 = vsel %vm247_vm5, %v11564_v12, -1e+30 }
 0xed2   : > { %v3023_v1 = vpop.xlane.xlu0 %3022  ;;  %v3087_v38 = vsel %vm982_vm6, %v11599_v24, 0.0 }
 0xed3   : > { %10473 = vpow2.f32 %v3063_v18  ;;  %v3041_v2 = vsub.f32 %v2993_v59, %v3023_v1  ;;  %3088 = vadd.xlane.f32.xlu0 %v3087_v38  ;;  %v11632_v18 = vsel %vm247_vm5, %v11569_v0, -1e+30  ;;  %v3000_v1 = vsel %vm982_vm6, %v11627_v25, -inf }
 0xed5   : > { %v10472_v34 = vpop.eup %10471  ;;  %v3061_v22 = vmul.f32 1.442695, %v3041_v2 }
 0xed6   : > { %v3029_v10 = vpop.xlane.xlu0 %3028  ;;  %v3090_v26 = vsel %vm982_vm6, %v10472_v34, 0.0 }
 0xed7   : > { %10475 = vpow2.f32 %v3061_v22  ;;  %v3043_v36 = vsub.f32 %v2995_v52, %v3029_v10  ;;  %3091 = vadd.xlane.f32.xlu1 %v3090_v26 }
 0xed9   : > { %v3065_v43 = vmul.f32 1.442695, %v3043_v36 }
 0xeda   : > { %v3032_v47 = vpop.xlane.xlu0 %3031 }
 0xedb   : > { %10477 = vpow2.f32 %v3065_v43  ;;  %v3044_v9 = vsub.f32 %v2996_v57, %v3032_v47  ;;  %v2985_v57 = vsel %vm247_vm5, %v11559_v17, -1e+30  ;;  %v3003_v17 = vsel %vm982_vm6, %v11632_v18, -inf }
 0xedc   : > { %v2997_v32 = vsel %vm982_vm6, %v2985_v57, -inf }
 0xedd   : > { %v11604_v41 = vpop.eup %10473  ;;  %v3067_v30 = vmul.f32 1.442695, %v3044_v9 }
 0xede   : > { %v3096_v4 = vsel %vm982_vm6, %v11604_v41, 0.0 }
 0xedf   : > { %10479 = vpow2.f32 %v3067_v30  ;;  %3097 = vadd.xlane.f32.xlu1 %v3096_v4 }
 0xee1   : > { %v11608_v59 = vpop.eup %10475 }
 0xee2   : > { %v3093_v5 = vsel %vm982_vm6, %v11608_v59, 0.0 }
 0xee3   : > { %3094 = vadd.xlane.f32.xlu0 %v3093_v5 }
 0xee5   : > { %v11612_v52 = vpop.eup %10477 }
 0xee6   : > { %v3099_v39 = vsel %vm982_vm6, %v11612_v52, 0.0 }
 0xee7   : > { %3100 = vadd.xlane.f32.xlu0 %v3099_v39 }
 0xee9   : > { %v11619_v45 = vpop.eup %10479 }
 0xeea   : > { %v3102_v28 = vsel %vm982_vm6, %v11619_v45, 0.0 }
 0xeeb   : > { %2998 = vmax.xlane.f32.xlu0 %v2997_v32  ;;  %3103 = vadd.xlane.f32.xlu1 %v3102_v28 }
 0xeef   : > { %3004 = vmax.xlane.f32.xlu0 %v3003_v17  ;;  %3001 = vmax.xlane.f32.xlu1 %v3000_v1 }
 0xf53   : > { %v3080_v38 = vpop.xlane.xlu1 %3079 }
 0xf54   : > { %10481 = vrcp.f32 %v3080_v38 }
 0xf57   : > { %v3083_v2 = vpop.xlane.xlu0 %3082 }
 0xf58   : > { %10483 = vrcp.f32 %v3083_v2 }
 0xf5b   : > { %v3086_v12 = vpop.xlane.xlu1 %3085 }
 0xf5c   : > { %10485 = vrcp.f32 %v3086_v12 }
 0xf5e   : > { %v10482_v22 = vpop.eup %10481 }
 0xf5f   : > { %v3120_v0 = vmul.f32 %v10482_v22, %v11590_v53 }
 0xf60   : > { %v3089_v10 = vpop.xlane.xlu0 %3088 }
 0xf61   : > { %10487 = vrcp.f32 %v3089_v10  ;;  %v3132_v47 = vmul.f32 %v11165_v49, %v3120_v0 }
 0xf62   : > { %v10484_v26 = vpop.eup %10483 }
 0xf63   : > { %v3121_v36 = vmul.f32 %v10484_v26, %v10466_v20 }
 0xf64   : > { %v3092_v43 = vpop.xlane.xlu1 %3091 }
 0xf65   : > { %10489 = vrcp.f32 %v3092_v43  ;;  %v3133_v9 = vmul.f32 %v11163_v48, %v3121_v36 }
 0xf66   : > { %v10486_v4 = vpop.eup %10485 }
 0xf67   : > { %v11641_v30 = vpack.c.bf16 %v3133_v9, %v3132_v47  ;;  %v3122_v53 = vmul.f32 %v10486_v4, %v11595_v60 }
 0xf69   : > { %10131 = vmatpush3.bf16.xpose.msk.msra.mxu0 %vm11171_vm8, %v11641_v30  ;;  %v11650_v28 = vmul.f32 %v3122_v53, %v11182_v62 }
 0xf6a   : > { %9460 = vmatprep.subr.mxu0 %v10761_v6 }
 0xf6b   : > { %v10488_v5 = vpop.eup %10487 }
 0xf6c   : > { %v3098_v39 = vpop.xlane.xlu1 %3097  ;;  %v3123_v20 = vmul.f32 %v10488_v5, %v11599_v24 }
 0xf6d   : > { %10491 = vrcp.f32 %v3098_v39 }
 0xf6e   : > { %v3135_v60 = vmul.f32 %v11165_v49, %v3123_v20 }
 0xf6f   : > { %v10490_v32 = vpop.eup %10489 }
 0xf70   : > { %v3124_v17 = vmul.f32 %v10490_v32, %v10472_v34  ;;  %v3095_v1 = vpop.xlane.xlu0 %3094 }
 0xf71   : > { %10493 = vrcp.f32 %v3095_v1  ;;  %9461 = vmatpush3.xpose.msk.msra.mxu0 %vm982_vm6, %v11650_v28 }
 0xf72   : > { %v3136_v38 = vmul.f32 %v11163_v48, %v3124_v17  ;;  %10135 = vmatprep.subr.bf16.mxu0 %v10759_v3 }
 0xf74   : > { %9463 = vmatmul.mubr.msk.f32.vlgmr.msra.gmra.mrb[56].mxu0 %vm982_vm6, %v11503_v63  ;;  %v3101_v24 = vpop.xlane.xlu0 %3100  ;;  %v11659_v2 = vpack.c.bf16 %v3136_v38, %v3135_v60 }
 0xf75   : > { %10495 = vrcp.f32 %v3101_v24  ;;  %9480 = vmatprep.mubr.msk.f32.mxu0 %vm10760_vm0, %v10761_v6 }
 0xf76   : > { %10138 = vmatpush3.bf16.xpose.msk.msra.mxu0 %vm11171_vm8, %v11659_v2 }
 0xf77   : > { %9478 = vmatprep.subr.mxu0 %v10761_v6  ;;  %v10492_v10 = vpop.eup %10491 }
 0xf78   : > { %v3104_v34 = vpop.xlane.xlu1 %3103  ;;  %v2999_v12 = vpop.xlane.xlu0 %2998  ;;  %v3126_v5 = vmul.f32 %v10492_v10, %v11604_v41 }
 0xf79   : > { %10497 = vrcp.f32 %v3104_v34  ;;  %v3033_v22 = vsub.f32 %v2985_v57, %v2999_v12 }
 0xf7b   : > { %v10494_v0 = vpop.eup %10493  ;;  %v3045_v63 = vmul.f32 1.442695, %v3033_v22 }
 0xf7c   : > { %v3125_v26 = vmul.f32 %v10494_v0, %v11608_v59  ;;  %v3002_v36 = vpop.xlane.xlu1 %3001  ;;  %v3005_v43 = vpop.xlane.xlu0 %3004 }
 0xf7d   : > { %10499 = vpow2.f32 %v3045_v63  ;;  %v3034_v47 = vsub.f32 %v11627_v25, %v3002_v36  ;;  %v3035_v9 = vsub.f32 %v11632_v18, %v3005_v43  ;;  %v3138_v25 = vmul.f32 %v11165_v49, %v3126_v5 }
 0xf7e   : > { %v11671_v4 = vmul.f32 %v3125_v26, %v11182_v62 }
 0xf7f   : > { %v10496_v53 = vpop.eup %10495  ;;  %v3047_v39 = vmul.f32 1.442695, %v3034_v47  ;;  %v3049_v57 = vmul.f32 1.442695, %v3035_v9 }
 0xf80   : > { %9479 = vmatpush3.xpose.msk.msra.mxu0 %vm982_vm6, %v11671_v4  ;;  %v3127_v59 = vmul.f32 %v10496_v53, %v11612_v52 }
 0xf81   : > { %10501 = vpow2.f32 %v3047_v39  ;;  %10146 = vmatprep.subr.bf16.mxu0 %v10759_v3 }
 0xf82   : > { %10503 = vpow2.f32 %v3049_v57  ;;  %v3139_v18 = vmul.f32 %v11163_v48, %v3127_v59 }
 0xf83   : > { %v10498_v20 = vpop.eup %10497  ;;  %9481 = vmatmul.mubr.msk.f32.vlgmr.msra.gmra.mrb[58].mxu0 %vm982_vm6, %v11514_v16 }
 0xf84   : > { %v11682_v41 = vpack.c.bf16 %v3139_v18, %v3138_v25  ;;  %v3128_v32 = vmul.f32 %v10498_v20, %v11619_v45  ;;  %9507 = vmatprep.mubr.msk.f32.mxu0 %vm10760_vm0, %v10761_v6 }
 0xf86   : > { %10148 = vmatpush3.bf16.msra.mxu0 %v11682_v41  ;;  %v11691_v1 = vmul.f32 %v3128_v32, %v11182_v62 }
 0xf87   : > { %v10500_v52 = vpop.eup %10499  ;;  %9505 = vmatprep.subr.mxu0 %v10761_v6 }
 0xf88   : > { %v3069_v17 = vsel %vm982_vm6, %v10500_v52, 0.0 }
 0xf89   : > { %3070 = vadd.xlane.f32.xlu1 %v3069_v17 }
 0xf8a   : > { %9506 = vmatpush3.msra.mxu0 %v11691_v1 }
 0xf8b   : > { %v10502_v16 = vpop.eup %10501  ;;  %9508 = vmatmul.mubr.msk.f32.vlgmr.msra.gmra.mrb[60].mxu0 %vm982_vm6, %v11499_v54  ;;  %10150 = vmatprep.subr.bf16.mxu0 %v11448_v56 }
 0xf8c   : > { %v10504_v45 = vpop.eup %10503  ;;  %10152 = vmatpush3.bf16.msra.mxu0 %v11448_v56  ;;  %9516 = vmatprep.mubr.msk.f32.mxu0 %vm982_vm6, %v11255_v27  ;;  %v3072_v38 = vsel %vm982_vm6, %v10502_v16, 0.0 }
 0xf8d   : > { %3073 = vadd.xlane.f32.xlu0 %v3072_v38  ;;  %9514 = vmatprep.subr.mxu0 %v11453_v51  ;;  %v3075_v60 = vsel %vm982_vm6, %v10504_v45, 0.0 }
 0xf8e   : > { %3076 = vadd.xlane.f32.xlu1 %v3075_v60 }
 0xf90   : > { %9515 = vmatpush3.msra.mxu0 %v11453_v51 }
 0xf91   : > { %9517 = vmatmul.mubr.msk.f32.vlgmr.msra.gmra.mrb[62].mxu0 %vm982_vm6, %v11259_v46  ;;  %10162 = vmatprep.subr.bf16.mxu0 %v11328_v14 }
 0xf92   : > { %9519 = vmatprep.mubr.msk.f32.mxu0 %vm982_vm6, %v11263_v8  ;;  %10164 = vmatpush3.bf16.msra.mxu0 %v11328_v14 }
 0xf93   : > { %10166 = vmatprep.subr.bf16.mxu0 %v11338_v31 }
 0xf95   : > { %9520 = vmatmul.mubr.msk.f32.gmra.mrb[64].mxu0 %vm982_vm6, %v11267_v21 }
 0xf96   : > { %10168 = vmatpush3.bf16.msra.mxu0 %v11338_v31 }
 0xf97   : > { %10175 = vmatprep.subr.bf16.mxu0 %v10759_v3 }
0x1016   : > { %v3071_v27 = vpop.xlane.xlu1 %3070 }
0x1017   : > { %10505 = vrcp.f32 %v3071_v27 }
0x101a   : > { %v3074_v56 = vpop.xlane.xlu0 %3073 }
0x101b   : > { %10507 = vrcp.f32 %v3074_v56  ;;  %v3077_v46 = vpop.xlane.xlu1 %3076 }
0x101c   : > { %10509 = vrcp.f32 %v3077_v46 }
0x1021   : > { %v10506_v51 = vpop.eup %10505 }
0x1022   : > { %v3117_v54 = vmul.f32 %v10506_v51, %v10500_v52 }
0x1024   : > { %v3129_v34 = vmul.f32 %v11165_v49, %v3117_v54 }
0x1025   : > { %v10508_v8 = vpop.eup %10507 }
0x1026   : > { %v3118_v24 = vmul.f32 %v10508_v8, %v10502_v16  ;;  %v10510_v21 = vpop.eup %10509 }
0x1027   : > { %v3119_v31 = vmul.f32 %v10510_v21, %v10504_v45 }
0x1028   : > { %v3130_v14 = vmul.f32 %v11163_v48, %v3118_v24 }
0x1029   : > { %v3131_v22 = vmul.f32 %v3119_v31, %v11182_v62 }
0x102a   : > { %v10122_v12 = vpack.c.bf16 %v3130_v14, %v3129_v34 }
0x102c   : > { %10124 = vmatpush3.bf16.xpose.msk.msra.mxu1 %vm11171_vm8, %v10122_v12 }
0x102d   : > { %9442 = vmatprep.subr.mxu1 %v10761_v6 }
0x1034   : > { %9443 = vmatpush3.xpose.msk.msra.mxu1 %vm982_vm6, %v3131_v22 }
0x1035   : > { %10125 = vmatprep.subr.bf16.mxu1 %v10759_v3 }
0x1037   : > { %9445 = vmatmul.mubr.msk.f32.vlgmr.msra.gmra.mrb[54].mxu1 %vm982_vm6, %v11505_v29 }
0x1038   : > { %10127 = vmatpush3.bf16.msra.mxu1 %v10122_v12  ;;  %9453 = vmatprep.mubr.msk.f32.mxu1 %vm10760_vm0, %v10761_v6 }
0x1039   : > { %9451 = vmatprep.subr.mxu1 %v10761_v6 }
0x103c   : > { %9452 = vmatpush3.msra.mxu1 %v3131_v22 }
0x103d   : > { %9454 = vmatmul.mubr.msk.f32.vlgmr.msra.gmra.mrb[56].mxu1 %vm982_vm6, %v11496_v37  ;;  %10132 = vmatprep.subr.bf16.mxu1 %v10759_v3 }
0x103e   : > { %10134 = vmatpush3.bf16.msra.mxu1 %v11641_v30  ;;  %9471 = vmatprep.mubr.msk.f32.mxu1 %vm10760_vm0, %v10761_v6 }
0x103f   : > { %9469 = vmatprep.subr.mxu1 %v10761_v6 }
0x1042   : > { %9470 = vmatpush3.msra.mxu1 %v11650_v28 }
0x1043   : > { %9472 = vmatmul.mubr.msk.f32.vlgmr.msra.gmra.mrb[58].mxu1 %vm982_vm6, %v11493_v35  ;;  %10139 = vmatprep.subr.bf16.mxu1 %v10759_v3 }
0x1044   : > { %10141 = vmatpush3.bf16.msra.mxu1 %v11659_v2  ;;  %9489 = vmatprep.mubr.msk.f32.mxu1 %vm10760_vm0, %v10761_v6 }
0x1045   : > { %9487 = vmatprep.subr.mxu1 %v10761_v6 }
0x1047   : > { %v11743_v37 = vpop.f32.mrb[56].mxu0 }
0x1048   : > { %v9464_v29 = vpop.f32.mrb[57].mxu0  ;;  %9488 = vmatpush3.msra.mxu1 %v11671_v4 }
0x1049   : > { %9490 = vmatmul.mubr.msk.f32.vlgmr.msra.gmra.mrb[60].mxu1 %vm982_vm6, %v11501_v61  ;;  %10142 = vmatprep.subr.bf16.mxu1 %v10759_v3 }
0x104a   : > { %9498 = vmatprep.mubr.msk.f32.mxu1 %vm10760_vm0, %v10761_v6 }
0x104f   : > { %10145 = vmatpush3.bf16.xpose.msk.msra.mxu1 %vm11171_vm8, %v11682_v41 }
0x1050   : > { %9496 = vmatprep.subr.mxu1 %v10761_v6 }
0x1056   : > { %v11755_v35 = vpop.f32.mrb[58].mxu0 }
0x1057   : > { %v9482_v30 = vpop.f32.mrb[59].mxu0  ;;  %9497 = vmatpush3.xpose.msk.msra.mxu1 %vm982_vm6, %v11691_v1 }
0x1058   : > { %10154 = vmatprep.subr.bf16.mxu1 %v11280_v40 }
0x105a   : > { %9499 = vmatmul.mubr.msk.f32.vlgmr.msra.gmra.mrb[62].mxu1 %vm982_vm6, %v11512_v58 }
0x105b   : > { %10156 = vmatpush3.bf16.msra.mxu1 %v11280_v40 }
0x105c   : > { %10158 = vmatprep.subr.bf16.mxu1 %v11285_v44 }
0x105e   : > { %v11764_v61 = vpop.f32.mrb[60].mxu0 }
0x105f   : > { %v9509_v28 = vpop.f32.mrb[61].mxu0  ;;  %10160 = vmatpush3.bf16.msra.mxu1 %v11285_v44 }
0x1060   : > { %10169 = vmatprep.subr.bf16.mxu1 %v10759_v3 }
0x1064   : > { %v9518_v2 = vpop.f32.mrb[62].mxu0 }
0x1065   : > { %v3827_v10 = vpop.f32.mrb[63].mxu0 }
0x1066   : > { %9530 = vmatprep.mubr.msk.f32.mxu1 %vm290_vm2, %v3827_v10 }
0x1067   : > { %9531 = vmatmul.mubr.msk.f32.vlgmr.msra.gmra.mrb[64].mxu1 %vm290_vm2, %v9518_v2 }
0x1068   : > { %v9521_v0 = vpop.f32.mrb[64].mxu0 }
0x1069   : > { %v3837_v63 = vpop.f32.mrb[65].mxu0 }
0x106a   : > { %9533 = vmatprep.mubr.msk.f32.mxu1 %vm290_vm2, %v3837_v63 }
0x106b   : > { %9534 = vmatmul.mubr.msk.f32.gmra.mrb[66].mxu1 %vm290_vm2, %v9521_v0 }
0x106c   : > { %9558 = vmatprep.mubr.msk.f32.mxu1 %vm10760_vm0, %v10761_v6 }
0x110a   : > { %v3219_v40 = vpop.f32.mrb[54].mxu1 }
0x110b   : > { %v9446_v58 = vpop.f32.mrb[55].mxu1 }
0x1110   : > { %v3292_v44 = vpop.f32.mrb[56].mxu1 }
0x1111   : > { %v9455_v26 = vpop.f32.mrb[57].mxu1 }
0x1116   : > { %v3447_v36 = vpop.f32.mrb[58].mxu1 }
0x1117   : > { %v9473_v43 = vpop.f32.mrb[59].mxu1 }
0x111c   : > { %v3602_v47 = vpop.f32.mrb[60].mxu1 }
0x111d   : > { %v9491_v9 = vpop.f32.mrb[61].mxu1 }
0x111e   : > { %v10680_v9 = vld [vmem:[%s12780_s1 + $0x128] sm:$0xff] }
0x112d   : > { %v3684_v4 = vpop.f32.mrb[62].mxu1 }
0x112e   : > { %v9500_v5 = vpop.f32.mrb[63].mxu1 }
0x113a   : > { %v9532_v53 = vpop.f32.mrb[64].mxu1 }
0x113b   : > { %v3924_v39 = vpop.f32.mrb[65].mxu1  ;;  %v3946_v57 = vsel %vm290_vm2, %v9532_v53, -inf }
0x113c   : > { %3947 = vmax.xlane.f32.xlu1 %v3946_v57  ;;  %v3943_v59 = vsel %vm290_vm2, %v3924_v39, -inf }
0x113d   : > { %3944 = vmax.xlane.f32.xlu0 %v3943_v59 }
0x113e   : > { %v9535_v25 = vpop.f32.mrb[66].mxu1 }
0x113f   : > { %v3934_v18 = vpop.f32.mrb[67].mxu1  ;;  %v3952_v20 = vsel %vm290_vm2, %v9535_v25, -inf }
0x1140   : > { %3953 = vmax.xlane.f32.xlu1 %v3952_v20  ;;  %v3949_v41 = vsel %vm290_vm2, %v3934_v18, -inf }
0x1141   : > { %3950 = vmax.xlane.f32.xlu0 %v3949_v41 }
0x11c9   : > { %v3948_v32 = vpop.xlane.xlu1 %3947 }
0x11ca   : > { %v3956_v52 = vsub.f32 %v9532_v53, %v3948_v32  ;;  %v3945_v17 = vpop.xlane.xlu0 %3944 }
0x11cb   : > { %v3955_v1 = vsub.f32 %v3924_v39, %v3945_v17 }
0x11cc   : > { %v3961_v16 = vmul.f32 1.442695, %v3956_v52 }
0x11cd   : > { %v3959_v45 = vmul.f32 1.442695, %v3955_v1  ;;  %v3954_v38 = vpop.xlane.xlu1 %3953 }
0x11ce   : > { %10511 = vpow2.f32 %v3961_v16  ;;  %v3958_v60 = vsub.f32 %v9535_v25, %v3954_v38  ;;  %v3951_v27 = vpop.xlane.xlu0 %3950 }
0x11cf   : > { %10513 = vpow2.f32 %v3959_v45  ;;  %v3957_v56 = vsub.f32 %v3934_v18, %v3951_v27 }
0x11d0   : > { %v3965_v46 = vmul.f32 1.442695, %v3958_v60 }
0x11d1   : > { %v3963_v51 = vmul.f32 1.442695, %v3957_v56 }
0x11d2   : > { %10515 = vpow2.f32 %v3965_v46 }
0x11d3   : > { %10517 = vpow2.f32 %v3963_v51 }
0x11d8   : > { %v10512_v54 = vpop.eup %10511 }
0x11d9   : > { %v10514_v8 = vpop.eup %10513  ;;  %v3970_v24 = vsel %vm290_vm2, %v10512_v54, 0.0 }
0x11da   : > { %3971 = vadd.xlane.f32.xlu1 %v3970_v24  ;;  %v3967_v14 = vsel %vm290_vm2, %v10514_v8, 0.0 }
0x11db   : > { %3968 = vadd.xlane.f32.xlu0 %v3967_v14 }
0x11dc   : > { %v10516_v34 = vpop.eup %10515 }
0x11dd   : > { %v10518_v12 = vpop.eup %10517  ;;  %v3976_v21 = vsel %vm290_vm2, %v10516_v34, 0.0 }
0x11de   : > { %3977 = vadd.xlane.f32.xlu1 %v3976_v21  ;;  %v3973_v31 = vsel %vm290_vm2, %v10518_v12, 0.0 }
0x11df   : > { %3974 = vadd.xlane.f32.xlu0 %v3973_v31 }
0x120c   : > { %4164 = vxpose.xlu0.b32.start [1/8] (short) (narrow) %v3219_v40, 24 }
0x1210   : > { %4165 = vxpose.xlu0.b32.cont [2/8] (short) (narrow) %v11743_v37, 24 }
0x1214   : > { %4166 = vxpose.xlu0.b32.cont [3/8] (short) (narrow) %v11755_v35, 24 }
0x1218   : > { %4167 = vxpose.xlu0.b32.cont [4/8] (short) (narrow) %v3684_v4, 24  ;;  %v10681_v4 = vld [vmem:[%s12780_s1 + $0x130] sm:$0xff] }
0x121c   : > { %4168 = vxpose.xlu0.b32.cont [5/8] (short) (narrow) %v3292_v44, 24 }
0x1220   : > { %4169 = vxpose.xlu0.b32.cont [6/8] (short) (narrow) %v3447_v36, 24 }
0x1224   : > { %4170 = vxpose.xlu0.b32.cont [7/8] (short) (narrow) %v3602_v47, 24  ;;  %v10679_v47 = vld [vmem:[%s12780_s1 + $0x120] sm:$0xff] }
0x1228   : > { %4171 = vxpose.xlu0.b32.end [8/8] (short) (narrow) %v11764_v61, 24 }
0x1267   : > { %v3972_v22 = vpop.xlane.xlu1 %3971 }
0x1268   : > { %10519 = vrcp.f32 %v3972_v22  ;;  %v3969_v29 = vpop.xlane.xlu0 %3968 }
0x1269   : > { %10521 = vrcp.f32 %v3969_v29 }
0x126b   : > { %v3978_v30 = vpop.xlane.xlu1 %3977 }
0x126c   : > { %10523 = vrcp.f32 %v3978_v30  ;;  %v3975_v28 = vpop.xlane.xlu0 %3974 }
0x126d   : > { %10525 = vrcp.f32 %v3975_v28 }
0x1272   : > { %v10520_v2 = vpop.eup %10519 }
0x1273   : > { %v10522_v10 = vpop.eup %10521  ;;  %v3984_v37 = vmul.f32 %v10520_v2, %v10512_v54  ;;  %v4290_v2 = vld [vmem:[%s12780_s1 + $0x140] sm:$0xff] }
0x1274   : > { %v3983_v0 = vmul.f32 %v10522_v10, %v10514_v8 }
0x1276   : > { %v10524_v63 = vpop.eup %10523  ;;  %9544 = vmatprep.mubr.msk.f32.mxu0 %vm290_vm2, %v3983_v0 }
0x1277   : > { %v10526_v35 = vpop.eup %10525  ;;  %9545 = vmatmul.mubr.msk.f32.vlgmr.msra.gmra.mrb[66].mxu0 %vm290_vm2, %v3984_v37  ;;  %v3986_v61 = vmul.f32 %v10524_v63, %v10516_v34 }
0x1278   : > { %v3985_v40 = vmul.f32 %v10526_v35, %v10518_v12  ;;  %10177 = vmatpush3.bf16.msra.mxu0 %v11357_v33 }
0x1279   : > { %10178 = vmatprep.subr.bf16.mxu0 %v10759_v3 }
0x127a   : > { %9547 = vmatprep.mubr.msk.f32.mxu0 %vm290_vm2, %v3985_v40 }
0x127b   : > { %9548 = vmatmul.mubr.msk.f32.gmra.mrb[68].mxu0 %vm290_vm2, %v3986_v61 }
0x127c   : > { %10180 = vmatpush3.bf16.msra.mxu0 %v11373_v13  ;;  %9583 = vmatprep.mubr.msk.f32.mxu0 %vm10760_vm0, %v10761_v6 }
0x127d   : > { %10181 = vmatprep.subr.bf16.mxu0 %v10759_v3 }
0x1280   : > { %10183 = vmatpush3.bf16.msra.mxu0 %v11382_v23 }
0x1281   : > { %10184 = vmatprep.subr.bf16.mxu0 %v10759_v3 }
0x1284   : > { %10186 = vmatpush3.bf16.msra.mxu0 %v11393_v11 }
0x1285   : > { %9610 = vmatprep.subr.mxu0 %v10761_v6 }
0x128c   : > { %v4180_v33 = vpop.trf.xlu0 }
0x128d   : > { %9584 = vmatmul.mubr.msk.f32.vlgmr.msra.gmra.mrb[70].mxu0 %vm155_vm1, %v4180_v33 }
0x128e   : > { %9586 = vmatprep.mubr.msk.f32.mxu0 %vm10760_vm0, %v10761_v6 }
0x1290   : > { %v4181_v13 = vpop.trf.xlu0 }
0x1291   : > { %9587 = vmatmul.mubr.msk.f32.gmra.mrb[72].mxu0 %vm155_vm1, %v4181_v13 }
0x1292   : > { %9589 = vmatprep.mubr.msk.f32.mxu0 %vm10760_vm0, %v10761_v6 }
0x1294   : > { %v4182_v58 = vpop.trf.xlu0 }
0x1295   : > { %9590 = vmatmul.mubr.msk.f32.gmra.mrb[74].mxu0 %vm155_vm1, %v4182_v58  ;;  %v8591_v58 = vld [vmem:[%s12780_s1 + $0x138] ss:$0 sm:$0xff] }
0x1296   : > { %9612 = vmatprep.mubr.msk.f32.mxu0 %vm10760_vm0, %v10761_v6 }
0x134a   : > { %v9546_v23 = vpop.f32.mrb[66].mxu0 }
0x134b   : > { %v4065_v11 = vpop.f32.mrb[67].mxu0 }
0x134c   : > { %v10170_v44 = vpack.c.bf16 %v9546_v23, %v4065_v11 }
0x134e   : > { %v9549_v26 = vpop.f32.mrb[68].mxu0  ;;  %10171 = vmatpush3.bf16.msra.mxu1 %v10170_v44 }
0x134f   : > { %v4075_v36 = vpop.f32.mrb[69].mxu0  ;;  %10172 = vmatprep.subr.bf16.mxu1 %v10759_v3 }
0x1350   : > { %v10173_v43 = vpack.c.bf16 %v9549_v26, %v4075_v36 }
0x1352   : > { %10174 = vmatpush3.bf16.msra.mxu1 %v10173_v43  ;;  %v8592_v43 = vld [vmem:[%s12780_s1 + $0x139] ss:$0 sm:$0xff] }
0x1355   : > { %9559 = vmatmul.mubr.msk.f32.vlgmr.msra.gmra.mrb[68].mxu1 %vm290_vm2, %v10679_v47 }
0x1356   : > { %9561 = vmatprep.mubr.msk.f32.mxu1 %vm10760_vm0, %v10761_v6 }
0x1359   : > { %9562 = vmatmul.mubr.msk.f32.gmra.mrb[70].mxu1 %vm290_vm2, %v10680_v9 }
0x135a   : > { %9564 = vmatprep.mubr.msk.f32.mxu1 %vm10760_vm0, %v10761_v6 }
0x135d   : > { %9565 = vmatmul.mubr.msk.f32.gmra.mrb[72].mxu1 %vm290_vm2, %v10681_v4 }
0x135e   : > { %9598 = vmatprep.mubr.msk.f32.mxu1 %vm290_vm2, %v4290_v2 }
0x1360   : > { %v4271_v5 = vpop.f32.mrb[70].mxu0 }
0x1361   : > { %v9585_v53 = vpop.f32.mrb[71].mxu0 }
0x1364   : > { %v4276_v39 = vpop.f32.mrb[72].mxu0 }
0x1365   : > { %v9588_v57 = vpop.f32.mrb[73].mxu0 }
0x1368   : > { %v4281_v59 = vpop.f32.mrb[74].mxu0 }
0x1369   : > { %v9591_v25 = vpop.f32.mrb[75].mxu0 }
0x136a   : > { %v4291_v25 = vld [vmem:[%s12780_s1 + $0x148] sm:$0xff] }
0x1428   : > { %v4150_v18 = vpop.f32.mrb[68].mxu1 }
0x1429   : > { %v4272_v20 = vadd.f32 %v4271_v5, %v4150_v18  ;;  %v9560_v41 = vpop.f32.mrb[69].mxu1  ;;  %v4292_v18 = vld [vmem:[%s12780_s1 + $0x150] sm:$0xff] }
0x142a   : > { %v4294_v41 = vld [vmem:[%s12780_s1 + $0x160] sm:$0xff] }
0x142b   : > { %v11826_v32 = vadd.f32 %v4272_v20, %v11422_v15  ;;  %v4293_v20 = vld [vmem:[%s12780_s1 + $0x158] sm:$0xff] }
0x142c   : > { %v4155_v52 = vpop.f32.mrb[70].mxu1 }
0x142d   : > { %v4277_v17 = vadd.f32 %v4276_v39, %v4155_v52  ;;  %v9563_v1 = vpop.f32.mrb[71].mxu1  ;;  %v4317_v16 = vsel %vm290_vm2, %v11826_v32, 0.0  ;;  %v4295_v52 = vld [vmem:[%s12780_s1 + $0x168] sm:$0xff] }
0x142e   : > { %4318 = vadd.xlane.f32.xlu1 %v4317_v16  ;;  %v4297_v1 = vld [vmem:[%s12780_s1 + $0x178] sm:$0xff] }
0x142f   : > { %v11831_v45 = vadd.f32 %v4277_v17, %v11427_v50  ;;  %v4296_v17 = vld [vmem:[%s12780_s1 + $0x170] sm:$0xff] }
0x1430   : > { %v4160_v38 = vpop.f32.mrb[72].mxu1 }
0x1431   : > { %v4282_v60 = vadd.f32 %v4281_v59, %v4160_v38  ;;  %v4320_v27 = vsel %vm290_vm2, %v11831_v45, 0.0  ;;  %v9566_v56 = vpop.f32.mrb[73].mxu1 }
0x1432   : > { %4321 = vadd.xlane.f32.xlu1 %v4320_v27 }
0x1433   : > { %v11836_v15 = vadd.f32 %v4282_v60, %v11432_v19 }
0x1435   : > { %v4323_v46 = vsel %vm290_vm2, %v11836_v15, 0.0 }
0x1436   : > { %4324 = vadd.xlane.f32.xlu1 %v4323_v46 }
0x14bb   : > { %v4319_v51 = vpop.xlane.xlu1 %4318 }
0x14bc   : > { %v4326_v54 = vmul.f32 0.03125, %v4319_v51 }
0x14be   : > { %v4329_v8 = vsub.f32 %v11826_v32, %v4326_v54 }
0x14bf   : > { %v4322_v50 = vpop.xlane.xlu1 %4321 }
0x14c0   : > { %v4327_v24 = vmul.f32 0.03125, %v4322_v50  ;;  %v4332_v14 = vmul.f32 %v4329_v8, %v4329_v8  ;;  %v4351_v11 = vmul.f32 %v8591_v58, %v4329_v8 }
0x14c2   : > { %v4330_v34 = vsub.f32 %v11831_v45, %v4327_v24  ;;  %v4335_v12 = vsel %vm290_vm2, %v4332_v14, 0.0 }
0x14c3   : > { %4336 = vadd.xlane.f32.xlu1 %v4335_v12  ;;  %v4325_v21 = vpop.xlane.xlu1 %4324 }
0x14c4   : > { %v4328_v31 = vmul.f32 0.03125, %v4325_v21  ;;  %v4333_v19 = vmul.f32 %v4330_v34, %v4330_v34  ;;  %v4352_v44 = vmul.f32 %v8591_v58, %v4330_v34 }
0x14c6   : > { %v4331_v22 = vsub.f32 %v11836_v15, %v4328_v31  ;;  %v4338_v29 = vsel %vm290_vm2, %v4333_v19, 0.0 }
0x14c7   : > { %4339 = vadd.xlane.f32.xlu1 %v4338_v29 }
0x14c8   : > { %v4334_v30 = vmul.f32 %v4331_v22, %v4331_v22  ;;  %v4353_v9 = vmul.f32 %v8591_v58, %v4331_v22 }
0x14ca   : > { %v4341_v28 = vsel %vm290_vm2, %v4334_v30, 0.0 }
0x14cb   : > { %4342 = vadd.xlane.f32.xlu1 %v4341_v28 }
0x1550   : > { %v4337_v10 = vpop.xlane.xlu1 %4336 }
0x1551   : > { %v4344_v0 = vmul.f32 0.03125, %v4337_v10 }
0x1553   : > { %v4354_v37 = vadd.f32 1e-05, %v4344_v0 }
0x1554   : > { %v4340_v63 = vpop.xlane.xlu1 %4339 }
0x1555   : > { %10527 = vrsqrt.f32 %v4354_v37  ;;  %v4345_v35 = vmul.f32 0.03125, %v4340_v63 }
0x1557   : > { %v4355_v40 = vadd.f32 1e-05, %v4345_v35 }
0x1558   : > { %v4343_v61 = vpop.xlane.xlu1 %4342 }
0x1559   : > { %10529 = vrsqrt.f32 %v4355_v40  ;;  %v4346_v33 = vmul.f32 0.03125, %v4343_v61 }
0x155b   : > { %v4356_v13 = vadd.f32 1e-05, %v4346_v33 }
0x155d   : > { %10531 = vrsqrt.f32 %v4356_v13 }
0x155f   : > { %v10528_v23 = vpop.eup %10527 }
0x1560   : > { %v4360_v26 = vmul.f32 %v10528_v23, %v4351_v11 }
0x1562   : > { %v4367_v4 = vadd.f32 %v8592_v43, %v4360_v26 }
0x1563   : > { %v10530_v36 = vpop.eup %10529 }
0x1564   : > { %v4361_v47 = vmul.f32 %v10530_v36, %v4352_v44 }
0x1566   : > { %v4368_v5 = vadd.f32 %v8592_v43, %v4361_v47 }
0x1567   : > { %v10532_v53 = vpop.eup %10531 }
0x1568   : > { %v11856_v39 = vpack.c.bf16 %v4368_v5, %v4367_v4  ;;  %v4362_v57 = vmul.f32 %v10532_v53, %v4353_v9 }
0x156a   : > { %10189 = vmatprep.subr.msk.bf16.mxu1 %vm10912_vm3, %v11856_v39  ;;  %v11861_v59 = vadd.f32 %v8592_v43, %v4362_v57 }
0x156b   : > { %10192 = vmatpush3.bf16.xpose.msk.msra.mxu1 %vm10912_vm3, %v11856_v39 }
0x156c   : > { %9596 = vmatprep.subr.msk.mxu1 %vm290_vm2, %v11861_v59 }
0x1573   : > { %9597 = vmatpush3.xpose.msk.msra.mxu1 %vm290_vm2, %v11861_v59 }
0x1574   : > { %9621 = vmatprep.subr.mxu1 %v10761_v6 }
0x1576   : > { %9599 = vmatmul.mubr.msk.f32.vlgmr.msra.gmra.mrb[74].mxu1 %vm290_vm2, %v4291_v25 }
0x1577   : > { %9601 = vmatprep.mubr.msk.f32.mxu1 %vm290_vm2, %v4292_v18 }
0x157a   : > { %9602 = vmatmul.mubr.msk.f32.gmra.mrb[76].mxu1 %vm290_vm2, %v4293_v20 }
0x157b   : > { %9604 = vmatprep.mubr.msk.f32.mxu1 %vm290_vm2, %v4294_v41 }
0x157e   : > { %9605 = vmatmul.mubr.msk.f32.gmra.mrb[78].mxu1 %vm290_vm2, %v4295_v52 }
0x157f   : > { %9607 = vmatprep.mubr.msk.f32.mxu1 %vm290_vm2, %v4296_v17 }
0x1582   : > { %9608 = vmatmul.mubr.msk.f32.gmra.mrb[80].mxu1 %vm290_vm2, %v4297_v1 }
0x1583   : > { %9623 = vmatprep.mubr.msk.f32.mxu1 %vm10760_vm0, %v10761_v6 }
0x1649   : > { %v11901_v16 = vpop.f32.mrb[74].mxu1 }
0x164a   : > { %4629 = vxpose.xlu0.b32.start.end [1/1] (short) (narrow) %v11901_v16, 24  ;;  %v11904_v38 = vpop.f32.mrb[75].mxu1 }
0x164b   : > { %4508 = vxpose.xlu1.b32.start.end [1/1] (short) (narrow) %v11904_v38, 24 }
0x164d   : > { %v11907_v60 = vpop.f32.mrb[76].mxu1 }
0x164e   : > { %v11909_v27 = vpop.f32.mrb[77].mxu1 }
0x1651   : > { %v11911_v56 = vpop.f32.mrb[78].mxu1 }
0x1652   : > { %v11913_v46 = vpop.f32.mrb[79].mxu1  ;;  %9622 = vmatpush3.msra.mxu1 %v11911_v56 }
0x1653   : > { %4750 = vxpose.xlu0.b32.start.end [1/1] (short) (narrow) %v11909_v27, 24  ;;  %9611 = vmatpush3.msra.mxu0 %v11913_v46 }
0x1654   : > { %4871 = vxpose.xlu1.b32.start.end [1/1] (short) (narrow) %v11907_v60, 24  ;;  %9632 = vmatprep.subr.mxu0 %v10761_v6 }
0x1655   : > { %v11920_v51 = vpop.f32.mrb[80].mxu1  ;;  %9643 = vmatprep.subr.mxu1 %v10761_v6 }
0x1656   : > { %v11923_v54 = vpop.f32.mrb[81].mxu1 }
0x16ca   : > { %v4645_v8 = vpop.trf.xlu0 }
0x16cb   : > { %v4524_v50 = vpop.trf.xlu1  ;;  %9624 = vmatmul.mubr.msk.f32.vlgmr.msra.gmra.mrb[82].mxu1 %vm515_vm4, %v4645_v8 }
0x16cc   : > { %9613 = vmatmul.mubr.msk.f32.vlgmr.msra.gmra.mrb[76].mxu0 %vm515_vm4, %v4524_v50  ;;  %9626 = vmatprep.mubr.msk.f32.mxu1 %vm10760_vm0, %v10761_v6 }
0x16cd   : > { %9633 = vmatpush3.msra.mxu0 %v11923_v54  ;;  %9644 = vmatpush3.msra.mxu1 %v11920_v51 }
0x16ce   : > { %v4646_v24 = vpop.trf.xlu0  ;;  %9615 = vmatprep.mubr.msk.f32.mxu0 %vm10760_vm0, %v10761_v6  ;;  %10200 = vmatprep.subr.bf16.mxu1 %v10759_v3 }
0x16cf   : > { %v4525_v14 = vpop.trf.xlu1  ;;  %9627 = vmatmul.mubr.msk.f32.gmra.mrb[84].mxu1 %vm515_vm4, %v4646_v24  ;;  %10193 = vmatprep.subr.bf16.mxu0 %v10759_v3 }
0x16d0   : > { %9616 = vmatmul.mubr.msk.f32.gmra.mrb[78].mxu0 %vm515_vm4, %v4525_v14  ;;  %9629 = vmatprep.mubr.msk.f32.mxu1 %vm10760_vm0, %v10761_v6 }
0x16d1   : > { %9618 = vmatprep.mubr.msk.f32.mxu0 %vm10760_vm0, %v10761_v6 }
0x16d2   : > { %v4647_v34 = vpop.trf.xlu0 }
0x16d3   : > { %v4526_v12 = vpop.trf.xlu1  ;;  %9630 = vmatmul.mubr.msk.f32.gmra.mrb[86].mxu1 %vm515_vm4, %v4647_v34 }
0x16d4   : > { %9619 = vmatmul.mubr.msk.f32.gmra.mrb[80].mxu0 %vm515_vm4, %v4526_v12  ;;  %9645 = vmatprep.mubr.msk.f32.mxu1 %vm10760_vm0, %v10761_v6 }
0x16d5   : > { %9634 = vmatprep.mubr.msk.f32.mxu0 %vm10760_vm0, %v10761_v6 }
0x16d6   : > { %v4766_v21 = vpop.trf.xlu0 }
0x16d7   : > { %v4887_v31 = vpop.trf.xlu1 }
0x16d8   : > { %9635 = vmatmul.mubr.msk.f32.vlgmr.msra.gmra.mrb[82].mxu0 %vm515_vm4, %v4766_v21  ;;  %9646 = vmatmul.mubr.msk.f32.vlgmr.msra.gmra.mrb[88].mxu1 %vm515_vm4, %v4887_v31 }
0x16d9   : > { %9637 = vmatprep.mubr.msk.f32.mxu0 %vm10760_vm0, %v10761_v6  ;;  %9648 = vmatprep.mubr.msk.f32.mxu1 %vm10760_vm0, %v10761_v6 }
0x16da   : > { %v4767_v19 = vpop.trf.xlu0 }
0x16db   : > { %v4888_v22 = vpop.trf.xlu1 }
0x16dc   : > { %9638 = vmatmul.mubr.msk.f32.gmra.mrb[84].mxu0 %vm515_vm4, %v4767_v19  ;;  %9649 = vmatmul.mubr.msk.f32.gmra.mrb[90].mxu1 %vm515_vm4, %v4888_v22 }
0x16dd   : > { %9640 = vmatprep.mubr.msk.f32.mxu0 %vm10760_vm0, %v10761_v6  ;;  %9651 = vmatprep.mubr.msk.f32.mxu1 %vm10760_vm0, %v10761_v6 }
0x16de   : > { %v4768_v29 = vpop.trf.xlu0 }
0x16df   : > { %v4889_v30 = vpop.trf.xlu1 }
0x16e0   : > { %9641 = vmatmul.mubr.msk.f32.gmra.mrb[86].mxu0 %vm515_vm4, %v4768_v29  ;;  %9652 = vmatmul.mubr.msk.f32.gmra.mrb[92].mxu1 %vm515_vm4, %v4889_v30 }
0x16e1   : > { %9678 = vmatprep.mubr.msk.f32.mxu1 %vm10760_vm0, %v10761_v6  ;;  %9660 = vmatprep.mubr.msk.f32.mxu0 %vm10760_vm0, %v10761_v6 }
0x179e   : > { %v4736_v28 = vpop.f32.mrb[82].mxu1 }
0x179f   : > { %v4995_v2 = vsel %vm247_vm5, %v4736_v28, -1e+30  ;;  %v11967_v10 = vpop.f32.mrb[76].mxu0  ;;  %v9625_v0 = vpop.f32.mrb[83].mxu1 }
0x17a0   : > { %v5013_v37 = vsel %vm982_vm6, %v4995_v2, -inf  ;;  %v9614_v63 = vpop.f32.mrb[77].mxu0 }
0x17a1   : > { %5014 = vmax.xlane.f32.xlu0 %v5013_v37 }
0x17a2   : > { %v4741_v35 = vpop.f32.mrb[84].mxu1 }
0x17a3   : > { %v4996_v40 = vsel %vm247_vm5, %v4741_v35, -1e+30  ;;  %v11972_v61 = vpop.f32.mrb[78].mxu0  ;;  %v9628_v33 = vpop.f32.mrb[85].mxu1 }
0x17a4   : > { %v5016_v13 = vsel %vm982_vm6, %v4996_v40, -inf  ;;  %v9617_v58 = vpop.f32.mrb[79].mxu0 }
0x17a5   : > { %5017 = vmax.xlane.f32.xlu1 %v5016_v13 }
0x17a6   : > { %v4746_v23 = vpop.f32.mrb[86].mxu1 }
0x17a7   : > { %v4997_v11 = vsel %vm247_vm5, %v4746_v23, -1e+30  ;;  %v11977_v44 = vpop.f32.mrb[80].mxu0  ;;  %v9631_v26 = vpop.f32.mrb[87].mxu1 }
0x17a8   : > { %v5019_v36 = vsel %vm982_vm6, %v4997_v11, -inf  ;;  %v9620_v43 = vpop.f32.mrb[81].mxu0 }
0x17a9   : > { %5020 = vmax.xlane.f32.xlu1 %v5019_v36 }
0x17ab   : > { %v4857_v47 = vpop.f32.mrb[82].mxu0  ;;  %v4978_v9 = vpop.f32.mrb[88].mxu1 }
0x17ac   : > { %v4998_v4 = vsel %vm247_vm5, %v4857_v47, -1e+30  ;;  %v9636_v5 = vpop.f32.mrb[83].mxu0  ;;  %v9647_v53 = vpop.f32.mrb[89].mxu1  ;;  %v5001_v52 = vsel %vm247_vm5, %v4978_v9, -1e+30 }
0x17ad   : > { %v5022_v57 = vsel %vm982_vm6, %v4998_v4, -inf  ;;  %v5031_v8 = vsel %vm982_vm6, %v5001_v52, -inf }
0x17ae   : > { %5023 = vmax.xlane.f32.xlu1 %v5022_v57 }
0x17af   : > { %v4862_v25 = vpop.f32.mrb[84].mxu0  ;;  %v4983_v18 = vpop.f32.mrb[90].mxu1 }
0x17b0   : > { %v4999_v20 = vsel %vm247_vm5, %v4862_v25, -1e+30  ;;  %v9639_v41 = vpop.f32.mrb[85].mxu0  ;;  %v9650_v17 = vpop.f32.mrb[91].mxu1  ;;  %v5002_v24 = vsel %vm247_vm5, %v4983_v18, -1e+30 }
0x17b1   : > { %v5025_v1 = vsel %vm982_vm6, %v4999_v20, -inf  ;;  %v5034_v22 = vsel %vm982_vm6, %v5002_v24, -inf }
0x17b2   : > { %5026 = vmax.xlane.f32.xlu0 %v5025_v1 }
0x17b3   : > { %v4867_v50 = vpop.f32.mrb[86].mxu0  ;;  %v4988_v14 = vpop.f32.mrb[92].mxu1 }
0x17b4   : > { %v5000_v34 = vsel %vm247_vm5, %v4867_v50, -1e+30  ;;  %v9642_v12 = vpop.f32.mrb[87].mxu0  ;;  %v5003_v21 = vsel %vm247_vm5, %v4988_v14, -1e+30  ;;  %v9653_v31 = vpop.f32.mrb[93].mxu1 }
0x17b5   : > { %v5028_v19 = vsel %vm982_vm6, %v5000_v34, -inf  ;;  %v5037_v29 = vsel %vm982_vm6, %v5003_v21, -inf }
0x17b6   : > { %5032 = vmax.xlane.f32.xlu0 %v5031_v8  ;;  %5029 = vmax.xlane.f32.xlu1 %v5028_v19 }
0x17ba   : > { %5038 = vmax.xlane.f32.xlu0 %v5037_v29  ;;  %5035 = vmax.xlane.f32.xlu1 %v5034_v22 }
0x182e   : > { %v5015_v30 = vpop.xlane.xlu0 %5014 }
0x182f   : > { %v5043_v28 = vsub.f32 %v4995_v2, %v5015_v30 }
0x1831   : > { %v5058_v0 = vmul.f32 1.442695, %v5043_v28 }
0x1832   : > { %v5018_v37 = vpop.xlane.xlu1 %5017 }
0x1833   : > { %10533 = vpow2.f32 %v5058_v0  ;;  %v5044_v63 = vsub.f32 %v4996_v40, %v5018_v37 }
0x1835   : > { %v5060_v35 = vmul.f32 1.442695, %v5044_v63  ;;  %v4992_v63 = vsel %vm247_vm5, %v11967_v10, -1e+30  ;;  %v12045_v10 = vsel %vm247_vm5, %v11977_v44, -1e+30 }
0x1836   : > { %v5021_v33 = vpop.xlane.xlu1 %5020  ;;  %v12064_v44 = vld [vmem:[%s12780_s1 + $0x210] sm:$0xff] }
0x1837   : > { %10535 = vpow2.f32 %v5060_v35  ;;  %v5045_v13 = vsub.f32 %v4997_v11, %v5021_v33  ;;  %v5004_v33 = vsel %vm982_vm6, %v4992_v63, -inf }
0x1839   : > { %v5062_v58 = vmul.f32 1.442695, %v5045_v13  ;;  %v12038_v13 = vsel %vm247_vm5, %v11972_v61, -1e+30  ;;  %v12058_v61 = vld [vmem:[%s12780_s1 + $0x208] sm:$0xff] }
0x183b   : > { %10537 = vpow2.f32 %v5062_v58  ;;  %v5024_v23 = vpop.xlane.xlu1 %5023  ;;  %v5007_v58 = vsel %vm982_vm6, %v12038_v13, -inf }
0x183c   : > { %v5046_v26 = vsub.f32 %v4998_v4, %v5024_v23  ;;  %v5010_v23 = vsel %vm982_vm6, %v12045_v10, -inf }
0x183d   : > { %v11998_v36 = vpop.eup %10533 }
0x183e   : > { %v5064_v43 = vmul.f32 1.442695, %v5046_v26  ;;  %v5085_v47 = vsel %vm982_vm6, %v11998_v36, 0.0  ;;  %v12052_v26 = vld [vmem:[%s12780_s1 + $0x200] sm:$0xff] }
0x183f   : > { %v5027_v9 = vpop.xlane.xlu0 %5026  ;;  %5086 = vadd.xlane.f32.xlu1 %v5085_v47 }
0x1840   : > { %10539 = vpow2.f32 %v5064_v43  ;;  %v5047_v2 = vsub.f32 %v4999_v20, %v5027_v9 }
0x1841   : > { %v12002_v5 = vpop.eup %10535 }
0x1842   : > { %v5066_v40 = vmul.f32 1.442695, %v5047_v2  ;;  %v5088_v11 = vsel %vm982_vm6, %v12002_v5, 0.0 }
0x1843   : > { %5089 = vadd.xlane.f32.xlu0 %v5088_v11  ;;  %v5033_v53 = vpop.xlane.xlu0 %5032  ;;  %v5030_v57 = vpop.xlane.xlu1 %5029 }
0x1844   : > { %10541 = vpow2.f32 %v5066_v40  ;;  %v5049_v4 = vsub.f32 %v5001_v52, %v5033_v53  ;;  %v5048_v25 = vsub.f32 %v5000_v34, %v5030_v57 }
0x1845   : > { %v12006_v18 = vpop.eup %10537 }
0x1846   : > { %v5070_v41 = vmul.f32 1.442695, %v5049_v4  ;;  %v5068_v17 = vmul.f32 1.442695, %v5048_v25  ;;  %v5091_v1 = vsel %vm982_vm6, %v12006_v18, 0.0 }
0x1847   : > { %v5039_v20 = vpop.xlane.xlu0 %5038  ;;  %5092 = vadd.xlane.f32.xlu1 %v5091_v1  ;;  %v5036_v8 = vpop.xlane.xlu1 %5035 }
0x1848   : > { %10543 = vpow2.f32 %v5070_v41  ;;  %v5051_v50 = vsub.f32 %v5003_v21, %v5039_v20  ;;  %v5050_v14 = vsub.f32 %v5002_v24, %v5036_v8 }
0x1849   : > { %10545 = vpow2.f32 %v5068_v17 }
0x184a   : > { %v12010_v12 = vpop.eup %10539  ;;  %v5074_v31 = vmul.f32 1.442695, %v5051_v50  ;;  %v5072_v19 = vmul.f32 1.442695, %v5050_v14 }
0x184b   : > { %v5094_v52 = vsel %vm982_vm6, %v12010_v12, 0.0 }
0x184c   : > { %10547 = vpow2.f32 %v5074_v31  ;;  %5095 = vadd.xlane.f32.xlu0 %v5094_v52 }
0x184d   : > { %10549 = vpow2.f32 %v5072_v19 }
0x184e   : > { %v10542_v34 = vpop.eup %10541 }
0x184f   : > { %v5097_v22 = vsel %vm982_vm6, %v10542_v34, 0.0 }
0x1850   : > { %5098 = vadd.xlane.f32.xlu1 %v5097_v22 }
0x1852   : > { %v12015_v29 = vpop.eup %10543 }
0x1853   : > { %v12017_v30 = vpop.eup %10545  ;;  %v5103_v24 = vsel %vm982_vm6, %v12015_v29, 0.0 }
0x1854   : > { %5104 = vadd.xlane.f32.xlu1 %v5103_v24  ;;  %v5100_v21 = vsel %vm982_vm6, %v12017_v30, 0.0 }
0x1855   : > { %5101 = vadd.xlane.f32.xlu0 %v5100_v21 }
0x1856   : > { %v12023_v28 = vpop.eup %10547 }
0x1857   : > { %v12025_v0 = vpop.eup %10549  ;;  %v5109_v37 = vsel %vm982_vm6, %v12023_v28, 0.0 }
0x1858   : > { %5110 = vadd.xlane.f32.xlu1 %v5109_v37  ;;  %v5106_v35 = vsel %vm982_vm6, %v12025_v0, 0.0 }
0x1859   : > { %5107 = vadd.xlane.f32.xlu0 %v5106_v35 }
0x185c   : > { %5005 = vmax.xlane.f32.xlu1 %v5004_v33 }
0x1860   : > { %5008 = vmax.xlane.f32.xlu1 %v5007_v58 }
0x1864   : > { %5011 = vmax.xlane.f32.xlu1 %v5010_v23 }
0x1886   : > { %5768 = vxpose.xlu0.b32.start [1/3] (short) (narrow) %v12052_v26, 32 }
0x188a   : > { %5769 = vxpose.xlu0.b32.cont [2/3] (short) (narrow) %v12058_v61, 32 }
0x188e   : > { %5770 = vxpose.xlu0.b32.end [3/3] (short) (narrow) %v12064_v44, 32 }
0x18cc   : > { %v5087_v43 = vpop.xlane.xlu1 %5086 }
0x18cd   : > { %10551 = vrcp.f32 %v5087_v43 }
0x18d0   : > { %v5090_v47 = vpop.xlane.xlu0 %5089 }
0x18d1   : > { %10553 = vrcp.f32 %v5090_v47 }
0x18d4   : > { %v5093_v9 = vpop.xlane.xlu1 %5092 }
0x18d5   : > { %10555 = vrcp.f32 %v5093_v9 }
0x18d7   : > { %v10552_v2 = vpop.eup %10551 }
0x18d8   : > { %v5127_v11 = vmul.f32 %v10552_v2, %v11998_v36 }
0x18d9   : > { %v5096_v40 = vpop.xlane.xlu0 %5095 }
0x18da   : > { %10557 = vrcp.f32 %v5096_v40  ;;  %v5139_v41 = vmul.f32 %v11165_v49, %v5127_v11 }
0x18db   : > { %v10554_v53 = vpop.eup %10553 }
0x18dc   : > { %v5128_v57 = vmul.f32 %v10554_v53, %v12002_v5 }
0x18dd   : > { %v5099_v4 = vpop.xlane.xlu1 %5098 }
0x18de   : > { %v5140_v25 = vmul.f32 %v11163_v48, %v5128_v57  ;;  %10559 = vrcp.f32 %v5099_v4 }
0x18df   : > { %v10556_v1 = vpop.eup %10555 }
0x18e0   : > { %v12071_v17 = vpack.c.bf16 %v5140_v25, %v5139_v41  ;;  %v5129_v5 = vmul.f32 %v10556_v1, %v12006_v18 }
0x18e1   : > { %v5105_v20 = vpop.xlane.xlu1 %5104 }
0x18e2   : > { %v5102_v8 = vpop.xlane.xlu0 %5101  ;;  %10203 = vmatpush3.bf16.xpose.msk.msra.mxu1 %vm11171_vm8, %v12071_v17  ;;  %v12080_v52 = vmul.f32 %v5129_v5, %v11182_v62 }
0x18e3   : > { %9676 = vmatprep.subr.mxu1 %v10761_v6  ;;  %10561 = vrcp.f32 %v5102_v8 }
0x18e4   : > { %v10558_v36 = vpop.eup %10557  ;;  %10563 = vrcp.f32 %v5105_v20 }
0x18e5   : > { %v5111_v50 = vpop.xlane.xlu1 %5110  ;;  %v5130_v31 = vmul.f32 %v10558_v36, %v12010_v12 }
0x18e6   : > { %v5108_v14 = vpop.xlane.xlu0 %5107 }
0x18e7   : > { %10565 = vrcp.f32 %v5108_v14  ;;  %v5142_v37 = vmul.f32 %v11165_v49, %v5130_v31 }
0x18e8   : > { %v10560_v19 = vpop.eup %10559  ;;  %10567 = vrcp.f32 %v5111_v50 }
0x18e9   : > { %v5131_v22 = vmul.f32 %v10560_v19, %v10542_v34  ;;  %v5006_v24 = vpop.xlane.xlu1 %5005 }
0x18ea   : > { %v5040_v21 = vsub.f32 %v4992_v63, %v5006_v24  ;;  %9677 = vmatpush3.xpose.msk.msra.mxu1 %vm982_vm6, %v12080_v52 }
0x18eb   : > { %v5143_v18 = vmul.f32 %v11163_v48, %v5131_v22  ;;  %10207 = vmatprep.subr.bf16.mxu1 %v10759_v3 }
0x18ec   : > { %v5052_v35 = vmul.f32 1.442695, %v5040_v21 }
0x18ed   : > { %9679 = vmatmul.mubr.msk.f32.vlgmr.msra.gmra.mrb[94].mxu1 %vm982_vm6, %v11911_v56  ;;  %v5009_v12 = vpop.xlane.xlu1 %5008  ;;  %v12089_v33 = vpack.c.bf16 %v5143_v18, %v5142_v37  ;;  %v10562_v34 = vpop.eup %10561 }
0x18ee   : > { %10569 = vpow2.f32 %v5052_v35  ;;  %v5041_v63 = vsub.f32 %v12038_v13, %v5009_v12  ;;  %9696 = vmatprep.mubr.msk.f32.mxu1 %vm10760_vm0, %v10761_v6  ;;  %v10564_v58 = vpop.eup %10563  ;;  %v5132_v56 = vmul.f32 %v10562_v34, %v12017_v30  ;;  %v4309_v12 = vld [vmem:[%s12780_s1 + $0x1d8] sm:$0xff] }
0x18ef   : > { %10210 = vmatpush3.bf16.xpose.msk.msra.mxu1 %vm11171_vm8, %v12089_v33  ;;  %v5133_v2 = vmul.f32 %v10564_v58, %v12015_v29 }
0x18f0   : > { %v5054_v23 = vmul.f32 1.442695, %v5041_v63  ;;  %9694 = vmatprep.subr.mxu1 %v10761_v6  ;;  %v12103_v11 = vmul.f32 %v5132_v56, %v11182_v62 }
0x18f1   : > { %v10566_v43 = vpop.eup %10565  ;;  %v5012_v47 = vpop.xlane.xlu1 %5011  ;;  %v5145_v30 = vmul.f32 %v11165_v49, %v5133_v2 }
0x18f2   : > { %10571 = vpow2.f32 %v5054_v23  ;;  %v5042_v9 = vsub.f32 %v12045_v10, %v5012_v47  ;;  %v5134_v13 = vmul.f32 %v10566_v43, %v12025_v0  ;;  %v10568_v57 = vpop.eup %10567 }
0x18f3   : > { %v5135_v29 = vmul.f32 %v10568_v57, %v12023_v28 }
0x18f4   : > { %v5056_v40 = vmul.f32 1.442695, %v5042_v9  ;;  %v5146_v53 = vmul.f32 %v11163_v48, %v5134_v13 }
0x18f5   : > { %v12122_v1 = vmul.f32 %v5135_v29, %v11182_v62 }
0x18f6   : > { %10573 = vpow2.f32 %v5056_v40  ;;  %v12111_v10 = vpack.c.bf16 %v5146_v53, %v5145_v30 }
0x18f7   : > { %9695 = vmatpush3.xpose.msk.msra.mxu1 %vm982_vm6, %v12103_v11 }
0x18f8   : > { %v10570_v4 = vpop.eup %10569  ;;  %10218 = vmatprep.subr.bf16.mxu1 %v10759_v3 }
0x18f9   : > { %v5076_v0 = vsel %vm982_vm6, %v10570_v4, 0.0 }
0x18fa   : > { %9697 = vmatmul.mubr.msk.f32.vlgmr.msra.gmra.mrb[96].mxu1 %vm982_vm6, %v11923_v54  ;;  %5077 = vadd.xlane.f32.xlu1 %v5076_v0 }
0x18fb   : > { %10220 = vmatpush3.bf16.msra.mxu1 %v12111_v10  ;;  %9723 = vmatprep.mubr.msk.f32.mxu1 %vm10760_vm0, %v10761_v6 }
0x18fc   : > { %v10572_v25 = vpop.eup %10571  ;;  %9721 = vmatprep.subr.mxu1 %v10761_v6 }
0x18fd   : > { %v5079_v41 = vsel %vm982_vm6, %v10572_v25, 0.0 }
0x18fe   : > { %5080 = vadd.xlane.f32.xlu1 %v5079_v41 }
0x18ff   : > { %9722 = vmatpush3.msra.mxu1 %v12122_v1 }
0x1900   : > { %v10574_v28 = vpop.eup %10573  ;;  %9724 = vmatmul.mubr.msk.f32.vlgmr.msra.gmra.mrb[98].mxu1 %vm982_vm6, %v11907_v60  ;;  %10222 = vmatprep.subr.bf16.mxu1 %v11856_v39 }
0x1901   : > { %10224 = vmatpush3.bf16.msra.mxu1 %v11856_v39  ;;  %v5082_v54 = vsel %vm982_vm6, %v10574_v28, 0.0 }
0x1902   : > { %9730 = vmatprep.subr.mxu1 %v11861_v59  ;;  %5083 = vadd.xlane.f32.xlu1 %v5082_v54 }
0x1905   : > { %9731 = vmatpush3.msra.mxu1 %v11861_v59 }
0x1906   : > { %v12132_v20 = vpop.trf.xlu0 }
0x1907   : > { %9732 = vmatprep.mubr.msk.f32.mxu1 %vm982_vm6, %v12132_v20 }
0x190a   : > { %v12136_v8 = vpop.trf.xlu0 }
0x190b   : > { %9733 = vmatmul.mubr.msk.f32.vlgmr.msra.gmra.mrb[100].mxu1 %vm982_vm6, %v12136_v8 }
0x190e   : > { %v12140_v60 = vpop.trf.xlu0 }
0x190f   : > { %9735 = vmatprep.mubr.msk.f32.mxu1 %vm982_vm6, %v12140_v60 }
0x1912   : > { %v12144_v39 = vpop.trf.xlu0 }
0x1913   : > { %9736 = vmatmul.mubr.msk.f32.gmra.mrb[102].mxu1 %vm982_vm6, %v12144_v39 }
0x1987   : > { %v5078_v59 = vpop.xlane.xlu1 %5077 }
0x1988   : > { %10575 = vrcp.f32 %v5078_v59 }
0x198b   : > { %v5081_v36 = vpop.xlane.xlu1 %5080 }
0x198c   : > { %10577 = vrcp.f32 %v5081_v36 }
0x198f   : > { %v5084_v5 = vpop.xlane.xlu1 %5083 }
0x1990   : > { %10579 = vrcp.f32 %v5084_v5 }
0x1992   : > { %v10576_v50 = vpop.eup %10575 }
0x1993   : > { %v5124_v14 = vmul.f32 %v10576_v50, %v10570_v4 }
0x1995   : > { %v5136_v22 = vmul.f32 %v11165_v49, %v5124_v14 }
0x1996   : > { %v10578_v31 = vpop.eup %10577 }
0x1997   : > { %v5125_v19 = vmul.f32 %v10578_v31, %v10572_v25 }
0x1999   : > { %v5137_v24 = vmul.f32 %v11163_v48, %v5125_v19 }
0x199a   : > { %v10580_v37 = vpop.eup %10579 }
0x199b   : > { %v10194_v21 = vpack.c.bf16 %v5137_v24, %v5136_v22  ;;  %v5126_v18 = vmul.f32 %v10580_v37, %v10574_v28 }
0x199d   : > { %10196 = vmatpush3.bf16.xpose.msk.msra.mxu0 %vm11171_vm8, %v10194_v21  ;;  %v5138_v35 = vmul.f32 %v5126_v18, %v11182_v62 }
0x199e   : > { %9658 = vmatprep.subr.mxu0 %v10761_v6 }
0x19a5   : > { %9659 = vmatpush3.xpose.msk.msra.mxu0 %vm982_vm6, %v5138_v35 }
0x19a6   : > { %10197 = vmatprep.subr.bf16.mxu0 %v10759_v3 }
0x19a8   : > { %9661 = vmatmul.mubr.msk.f32.vlgmr.msra.gmra.mrb[88].mxu0 %vm982_vm6, %v11913_v46  ;;  %v4306_v46 = vld [vmem:[%s12780_s1 + $0x1c0] sm:$0xff] }
0x19a9   : > { %10199 = vmatpush3.bf16.msra.mxu0 %v10194_v21  ;;  %9669 = vmatprep.mubr.msk.f32.mxu0 %vm10760_vm0, %v10761_v6 }
0x19aa   : > { %9667 = vmatprep.subr.mxu0 %v10761_v6 }
0x19ad   : > { %9668 = vmatpush3.msra.mxu0 %v5138_v35 }
0x19ae   : > { %9670 = vmatmul.mubr.msk.f32.vlgmr.msra.gmra.mrb[90].mxu0 %vm982_vm6, %v11904_v38  ;;  %10204 = vmatprep.subr.bf16.mxu0 %v10759_v3 }
0x19af   : > { %10206 = vmatpush3.bf16.msra.mxu0 %v12071_v17  ;;  %9687 = vmatprep.mubr.msk.f32.mxu0 %vm10760_vm0, %v10761_v6 }
0x19b0   : > { %9685 = vmatprep.subr.mxu0 %v10761_v6 }
0x19b3   : > { %9686 = vmatpush3.msra.mxu0 %v12080_v52  ;;  %v4308_v52 = vld [vmem:[%s12780_s1 + $0x1d0] sm:$0xff] }
0x19b4   : > { %9688 = vmatmul.mubr.msk.f32.vlgmr.msra.gmra.mrb[92].mxu0 %vm982_vm6, %v11901_v16  ;;  %10211 = vmatprep.subr.bf16.mxu0 %v10759_v3 }
0x19b5   : > { %10213 = vmatpush3.bf16.msra.mxu0 %v12089_v33  ;;  %9705 = vmatprep.mubr.msk.f32.mxu0 %vm10760_vm0, %v10761_v6  ;;  %v12205_v33 = vpack.c.bf16 %v4309_v12, %v4308_v52 }
0x19b6   : > { %9703 = vmatprep.subr.mxu0 %v10761_v6 }
0x19b9   : > { %9704 = vmatpush3.msra.mxu0 %v12103_v11 }
0x19ba   : > { %9706 = vmatmul.mubr.msk.f32.vlgmr.msra.gmra.mrb[94].mxu0 %vm982_vm6, %v11909_v27  ;;  %10214 = vmatprep.subr.bf16.mxu0 %v10759_v3  ;;  %v4307_v27 = vld [vmem:[%s12780_s1 + $0x1c8] sm:$0xff] }
0x19bb   : > { %9714 = vmatprep.mubr.msk.f32.mxu0 %vm10760_vm0, %v10761_v6  ;;  %v12194_v17 = vpack.c.bf16 %v4307_v27, %v4306_v46 }
0x19c0   : > { %v12182_v16 = vpop.f32.mrb[94].mxu1  ;;  %10217 = vmatpush3.bf16.xpose.msk.msra.mxu0 %vm11171_vm8, %v12111_v10 }
0x19c1   : > { %v9680_v38 = vpop.f32.mrb[95].mxu1  ;;  %9712 = vmatprep.subr.mxu0 %v10761_v6 }
0x19c8   : > { %9713 = vmatpush3.xpose.msk.msra.mxu0 %vm982_vm6, %v12122_v1 }
0x19c9   : > { %10226 = vmatprep.subr.bf16.mxu0 %v12194_v17 }
0x19cb   : > { %9715 = vmatmul.mubr.msk.f32.vlgmr.msra.gmra.mrb[96].mxu0 %vm982_vm6, %v11920_v51 }
0x19cc   : > { %10228 = vmatpush3.bf16.msra.mxu0 %v12194_v17 }
0x19cd   : > { %v12210_v34 = vpop.f32.mrb[96].mxu1  ;;  %10230 = vmatprep.subr.bf16.mxu0 %v12205_v33 }
0x19ce   : > { %v9698_v63 = vpop.f32.mrb[97].mxu1 }
0x19d0   : > { %10232 = vmatpush3.bf16.msra.mxu0 %v12205_v33 }
0x19d1   : > { %10241 = vmatprep.subr.bf16.mxu0 %v10759_v3 }
0x19d3   : > { %v12215_v58 = vpop.f32.mrb[98].mxu1 }
0x19d4   : > { %v9725_v23 = vpop.f32.mrb[99].mxu1 }
0x19de   : > { %v9734_v43 = vpop.f32.mrb[100].mxu1 }
0x19df   : > { %v5878_v56 = vpop.f32.mrb[101].mxu1 }
0x19e0   : > { %9746 = vmatprep.mubr.msk.f32.mxu0 %vm290_vm2, %v5878_v56  ;;  %v4310_v56 = vld [vmem:[%s12780_s1 + $0x1e0] sm:$0xff] }
0x19e1   : > { %9747 = vmatmul.mubr.msk.f32.vlgmr.msra.gmra.mrb[98].mxu0 %vm290_vm2, %v9734_v43 }
0x19e6   : > { %v9737_v51 = vpop.f32.mrb[102].mxu1 }
0x19e7   : > { %v5888_v47 = vpop.f32.mrb[103].mxu1 }
0x19e8   : > { %9749 = vmatprep.mubr.msk.f32.mxu0 %vm290_vm2, %v5888_v47 }
0x19e9   : > { %9750 = vmatmul.mubr.msk.f32.gmra.mrb[100].mxu0 %vm290_vm2, %v9737_v51  ;;  %v4311_v51 = vld [vmem:[%s12780_s1 + $0x1e8] sm:$0xff] }
0x19ea   : > { %9774 = vmatprep.mubr.msk.f32.mxu0 %vm10760_vm0, %v10761_v6  ;;  %v12237_v47 = vpack.c.bf16 %v4311_v51, %v4310_v56 }
0x19ec   : > { %10234 = vmatprep.subr.bf16.mxu1 %v12237_v47 }
0x19ed   : > { %10236 = vmatpush3.bf16.msra.mxu1 %v12237_v47 }
0x1a7b   : > { %v5226_v9 = vpop.f32.mrb[88].mxu0 }
0x1a7c   : > { %v9662_v13 = vpop.f32.mrb[89].mxu0 }
0x1a7d   : > { %v4312_v13 = vld [vmem:[%s12780_s1 + $0x1f0] sm:$0xff] }
0x1a81   : > { %v5299_v2 = vpop.f32.mrb[90].mxu0 }
0x1a82   : > { %v9671_v40 = vpop.f32.mrb[91].mxu0 }
0x1a83   : > { %v4313_v40 = vld [vmem:[%s12780_s1 + $0x1f8] sm:$0xff] }
0x1a87   : > { %v5454_v11 = vpop.f32.mrb[92].mxu0 }
0x1a88   : > { %v9689_v53 = vpop.f32.mrb[93].mxu0 }
0x1a89   : > { %v12247_v53 = vpack.c.bf16 %v4313_v40, %v4312_v13 }
0x1a8b   : > { %10238 = vmatprep.subr.bf16.mxu1 %v12247_v53 }
0x1a8c   : > { %10240 = vmatpush3.bf16.msra.mxu1 %v12247_v53 }
0x1a8d   : > { %v5609_v57 = vpop.f32.mrb[94].mxu0  ;;  %10247 = vmatprep.subr.bf16.mxu1 %v10759_v3 }
0x1a8e   : > { %v9707_v30 = vpop.f32.mrb[95].mxu0 }
0x1a9e   : > { %v5691_v4 = vpop.f32.mrb[96].mxu0 }
0x1a9f   : > { %v9716_v0 = vpop.f32.mrb[97].mxu0 }
0x1ab4   : > { %v9748_v10 = vpop.f32.mrb[98].mxu0 }
0x1ab5   : > { %v5975_v29 = vpop.f32.mrb[99].mxu0  ;;  %v5997_v25 = vsel %vm290_vm2, %v9748_v10, -inf }
0x1ab6   : > { %5998 = vmax.xlane.f32.xlu1 %v5997_v25  ;;  %v5994_v41 = vsel %vm290_vm2, %v5975_v29, -inf }
0x1aba   : > { %5995 = vmax.xlane.f32.xlu1 %v5994_v41 }
0x1abc   : > { %v9751_v1 = vpop.f32.mrb[100].mxu0 }
0x1abd   : > { %v5985_v28 = vpop.f32.mrb[101].mxu0  ;;  %v6003_v59 = vsel %vm290_vm2, %v9751_v1, -inf }
0x1abe   : > { %v6000_v54 = vsel %vm290_vm2, %v5985_v28, -inf }
0x1abf   : > { %6001 = vmax.xlane.f32.xlu1 %v6000_v54  ;;  %v4301_v54 = vld [vmem:[%s12780_s1 + $0x198] sm:$0xff] }
0x1ac3   : > { %6004 = vmax.xlane.f32.xlu1 %v6003_v59 }
0x1b43   : > { %v5999_v36 = vpop.xlane.xlu1 %5998 }
0x1b44   : > { %v6007_v5 = vsub.f32 %v9748_v10, %v5999_v36  ;;  %v4302_v36 = vld [vmem:[%s12780_s1 + $0x1a0] sm:$0xff] }
0x1b46   : > { %v6012_v50 = vmul.f32 1.442695, %v6007_v5  ;;  %v4303_v5 = vld [vmem:[%s12780_s1 + $0x1a8] sm:$0xff] }
0x1b47   : > { %v5996_v14 = vpop.xlane.xlu1 %5995 }
0x1b48   : > { %10581 = vpow2.f32 %v6012_v50  ;;  %v6006_v31 = vsub.f32 %v5975_v29, %v5996_v14  ;;  %v12287_v50 = vpack.c.bf16 %v4303_v5, %v4302_v36  ;;  %v4304_v14 = vld [vmem:[%s12780_s1 + $0x1b0] sm:$0xff] }
0x1b4a   : > { %v6010_v19 = vmul.f32 1.442695, %v6006_v31  ;;  %v4305_v31 = vld [vmem:[%s12780_s1 + $0x1b8] sm:$0xff] }
0x1b4c   : > { %10583 = vpow2.f32 %v6010_v19  ;;  %v6002_v22 = vpop.xlane.xlu1 %6001  ;;  %v12297_v19 = vpack.c.bf16 %v4305_v31, %v4304_v14 }
0x1b4d   : > { %v6008_v24 = vsub.f32 %v5985_v28, %v6002_v22  ;;  %v4300_v28 = vld [vmem:[%s12780_s1 + $0x190] sm:$0xff] }
0x1b4e   : > { %v12277_v59 = vpack.c.bf16 %v4301_v54, %v4300_v28 }
0x1b4f   : > { %v6014_v21 = vmul.f32 1.442695, %v6008_v24 }
0x1b50   : > { %v6005_v37 = vpop.xlane.xlu1 %6004 }
0x1b51   : > { %10585 = vpow2.f32 %v6014_v21  ;;  %v6009_v18 = vsub.f32 %v9751_v1, %v6005_v37 }
0x1b52   : > { %v10582_v35 = vpop.eup %10581 }
0x1b53   : > { %v6016_v38 = vmul.f32 1.442695, %v6009_v18  ;;  %v6021_v46 = vsel %vm290_vm2, %v10582_v35, 0.0 }
0x1b54   : > { %6022 = vadd.xlane.f32.xlu1 %v6021_v46 }
0x1b55   : > { %10587 = vpow2.f32 %v6016_v38 }
0x1b56   : > { %v10584_v27 = vpop.eup %10583 }
0x1b57   : > { %v6018_v52 = vsel %vm290_vm2, %v10584_v27, 0.0 }
0x1b58   : > { %6019 = vadd.xlane.f32.xlu1 %v6018_v52  ;;  %v10682_v52 = vld [vmem:[%s12780_s1 + $0x140] sm:$0xff] }
0x1b5b   : > { %v10586_v12 = vpop.eup %10585 }
0x1b5c   : > { %v6024_v63 = vsel %vm290_vm2, %v10586_v12, 0.0 }
0x1b5d   : > { %6025 = vadd.xlane.f32.xlu1 %v6024_v63 }
0x1b5f   : > { %v10588_v23 = vpop.eup %10587 }
0x1b60   : > { %v6027_v43 = vsel %vm290_vm2, %v10588_v23, 0.0 }
0x1b61   : > { %6028 = vadd.xlane.f32.xlu0 %v6027_v43 }
0x1b90   : > { %6224 = vxpose.xlu1.b32.start [1/8] (short) (narrow) %v5226_v9, 24  ;;  %v4298_v9 = vld [vmem:[%s12780_s1 + $0x180] sm:$0xff] }
0x1b94   : > { %6225 = vxpose.xlu1.b32.cont [2/8] (short) (narrow) %v12182_v16, 24  ;;  %v4299_v16 = vld [vmem:[%s12780_s1 + $0x188] sm:$0xff] }
0x1b98   : > { %6226 = vxpose.xlu1.b32.cont [3/8] (short) (narrow) %v12210_v34, 24 }
0x1b9c   : > { %6227 = vxpose.xlu1.b32.cont [4/8] (short) (narrow) %v5691_v4, 24 }
0x1ba0   : > { %6228 = vxpose.xlu1.b32.cont [5/8] (short) (narrow) %v5299_v2, 24 }
0x1ba4   : > { %6229 = vxpose.xlu1.b32.cont [6/8] (short) (narrow) %v5454_v11, 24 }
0x1ba8   : > { %6230 = vxpose.xlu1.b32.cont [7/8] (short) (narrow) %v5609_v57, 24 }
0x1bac   : > { %6231 = vxpose.xlu1.b32.end [8/8] (short) (narrow) %v12215_v58, 24  ;;  %v12261_v58 = vpack.c.bf16 %v4299_v16, %v4298_v9 }
0x1be1   : > { %v6023_v30 = vpop.xlane.xlu1 %6022 }
0x1be2   : > { %10589 = vrcp.f32 %v6023_v30 }
0x1be5   : > { %v6020_v0 = vpop.xlane.xlu1 %6019 }
0x1be6   : > { %10591 = vrcp.f32 %v6020_v0 }
0x1bea   : > { %v6026_v10 = vpop.xlane.xlu1 %6025 }
0x1beb   : > { %10593 = vrcp.f32 %v6026_v10 }
0x1bec   : > { %v10590_v34 = vpop.eup %10589 }
0x1bed   : > { %v6035_v57 = vmul.f32 %v10590_v34, %v10582_v35 }
0x1bee   : > { %v6029_v29 = vpop.xlane.xlu0 %6028 }
0x1bef   : > { %10595 = vrcp.f32 %v6029_v29 }
0x1bf0   : > { %v10592_v2 = vpop.eup %10591 }
0x1bf1   : > { %v6034_v11 = vmul.f32 %v10592_v2, %v10584_v27 }
0x1bf3   : > { %9760 = vmatprep.mubr.msk.f32.mxu1 %vm290_vm2, %v6034_v11 }
0x1bf4   : > { %9761 = vmatmul.mubr.msk.f32.vlgmr.msra.gmra.mrb[104].mxu1 %vm290_vm2, %v6035_v57 }
0x1bf5   : > { %v10594_v4 = vpop.eup %10593  ;;  %10249 = vmatpush3.bf16.msra.mxu1 %v12261_v58 }
0x1bf6   : > { %v6036_v25 = vmul.f32 %v10594_v4, %v10586_v12  ;;  %10250 = vmatprep.subr.bf16.mxu1 %v10759_v3 }
0x1bf8   : > { %9763 = vmatprep.mubr.msk.f32.mxu1 %vm290_vm2, %v6036_v25 }
0x1bf9   : > { %v10596_v41 = vpop.eup %10595  ;;  %10252 = vmatpush3.bf16.msra.mxu1 %v12277_v59 }
0x1bfa   : > { %v6037_v1 = vmul.f32 %v10596_v41, %v10588_v23  ;;  %10253 = vmatprep.subr.bf16.mxu1 %v10759_v3 }
0x1bfc   : > { %9764 = vmatmul.mubr.msk.f32.gmra.mrb[106].mxu1 %vm290_vm2, %v6037_v1 }
0x1bfd   : > { %9799 = vmatprep.mubr.msk.f32.mxu1 %vm10760_vm0, %v10761_v6  ;;  %10255 = vmatpush3.bf16.msra.mxu1 %v12287_v50 }
0x1bfe   : > { %10256 = vmatprep.subr.bf16.mxu1 %v10759_v3 }
0x1c01   : > { %10258 = vmatpush3.bf16.msra.mxu1 %v12297_v19 }
0x1c02   : > { %9826 = vmatprep.subr.mxu1 %v10761_v6 }
0x1c10   : > { %v6240_v22 = vpop.trf.xlu1 }
0x1c11   : > { %9800 = vmatmul.mubr.msk.f32.vlgmr.msra.gmra.mrb[108].mxu1 %vm155_vm1, %v6240_v22 }
0x1c12   : > { %9802 = vmatprep.mubr.msk.f32.mxu1 %vm10760_vm0, %v10761_v6 }
0x1c14   : > { %v6241_v24 = vpop.trf.xlu1 }
0x1c15   : > { %9803 = vmatmul.mubr.msk.f32.gmra.mrb[110].mxu1 %vm155_vm1, %v6241_v24 }
0x1c16   : > { %9805 = vmatprep.mubr.msk.f32.mxu1 %vm10760_vm0, %v10761_v6 }
0x1c18   : > { %v6242_v21 = vpop.trf.xlu1 }
0x1c19   : > { %9806 = vmatmul.mubr.msk.f32.gmra.mrb[112].mxu1 %vm155_vm1, %v6242_v21 }
0x1c1a   : > { %9828 = vmatprep.mubr.msk.f32.mxu1 %vm10760_vm0, %v10761_v6 }
0x1cc7   : > { %v9762_v37 = vpop.f32.mrb[104].mxu1 }
0x1cc8   : > { %v6116_v18 = vpop.f32.mrb[105].mxu1 }
0x1cc9   : > { %v10242_v35 = vpack.c.bf16 %v9762_v37, %v6116_v18 }
0x1ccb   : > { %10243 = vmatpush3.bf16.msra.mxu0 %v10242_v35 }
0x1ccc   : > { %10244 = vmatprep.subr.bf16.mxu0 %v10759_v3 }
0x1ccf   : > { %v9765_v38 = vpop.f32.mrb[106].mxu1 }
0x1cd0   : > { %v6126_v46 = vpop.f32.mrb[107].mxu1 }
0x1cd1   : > { %v10245_v27 = vpack.c.bf16 %v9765_v38, %v6126_v46 }
0x1cd3   : > { %10246 = vmatpush3.bf16.msra.mxu0 %v10245_v27 }
0x1cd6   : > { %9775 = vmatmul.mubr.msk.f32.vlgmr.msra.gmra.mrb[102].mxu0 %vm290_vm2, %v12052_v26 }
0x1cd7   : > { %9777 = vmatprep.mubr.msk.f32.mxu0 %vm10760_vm0, %v10761_v6 }
0x1cda   : > { %9778 = vmatmul.mubr.msk.f32.gmra.mrb[104].mxu0 %vm290_vm2, %v12058_v61 }
0x1cdb   : > { %9780 = vmatprep.mubr.msk.f32.mxu0 %vm10760_vm0, %v10761_v6 }
0x1cde   : > { %9781 = vmatmul.mubr.msk.f32.gmra.mrb[106].mxu0 %vm290_vm2, %v12064_v44 }
0x1cdf   : > { %9814 = vmatprep.mubr.msk.f32.mxu0 %vm290_vm2, %v10682_v52 }
0x1ce4   : > { %v6331_v12 = vpop.f32.mrb[108].mxu1 }
0x1ce5   : > { %v9801_v26 = vpop.f32.mrb[109].mxu1 }
0x1ce8   : > { %v6336_v63 = vpop.f32.mrb[110].mxu1 }
0x1ce9   : > { %v9804_v23 = vpop.f32.mrb[111].mxu1 }
0x1cec   : > { %v6341_v43 = vpop.f32.mrb[112].mxu1 }
0x1ced   : > { %v9807_v56 = vpop.f32.mrb[113].mxu1 }
0x1da9   : > { %v6210_v51 = vpop.f32.mrb[102].mxu0 }
0x1daa   : > { %v6332_v61 = vadd.f32 %v6331_v12, %v6210_v51  ;;  %v9776_v13 = vpop.f32.mrb[103].mxu0 }
0x1dac   : > { %v12326_v40 = vadd.f32 %v6332_v61, %v11826_v32 }
0x1dad   : > { %v6215_v30 = vpop.f32.mrb[104].mxu0 }
0x1dae   : > { %v6337_v44 = vadd.f32 %v6336_v63, %v6215_v30  ;;  %v9779_v0 = vpop.f32.mrb[105].mxu0  ;;  %v6348_v10 = vsel %vm290_vm2, %v12326_v40, 0.0  ;;  %v10683_v63 = vld [vmem:[%s12780_s1 + $0x138] ss:$0 sm:$0xff]  ;;  %v10684_v30 = vld [vmem:[%s12780_s1 + $0x139] ss:$0 sm:$0xff] }
0x1daf   : > { %6349 = vadd.xlane.f32.xlu0 %v6348_v10 }
0x1db0   : > { %v6346_v29 = vadd.f32 %v6337_v44, %v11831_v45 }
0x1db1   : > { %v6220_v9 = vpop.f32.mrb[106].mxu0 }
0x1db2   : > { %v6342_v16 = vadd.f32 %v6341_v43, %v6220_v9  ;;  %v6351_v34 = vsel %vm290_vm2, %v6346_v29, 0.0  ;;  %v9782_v2 = vpop.f32.mrb[107].mxu0 }
0x1db3   : > { %6352 = vadd.xlane.f32.xlu0 %v6351_v34  ;;  %v10685_v34 = vld [vmem:[%s12780_s1 + $0x148] sm:$0xff]  ;;  %v10686_v2 = vld [vmem:[%s12780_s1 + $0x150] sm:$0xff] }
0x1db4   : > { %v6347_v11 = vadd.f32 %v6342_v16, %v11836_v15 }
0x1db6   : > { %v6354_v32 = vsel %vm290_vm2, %v6347_v11, 0.0 }
0x1db7   : > { %6355 = vadd.xlane.f32.xlu0 %v6354_v32  ;;  %v10688_v32 = vld [vmem:[%s12780_s1 + $0x160] sm:$0xff] }
0x1e3c   : > { %v6350_v57 = vpop.xlane.xlu0 %6349 }
0x1e3d   : > { %v6357_v4 = vmul.f32 0.03125, %v6350_v57  ;;  %v10689_v57 = vld [vmem:[%s12780_s1 + $0x168] sm:$0xff] }
0x1e3f   : > { %v6360_v25 = vsub.f32 %v12326_v40, %v6357_v4  ;;  %v10690_v4 = vld [vmem:[%s12780_s1 + $0x170] sm:$0xff] }
0x1e40   : > { %v6353_v41 = vpop.xlane.xlu0 %6352 }
0x1e41   : > { %v6358_v1 = vmul.f32 0.03125, %v6353_v41  ;;  %v6363_v28 = vmul.f32 %v6360_v25, %v6360_v25  ;;  %v6378_v23 = vmul.f32 %v10683_v63, %v6360_v25  ;;  %v10691_v25 = vld [vmem:[%s12780_s1 + $0x178] sm:$0xff] }
0x1e43   : > { %v6361_v54 = vsub.f32 %v6346_v29, %v6358_v1  ;;  %v6366_v45 = vsel %vm290_vm2, %v6363_v28, 0.0 }
0x1e44   : > { %6367 = vadd.xlane.f32.xlu0 %v6366_v45  ;;  %v6356_v36 = vpop.xlane.xlu0 %6355 }
0x1e45   : > { %v6359_v5 = vmul.f32 0.03125, %v6356_v36  ;;  %v6364_v14 = vmul.f32 %v6361_v54, %v6361_v54  ;;  %v6379_v43 = vmul.f32 %v10683_v63, %v6361_v54 }
0x1e47   : > { %v6362_v31 = vsub.f32 %v6347_v11, %v6359_v5  ;;  %v6369_v15 = vsel %vm290_vm2, %v6364_v14, 0.0  ;;  %v10687_v11 = vld [vmem:[%s12780_s1 + $0x158] sm:$0xff] }
0x1e48   : > { %6370 = vadd.xlane.f32.xlu0 %v6369_v15 }
0x1e49   : > { %v6365_v22 = vmul.f32 %v6362_v31, %v6362_v31  ;;  %v6380_v13 = vmul.f32 %v10683_v63, %v6362_v31 }
0x1e4b   : > { %v6372_v24 = vsel %vm290_vm2, %v6365_v22, 0.0 }
0x1e4c   : > { %6373 = vadd.xlane.f32.xlu0 %v6372_v24 }
0x1ed1   : > { %v6368_v21 = vpop.xlane.xlu0 %6367 }
0x1ed2   : > { %v6375_v37 = vmul.f32 0.03125, %v6368_v21 }
0x1ed4   : > { %v6381_v18 = vadd.f32 1e-05, %v6375_v37 }
0x1ed5   : > { %v6371_v35 = vpop.xlane.xlu0 %6370 }
0x1ed6   : > { %10597 = vrsqrt.f32 %v6381_v18  ;;  %v6376_v38 = vmul.f32 0.03125, %v6371_v35 }
0x1ed8   : > { %v6382_v46 = vadd.f32 1e-05, %v6376_v38 }
0x1ed9   : > { %v6374_v27 = vpop.xlane.xlu0 %6373 }
0x1eda   : > { %10599 = vrsqrt.f32 %v6382_v46  ;;  %v6377_v52 = vmul.f32 0.03125, %v6374_v27 }
0x1edc   : > { %v6383_v12 = vadd.f32 1e-05, %v6377_v52 }
0x1ede   : > { %10601 = vrsqrt.f32 %v6383_v12 }
0x1ee0   : > { %v10598_v26 = vpop.eup %10597 }
0x1ee1   : > { %v6387_v56 = vmul.f32 %v10598_v26, %v6378_v23 }
0x1ee3   : > { %v6390_v44 = vadd.f32 %v10684_v30, %v6387_v56 }
0x1ee4   : > { %v10600_v51 = vpop.eup %10599 }
0x1ee5   : > { %v6388_v61 = vmul.f32 %v10600_v51, %v6379_v43 }
0x1ee7   : > { %v6391_v0 = vadd.f32 %v10684_v30, %v6388_v61 }
0x1ee8   : > { %v10602_v10 = vpop.eup %10601 }
0x1ee9   : > { %v12344_v29 = vpack.c.bf16 %v6391_v0, %v6390_v44  ;;  %v6389_v9 = vmul.f32 %v10602_v10, %v6380_v13 }
0x1eeb   : > { %10261 = vmatprep.subr.msk.bf16.mxu0 %vm10912_vm3, %v12344_v29  ;;  %v12349_v16 = vadd.f32 %v10684_v30, %v6389_v9 }
0x1eec   : > { %10264 = vmatpush3.bf16.xpose.msk.msra.mxu0 %vm10912_vm3, %v12344_v29 }
0x1eed   : > { %9812 = vmatprep.subr.msk.mxu0 %vm290_vm2, %v12349_v16 }
0x1ef4   : > { %9813 = vmatpush3.xpose.msk.msra.mxu0 %vm290_vm2, %v12349_v16 }
0x1ef5   : > { %9837 = vmatprep.subr.mxu0 %v10761_v6 }
0x1ef7   : > { %9815 = vmatmul.mubr.msk.f32.vlgmr.msra.gmra.mrb[108].mxu0 %vm290_vm2, %v10685_v34 }
0x1ef8   : > { %9817 = vmatprep.mubr.msk.f32.mxu0 %vm290_vm2, %v10686_v2 }
0x1efb   : > { %9818 = vmatmul.mubr.msk.f32.gmra.mrb[110].mxu0 %vm290_vm2, %v10687_v11 }
0x1efc   : > { %9820 = vmatprep.mubr.msk.f32.mxu0 %vm290_vm2, %v10688_v32 }
0x1eff   : > { %9821 = vmatmul.mubr.msk.f32.gmra.mrb[112].mxu0 %vm290_vm2, %v10689_v57 }
0x1f00   : > { %9823 = vmatprep.mubr.msk.f32.mxu0 %vm290_vm2, %v10690_v4 }
0x1f03   : > { %9824 = vmatmul.mubr.msk.f32.gmra.mrb[114].mxu0 %vm290_vm2, %v10691_v25 }
0x1f04   : > { %9839 = vmatprep.mubr.msk.f32.mxu0 %vm10760_vm0, %v10761_v6 }
0x1fca   : > { %v12389_v41 = vpop.f32.mrb[108].mxu0 }
0x1fcb   : > { %6628 = vxpose.xlu1.b32.start.end [1/1] (short) (narrow) %v12389_v41, 24  ;;  %v12392_v1 = vpop.f32.mrb[109].mxu0 }
0x1fcc   : > { %6507 = vxpose.xlu0.b32.start.end [1/1] (short) (narrow) %v12392_v1, 24 }
0x1fce   : > { %v12395_v28 = vpop.f32.mrb[110].mxu0 }
0x1fcf   : > { %v12397_v54 = vpop.f32.mrb[111].mxu0 }
0x1fd2   : > { %v12399_v45 = vpop.f32.mrb[112].mxu0 }
0x1fd3   : > { %v12401_v36 = vpop.f32.mrb[113].mxu0  ;;  %9838 = vmatpush3.msra.mxu0 %v12399_v45 }
0x1fd4   : > { %6749 = vxpose.xlu1.b32.start.end [1/1] (short) (narrow) %v12397_v54, 24  ;;  %9827 = vmatpush3.msra.mxu1 %v12401_v36 }
0x1fd5   : > { %9848 = vmatprep.subr.mxu1 %v10761_v6  ;;  %9859 = vmatprep.subr.mxu0 %v10761_v6 }
0x1fd6   : > { %v12408_v5 = vpop.f32.mrb[114].mxu0 }
0x1fd7   : > { %v12410_v14 = vpop.f32.mrb[115].mxu0 }
0x1fdd   : > { %6870 = vxpose.xlu1.b32.start.end [1/1] (short) (narrow) %v12395_v28, 24 }
0x204b   : > { %v6644_v31 = vpop.trf.xlu1 }
0x204c   : > { %v6523_v15 = vpop.trf.xlu0  ;;  %9840 = vmatmul.mubr.msk.f32.vlgmr.msra.gmra.mrb[116].mxu0 %vm515_vm4, %v6644_v31 }
0x204d   : > { %9829 = vmatmul.mubr.msk.f32.vlgmr.msra.gmra.mrb[114].mxu1 %vm515_vm4, %v6523_v15  ;;  %9842 = vmatprep.mubr.msk.f32.mxu0 %vm10760_vm0, %v10761_v6 }
0x204e   : > { %9831 = vmatprep.mubr.msk.f32.mxu1 %vm10760_vm0, %v10761_v6  ;;  %9849 = vmatpush3.msra.mxu1 %v12410_v14 }
0x204f   : > { %v6645_v22 = vpop.trf.xlu1  ;;  %9860 = vmatpush3.msra.mxu0 %v12408_v5  ;;  %10265 = vmatprep.subr.bf16.mxu1 %v10759_v3 }
0x2050   : > { %v6524_v24 = vpop.trf.xlu0  ;;  %9843 = vmatmul.mubr.msk.f32.gmra.mrb[118].mxu0 %vm515_vm4, %v6645_v22  ;;  %10272 = vmatprep.subr.bf16.mxu0 %v10759_v3 }
0x2051   : > { %9832 = vmatmul.mubr.msk.f32.gmra.mrb[116].mxu1 %vm515_vm4, %v6524_v24  ;;  %9845 = vmatprep.mubr.msk.f32.mxu0 %vm10760_vm0, %v10761_v6 }
0x2052   : > { %9834 = vmatprep.mubr.msk.f32.mxu1 %vm10760_vm0, %v10761_v6 }
0x2053   : > { %v6646_v21 = vpop.trf.xlu1 }
0x2054   : > { %v6525_v37 = vpop.trf.xlu0  ;;  %9846 = vmatmul.mubr.msk.f32.gmra.mrb[120].mxu0 %vm515_vm4, %v6646_v21 }
0x2055   : > { %9835 = vmatmul.mubr.msk.f32.gmra.mrb[118].mxu1 %vm515_vm4, %v6525_v37  ;;  %9861 = vmatprep.mubr.msk.f32.mxu0 %vm10760_vm0, %v10761_v6 }
0x2056   : > { %9850 = vmatprep.mubr.msk.f32.mxu1 %vm10760_vm0, %v10761_v6 }
0x2057   : > { %v6765_v18 = vpop.trf.xlu1 }
0x2059   : > { %9851 = vmatmul.mubr.msk.f32.vlgmr.msra.gmra.mrb[120].mxu1 %vm515_vm4, %v6765_v18 }
0x205a   : > { %9853 = vmatprep.mubr.msk.f32.mxu1 %vm10760_vm0, %v10761_v6 }
0x205b   : > { %v6766_v35 = vpop.trf.xlu1 }
0x205d   : > { %9854 = vmatmul.mubr.msk.f32.gmra.mrb[122].mxu1 %vm515_vm4, %v6766_v35 }
0x205e   : > { %9856 = vmatprep.mubr.msk.f32.mxu1 %vm10760_vm0, %v10761_v6 }
0x205f   : > { %v6767_v38 = vpop.trf.xlu1 }
0x2061   : > { %9857 = vmatmul.mubr.msk.f32.gmra.mrb[124].mxu1 %vm515_vm4, %v6767_v38 }
0x2062   : > { %9876 = vmatprep.mubr.msk.f32.mxu1 %vm10760_vm0, %v10761_v6 }
0x2063   : > { %v6886_v46 = vpop.trf.xlu1 }
0x2064   : > { %9862 = vmatmul.mubr.msk.f32.vlgmr.msra.gmra.mrb[122].mxu0 %vm515_vm4, %v6886_v46 }
0x2065   : > { %9864 = vmatprep.mubr.msk.f32.mxu0 %vm10760_vm0, %v10761_v6 }
0x2067   : > { %v6887_v27 = vpop.trf.xlu1 }
0x2068   : > { %9865 = vmatmul.mubr.msk.f32.gmra.mrb[124].mxu0 %vm515_vm4, %v6887_v27 }
0x2069   : > { %9867 = vmatprep.mubr.msk.f32.mxu0 %vm10760_vm0, %v10761_v6 }
0x206b   : > { %v6888_v52 = vpop.trf.xlu1 }
0x206c   : > { %9868 = vmatmul.mubr.msk.f32.gmra.mrb[126].mxu0 %vm515_vm4, %v6888_v52 }
0x206d   : > { %9894 = vmatprep.mubr.msk.f32.mxu0 %vm10760_vm0, %v10761_v6 }
0x211f   : > { %v6735_v12 = vpop.f32.mrb[116].mxu0 }
0x2120   : > { %v6994_v26 = vsel %vm247_vm5, %v6735_v12, -1e+30  ;;  %v9841_v63 = vpop.f32.mrb[117].mxu0  ;;  %v12455_v23 = vpop.f32.mrb[114].mxu1 }
0x2121   : > { %v7012_v43 = vsel %vm982_vm6, %v6994_v26, -inf  ;;  %v9830_v56 = vpop.f32.mrb[115].mxu1 }
0x2122   : > { %7013 = vmax.xlane.f32.xlu1 %v7012_v43 }
0x2123   : > { %v6740_v51 = vpop.f32.mrb[118].mxu0 }
0x2124   : > { %v6995_v61 = vsel %vm247_vm5, %v6740_v51, -1e+30  ;;  %v9844_v13 = vpop.f32.mrb[119].mxu0  ;;  %v12460_v30 = vpop.f32.mrb[116].mxu1 }
0x2125   : > { %v7015_v44 = vsel %vm982_vm6, %v6995_v61, -inf  ;;  %v9833_v0 = vpop.f32.mrb[117].mxu1 }
0x2126   : > { %7016 = vmax.xlane.f32.xlu0 %v7015_v44 }
0x2127   : > { %v6745_v10 = vpop.f32.mrb[120].mxu0 }
0x2128   : > { %v6996_v9 = vsel %vm247_vm5, %v6745_v10, -1e+30  ;;  %v9847_v34 = vpop.f32.mrb[121].mxu0  ;;  %v12465_v2 = vpop.f32.mrb[118].mxu1 }
0x2129   : > { %v7018_v11 = vsel %vm982_vm6, %v6996_v9, -inf  ;;  %v9836_v32 = vpop.f32.mrb[119].mxu1 }
0x212a   : > { %7019 = vmax.xlane.f32.xlu1 %v7018_v11 }
0x212c   : > { %v6856_v57 = vpop.f32.mrb[120].mxu1 }
0x212d   : > { %v6997_v4 = vsel %vm247_vm5, %v6856_v57, -1e+30  ;;  %v9852_v25 = vpop.f32.mrb[121].mxu1 }
0x212e   : > { %v7021_v31 = vsel %vm982_vm6, %v6997_v4, -inf }
0x212f   : > { %7022 = vmax.xlane.f32.xlu1 %v7021_v31 }
0x2130   : > { %v6861_v15 = vpop.f32.mrb[122].mxu1 }
0x2131   : > { %v6998_v22 = vsel %vm247_vm5, %v6861_v15, -1e+30  ;;  %v9855_v24 = vpop.f32.mrb[123].mxu1 }
0x2132   : > { %v7024_v21 = vsel %vm982_vm6, %v6998_v22, -inf }
0x2133   : > { %7025 = vmax.xlane.f32.xlu1 %v7024_v21 }
0x2134   : > { %v6866_v37 = vpop.f32.mrb[124].mxu1 }
0x2135   : > { %v9858_v18 = vpop.f32.mrb[125].mxu1  ;;  %v6999_v52 = vsel %vm247_vm5, %v6866_v37, -1e+30 }
0x2136   : > { %v7027_v56 = vsel %vm982_vm6, %v6999_v52, -inf }
0x2137   : > { %v6977_v35 = vpop.f32.mrb[122].mxu0 }
0x2138   : > { %v7000_v38 = vsel %vm247_vm5, %v6977_v35, -1e+30  ;;  %v9863_v46 = vpop.f32.mrb[123].mxu0 }
0x2139   : > { %v7030_v27 = vsel %vm982_vm6, %v7000_v38, -inf }
0x213a   : > { %7031 = vmax.xlane.f32.xlu1 %v7030_v27 }
0x213b   : > { %v6982_v12 = vpop.f32.mrb[124].mxu0 }
0x213c   : > { %v7001_v63 = vsel %vm247_vm5, %v6982_v12, -1e+30  ;;  %v9866_v43 = vpop.f32.mrb[125].mxu0 }
0x213d   : > { %v7033_v51 = vsel %vm982_vm6, %v7001_v63, -inf }
0x213e   : > { %7028 = vmax.xlane.f32.xlu1 %v7027_v56 }
0x213f   : > { %v6987_v13 = vpop.f32.mrb[126].mxu0 }
0x2140   : > { %v7002_v44 = vsel %vm247_vm5, %v6987_v13, -1e+30  ;;  %v9869_v0 = vpop.f32.mrb[127].mxu0 }
0x2141   : > { %v7036_v10 = vsel %vm982_vm6, %v7002_v44, -inf }
0x2142   : > { %7037 = vmax.xlane.f32.xlu0 %v7036_v10  ;;  %7034 = vmax.xlane.f32.xlu1 %v7033_v51 }
0x21af   : > { %v7014_v34 = vpop.xlane.xlu1 %7013 }
0x21b0   : > { %v7042_v11 = vsub.f32 %v6994_v26, %v7014_v34 }
0x21b2   : > { %v7057_v32 = vmul.f32 1.442695, %v7042_v11 }
0x21b3   : > { %v7017_v57 = vpop.xlane.xlu0 %7016 }
0x21b4   : > { %10603 = vpow2.f32 %v7057_v32  ;;  %v7043_v25 = vsub.f32 %v6995_v61, %v7017_v57 }
0x21b6   : > { %v7059_v31 = vmul.f32 1.442695, %v7043_v25 }
0x21b7   : > { %v7020_v15 = vpop.xlane.xlu1 %7019 }
0x21b8   : > { %10605 = vpow2.f32 %v7059_v31  ;;  %v7044_v24 = vsub.f32 %v6996_v9, %v7020_v15 }
0x21ba   : > { %v7061_v21 = vmul.f32 1.442695, %v7044_v24 }
0x21bc   : > { %10607 = vpow2.f32 %v7061_v21  ;;  %v7023_v37 = vpop.xlane.xlu1 %7022 }
0x21bd   : > { %v7045_v18 = vsub.f32 %v6997_v4, %v7023_v37 }
0x21be   : > { %v12486_v35 = vpop.eup %10603 }
0x21bf   : > { %v7063_v46 = vmul.f32 1.442695, %v7045_v18  ;;  %v7084_v27 = vsel %vm982_vm6, %v12486_v35, 0.0 }
0x21c0   : > { %v7026_v12 = vpop.xlane.xlu1 %7025  ;;  %7085 = vadd.xlane.f32.xlu1 %v7084_v27 }
0x21c1   : > { %10609 = vpow2.f32 %v7063_v46  ;;  %v7046_v26 = vsub.f32 %v6998_v22, %v7026_v12 }
0x21c2   : > { %v10606_v43 = vpop.eup %10605 }
0x21c3   : > { %v7065_v61 = vmul.f32 1.442695, %v7046_v26  ;;  %v7087_v56 = vsel %vm982_vm6, %v10606_v43, 0.0  ;;  %v6992_v26 = vsel %vm247_vm5, %v12460_v30, -1e+30 }
0x21c4   : > { %7088 = vadd.xlane.f32.xlu0 %v7087_v56  ;;  %v6991_v56 = vsel %vm247_vm5, %v12455_v23, -1e+30 }
0x21c5   : > { %10611 = vpow2.f32 %v7065_v61 }
0x21c6   : > { %v12491_v9 = vpop.eup %10607 }
0x21c7   : > { %v7032_v51 = vpop.xlane.xlu1 %7031  ;;  %v7090_v4 = vsel %vm982_vm6, %v12491_v9, 0.0 }
0x21c8   : > { %v7048_v13 = vsub.f32 %v7000_v38, %v7032_v51  ;;  %7091 = vadd.xlane.f32.xlu1 %v7090_v4  ;;  %v7006_v51 = vsel %vm982_vm6, %v6992_v26, -inf  ;;  %v7003_v4 = vsel %vm982_vm6, %v6991_v56, -inf }
0x21ca   : > { %v7069_v0 = vmul.f32 1.442695, %v7048_v13  ;;  %v12524_v13 = vsel %vm247_vm5, %v12465_v2, -1e+30 }
0x21cb   : > { %v10610_v10 = vpop.eup %10609  ;;  %v7029_v34 = vpop.xlane.xlu1 %7028  ;;  %v7009_v30 = vsel %vm982_vm6, %v12524_v13, -inf }
0x21cc   : > { %10613 = vpow2.f32 %v7069_v0  ;;  %v7047_v11 = vsub.f32 %v6999_v52, %v7029_v34  ;;  %v7093_v22 = vsel %vm982_vm6, %v10610_v10, 0.0 }
0x21cd   : > { %7094 = vadd.xlane.f32.xlu0 %v7093_v22 }
0x21ce   : > { %v7067_v32 = vmul.f32 1.442695, %v7047_v11 }
0x21cf   : > { %v10612_v57 = vpop.eup %10611  ;;  %v7038_v25 = vpop.xlane.xlu0 %7037 }
0x21d0   : > { %v7035_v31 = vpop.xlane.xlu1 %7034  ;;  %10615 = vpow2.f32 %v7067_v32  ;;  %v7050_v15 = vsub.f32 %v7002_v44, %v7038_v25  ;;  %v7096_v21 = vsel %vm982_vm6, %v10612_v57, 0.0 }
0x21d1   : > { %v7049_v24 = vsub.f32 %v7001_v63, %v7035_v31  ;;  %7097 = vadd.xlane.f32.xlu1 %v7096_v21 }
0x21d2   : > { %v7073_v38 = vmul.f32 1.442695, %v7050_v15 }
0x21d3   : > { %v7071_v37 = vmul.f32 1.442695, %v7049_v24 }
0x21d4   : > { %10617 = vpow2.f32 %v7073_v38 }
0x21d5   : > { %10619 = vpow2.f32 %v7071_v37 }
0x21d6   : > { %v12497_v18 = vpop.eup %10613 }
0x21d7   : > { %v7102_v52 = vsel %vm982_vm6, %v12497_v18, 0.0 }
0x21d8   : > { %7103 = vadd.xlane.f32.xlu1 %v7102_v52 }
0x21da   : > { %v12501_v46 = vpop.eup %10615 }
0x21db   : > { %v7099_v27 = vsel %vm982_vm6, %v12501_v46, 0.0 }
0x21dc   : > { %7100 = vadd.xlane.f32.xlu0 %v7099_v27 }
0x21de   : > { %v12505_v63 = vpop.eup %10617 }
0x21df   : > { %v12507_v44 = vpop.eup %10619  ;;  %v7108_v12 = vsel %vm982_vm6, %v12505_v63, 0.0 }
0x21e0   : > { %7109 = vadd.xlane.f32.xlu1 %v7108_v12  ;;  %v7105_v61 = vsel %vm982_vm6, %v12507_v44, 0.0 }
0x21e1   : > { %7106 = vadd.xlane.f32.xlu0 %v7105_v61 }
0x21e4   : > { %7007 = vmax.xlane.f32.xlu1 %v7006_v51 }
0x21e5   : > { %7004 = vmax.xlane.f32.xlu0 %v7003_v4 }
0x21e9   : > { %7010 = vmax.xlane.f32.xlu0 %v7009_v30 }
0x224d   : > { %v7086_v0 = vpop.xlane.xlu1 %7085 }
0x224e   : > { %10621 = vrcp.f32 %v7086_v0 }
0x2251   : > { %v7089_v34 = vpop.xlane.xlu0 %7088 }
0x2252   : > { %10623 = vrcp.f32 %v7089_v34 }
0x2255   : > { %v7092_v23 = vpop.xlane.xlu1 %7091 }
0x2256   : > { %10625 = vrcp.f32 %v7092_v23 }
0x2258   : > { %v10622_v11 = vpop.eup %10621 }
0x2259   : > { %v7126_v32 = vmul.f32 %v10622_v11, %v12486_v35 }
0x225a   : > { %v7095_v22 = vpop.xlane.xlu0 %7094 }
0x225b   : > { %10627 = vrcp.f32 %v7095_v22  ;;  %v7138_v31 = vmul.f32 %v11165_v49, %v7126_v32 }
0x225c   : > { %v10624_v25 = vpop.eup %10623 }
0x225d   : > { %v7127_v42 = vmul.f32 %v10624_v25, %v10606_v43 }
0x225e   : > { %v7098_v2 = vpop.xlane.xlu1 %7097 }
0x225f   : > { %v7139_v15 = vmul.f32 %v11163_v48, %v7127_v42  ;;  %10629 = vrcp.f32 %v7098_v2 }
0x2260   : > { %v10626_v21 = vpop.eup %10625 }
0x2261   : > { %v12531_v24 = vpack.c.bf16 %v7139_v15, %v7138_v31  ;;  %v7128_v35 = vmul.f32 %v10626_v21, %v12491_v9 }
0x2263   : > { %10275 = vmatpush3.bf16.xpose.msk.msra.mxu0 %vm11171_vm8, %v12531_v24  ;;  %v12539_v12 = vmul.f32 %v7128_v35, %v11182_v62 }
0x2264   : > { %9892 = vmatprep.subr.mxu0 %v10761_v6 }
0x2265   : > { %v10628_v38 = vpop.eup %10627  ;;  %v7104_v43 = vpop.xlane.xlu1 %7103 }
0x2266   : > { %v7129_v37 = vmul.f32 %v10628_v38, %v10610_v10 }
0x2268   : > { %v7141_v51 = vmul.f32 %v11165_v49, %v7129_v37 }
0x2269   : > { %v10630_v52 = vpop.eup %10629  ;;  %v7101_v27 = vpop.xlane.xlu0 %7100 }
0x226a   : > { %v7130_v61 = vmul.f32 %v10630_v52, %v10612_v57  ;;  %10631 = vrcp.f32 %v7101_v27 }
0x226b   : > { %10633 = vrcp.f32 %v7104_v43  ;;  %9893 = vmatpush3.xpose.msk.msra.mxu0 %vm982_vm6, %v12539_v12 }
0x226c   : > { %v7142_v4 = vmul.f32 %v11163_v48, %v7130_v61  ;;  %10279 = vmatprep.subr.bf16.mxu0 %v10759_v3 }
0x226d   : > { %v7110_v9 = vpop.xlane.xlu1 %7109 }
0x226e   : > { %v7107_v10 = vpop.xlane.xlu0 %7106  ;;  %9895 = vmatmul.mubr.msk.f32.vlgmr.msra.gmra.mrb[128].mxu0 %vm982_vm6, %v12399_v45  ;;  %v12548_v30 = vpack.c.bf16 %v7142_v4, %v7141_v51 }
0x226f   : > { %10635 = vrcp.f32 %v7107_v10  ;;  %9912 = vmatprep.mubr.msk.f32.mxu0 %vm10760_vm0, %v10761_v6 }
0x2270   : > { %10282 = vmatpush3.bf16.xpose.msk.msra.mxu0 %vm11171_vm8, %v12548_v30  ;;  %10637 = vrcp.f32 %v7110_v9 }
0x2271   : > { %v7008_v57 = vpop.xlane.xlu1 %7007  ;;  %9910 = vmatprep.subr.mxu0 %v10761_v6 }
0x2272   : > { %v7005_v0 = vpop.xlane.xlu0 %7004  ;;  %v7040_v34 = vsub.f32 %v6992_v26, %v7008_v57 }
0x2273   : > { %v7039_v23 = vsub.f32 %v6991_v56, %v7005_v0 }
0x2274   : > { %v10632_v11 = vpop.eup %10631  ;;  %v7053_v22 = vmul.f32 1.442695, %v7040_v34 }
0x2275   : > { %v10634_v45 = vpop.eup %10633  ;;  %v7131_v32 = vmul.f32 %v10632_v11, %v12501_v46  ;;  %v7051_v25 = vmul.f32 1.442695, %v7039_v23 }
0x2276   : > { %10639 = vpow2.f32 %v7053_v22  ;;  %v7011_v42 = vpop.xlane.xlu0 %7010  ;;  %v7132_v15 = vmul.f32 %v10634_v45, %v12497_v18 }
0x2277   : > { %10641 = vpow2.f32 %v7051_v25  ;;  %v7041_v2 = vsub.f32 %v12524_v13, %v7011_v42  ;;  %v12559_v31 = vmul.f32 %v7131_v32, %v11182_v62 }
0x2278   : > { %v7144_v56 = vmul.f32 %v11165_v49, %v7132_v15 }
0x2279   : > { %v10636_v21 = vpop.eup %10635  ;;  %v7055_v38 = vmul.f32 1.442695, %v7041_v2  ;;  %9911 = vmatpush3.xpose.msk.msra.mxu0 %vm982_vm6, %v12559_v31 }
0x227a   : > { %10290 = vmatprep.subr.bf16.mxu0 %v10759_v3  ;;  %v7133_v46 = vmul.f32 %v10636_v21, %v12507_v44  ;;  %v10638_v26 = vpop.eup %10637 }
0x227b   : > { %10643 = vpow2.f32 %v7055_v38  ;;  %v7134_v35 = vmul.f32 %v10638_v26, %v12505_v63 }
0x227c   : > { %9913 = vmatmul.mubr.msk.f32.vlgmr.msra.gmra.mrb[130].mxu0 %vm982_vm6, %v12410_v14  ;;  %v7145_v13 = vmul.f32 %v11163_v48, %v7133_v46 }
0x227d   : > { %9939 = vmatprep.mubr.msk.f32.mxu0 %vm10760_vm0, %v10761_v6  ;;  %v12580_v52 = vmul.f32 %v7134_v35, %v11182_v62 }
0x227e   : > { %v12572_v18 = vpack.c.bf16 %v7145_v13, %v7144_v56 }
0x2280   : > { %v10640_v37 = vpop.eup %10639  ;;  %10292 = vmatpush3.bf16.msra.mxu0 %v12572_v18 }
0x2281   : > { %v10642_v44 = vpop.eup %10641  ;;  %9937 = vmatprep.subr.mxu0 %v10761_v6  ;;  %v7078_v43 = vsel %vm982_vm6, %v10640_v37, 0.0 }
0x2282   : > { %v7075_v14 = vsel %vm982_vm6, %v10642_v44, 0.0  ;;  %7079 = vadd.xlane.f32.xlu0 %v7078_v43 }
0x2283   : > { %7076 = vadd.xlane.f32.xlu1 %v7075_v14 }
0x2284   : > { %9938 = vmatpush3.msra.mxu0 %v12580_v52 }
0x2285   : > { %v10644_v27 = vpop.eup %10643  ;;  %9940 = vmatmul.mubr.msk.f32.vlgmr.msra.gmra.mrb[132].mxu0 %vm982_vm6, %v12395_v28  ;;  %10294 = vmatprep.subr.bf16.mxu0 %v12344_v29 }
0x2286   : > { %10296 = vmatpush3.bf16.msra.mxu0 %v12344_v29  ;;  %9948 = vmatprep.mubr.msk.f32.mxu0 %vm982_vm6, %v12132_v20  ;;  %v7081_v63 = vsel %vm982_vm6, %v10644_v27, 0.0 }
0x2287   : > { %7082 = vadd.xlane.f32.xlu1 %v7081_v63  ;;  %9946 = vmatprep.subr.mxu0 %v12349_v16 }
0x228a   : > { %9947 = vmatpush3.msra.mxu0 %v12349_v16 }
0x228b   : > { %9949 = vmatmul.mubr.msk.f32.vlgmr.msra.gmra.mrb[134].mxu0 %vm982_vm6, %v12136_v8  ;;  %10306 = vmatprep.subr.bf16.mxu0 %v12237_v47 }
0x228c   : > { %9951 = vmatprep.mubr.msk.f32.mxu0 %vm982_vm6, %v12140_v60  ;;  %10308 = vmatpush3.bf16.msra.mxu0 %v12237_v47 }
0x228d   : > { %10310 = vmatprep.subr.bf16.mxu0 %v12247_v53 }
0x228f   : > { %9952 = vmatmul.mubr.msk.f32.gmra.mrb[136].mxu0 %vm982_vm6, %v12144_v39 }
0x2290   : > { %10312 = vmatpush3.bf16.msra.mxu0 %v12247_v53 }
0x2291   : > { %10319 = vmatprep.subr.bf16.mxu0 %v10759_v3 }
0x230f   : > { %v7080_v20 = vpop.xlane.xlu0 %7079 }
0x2310   : > { %10645 = vrcp.f32 %v7080_v20  ;;  %v7077_v29 = vpop.xlane.xlu1 %7076 }
0x2311   : > { %10647 = vrcp.f32 %v7077_v29 }
0x2314   : > { %v7083_v8 = vpop.xlane.xlu1 %7082 }
0x2315   : > { %10649 = vrcp.f32 %v7083_v8 }
0x231a   : > { %v10646_v16 = vpop.eup %10645 }
0x231b   : > { %v10648_v28 = vpop.eup %10647  ;;  %v7124_v60 = vmul.f32 %v10646_v16, %v10640_v37 }
0x231c   : > { %v7123_v61 = vmul.f32 %v10648_v28, %v10642_v44 }
0x231d   : > { %v7136_v47 = vmul.f32 %v11163_v48, %v7124_v60 }
0x231e   : > { %v7135_v51 = vmul.f32 %v11165_v49, %v7123_v61 }
0x231f   : > { %v10650_v39 = vpop.eup %10649 }
0x2320   : > { %v10266_v4 = vpack.c.bf16 %v7136_v47, %v7135_v51  ;;  %v7125_v53 = vmul.f32 %v10650_v39, %v10644_v27 }
0x2322   : > { %10268 = vmatpush3.bf16.xpose.msk.msra.mxu1 %vm11171_vm8, %v10266_v4  ;;  %v7137_v9 = vmul.f32 %v7125_v53, %v11182_v62 }
0x2323   : > { %9874 = vmatprep.subr.mxu1 %v10761_v6 }
0x232a   : > { %9875 = vmatpush3.xpose.msk.msra.mxu1 %vm982_vm6, %v7137_v9 }
0x232b   : > { %10269 = vmatprep.subr.bf16.mxu1 %v10759_v3 }
0x232d   : > { %9877 = vmatmul.mubr.msk.f32.vlgmr.msra.gmra.mrb[126].mxu1 %vm982_vm6, %v12401_v36 }
0x232e   : > { %10271 = vmatpush3.bf16.msra.mxu1 %v10266_v4  ;;  %9885 = vmatprep.mubr.msk.f32.mxu1 %vm10760_vm0, %v10761_v6 }
0x232f   : > { %9883 = vmatprep.subr.mxu1 %v10761_v6 }
0x2332   : > { %9884 = vmatpush3.msra.mxu1 %v7137_v9 }
0x2333   : > { %9886 = vmatmul.mubr.msk.f32.vlgmr.msra.gmra.mrb[128].mxu1 %vm982_vm6, %v12392_v1  ;;  %10276 = vmatprep.subr.bf16.mxu1 %v10759_v3 }
0x2334   : > { %10278 = vmatpush3.bf16.msra.mxu1 %v12531_v24  ;;  %9903 = vmatprep.mubr.msk.f32.mxu1 %vm10760_vm0, %v10761_v6 }
0x2335   : > { %9901 = vmatprep.subr.mxu1 %v10761_v6 }
0x2338   : > { %9902 = vmatpush3.msra.mxu1 %v12539_v12 }
0x2339   : > { %9904 = vmatmul.mubr.msk.f32.vlgmr.msra.gmra.mrb[130].mxu1 %vm982_vm6, %v12389_v41  ;;  %10283 = vmatprep.subr.bf16.mxu1 %v10759_v3 }
0x233a   : > { %10285 = vmatpush3.bf16.msra.mxu1 %v12548_v30  ;;  %9921 = vmatprep.mubr.msk.f32.mxu1 %vm10760_vm0, %v10761_v6 }
0x233b   : > { %9919 = vmatprep.subr.mxu1 %v10761_v6 }
0x233e   : > { %9920 = vmatpush3.msra.mxu1 %v12559_v31 }
0x233f   : > { %9922 = vmatmul.mubr.msk.f32.vlgmr.msra.gmra.mrb[132].mxu1 %vm982_vm6, %v12397_v54  ;;  %10286 = vmatprep.subr.bf16.mxu1 %v10759_v3 }
0x2340   : > { %9930 = vmatprep.mubr.msk.f32.mxu1 %vm10760_vm0, %v10761_v6 }
0x2341   : > { %v12637_v48 = vpop.f32.mrb[128].mxu0 }
0x2342   : > { %v9896_v49 = vpop.f32.mrb[129].mxu0 }
0x2345   : > { %10289 = vmatpush3.bf16.xpose.msk.msra.mxu1 %vm11171_vm8, %v12572_v18 }
0x2346   : > { %9928 = vmatprep.subr.mxu1 %v10761_v6 }
0x234d   : > { %9929 = vmatpush3.xpose.msk.msra.mxu1 %vm982_vm6, %v12580_v52 }
0x234e   : > { %10298 = vmatprep.subr.bf16.mxu1 %v12194_v17 }
0x234f   : > { %v12646_v62 = vpop.f32.mrb[130].mxu0 }
0x2350   : > { %9931 = vmatmul.mubr.msk.f32.vlgmr.msra.gmra.mrb[134].mxu1 %vm982_vm6, %v12408_v5  ;;  %v9914_v41 = vpop.f32.mrb[131].mxu0 }
0x2351   : > { %10300 = vmatpush3.bf16.msra.mxu1 %v12194_v17 }
0x2352   : > { %10302 = vmatprep.subr.bf16.mxu1 %v12205_v33 }
0x2355   : > { %10304 = vmatpush3.bf16.msra.mxu1 %v12205_v33 }
0x2356   : > { %10313 = vmatprep.subr.bf16.mxu1 %v10759_v3 }
0x2358   : > { %v12654_v55 = vpop.f32.mrb[132].mxu0 }
0x2359   : > { %v9941_v1 = vpop.f32.mrb[133].mxu0 }
0x235e   : > { %v9950_v54 = vpop.f32.mrb[134].mxu0 }
0x235f   : > { %v7833_v36 = vpop.f32.mrb[135].mxu0 }
0x2360   : > { %9962 = vmatprep.mubr.msk.f32.mxu1 %vm290_vm2, %v7833_v36 }
0x2361   : > { %9963 = vmatmul.mubr.msk.f32.vlgmr.msra.gmra.mrb[136].mxu1 %vm290_vm2, %v9950_v54 }
0x2362   : > { %v9953_v24 = vpop.f32.mrb[136].mxu0 }
0x2363   : > { %v7843_v5 = vpop.f32.mrb[137].mxu0 }
0x2364   : > { %9965 = vmatprep.mubr.msk.f32.mxu1 %vm290_vm2, %v7843_v5 }
0x2365   : > { %9966 = vmatmul.mubr.msk.f32.gmra.mrb[138].mxu1 %vm290_vm2, %v9953_v24 }
0x2366   : > { %9990 = vmatprep.mubr.msk.f32.mxu1 %vm10760_vm0, %v10761_v6 }
0x2400   : > { %v7225_v17 = vpop.f32.mrb[126].mxu1 }
0x2401   : > { %v9878_v33 = vpop.f32.mrb[127].mxu1 }
0x2406   : > { %v7298_v12 = vpop.f32.mrb[128].mxu1 }
0x2407   : > { %v9887_v10 = vpop.f32.mrb[129].mxu1 }
0x240c   : > { %v7453_v30 = vpop.f32.mrb[130].mxu1 }
0x240d   : > { %v9905_v57 = vpop.f32.mrb[131].mxu1 }
0x2412   : > { %v7608_v0 = vpop.f32.mrb[132].mxu1 }
0x2413   : > { %v9923_v34 = vpop.f32.mrb[133].mxu1 }
0x2423   : > { %v7690_v23 = vpop.f32.mrb[134].mxu1 }
0x2424   : > { %v9932_v11 = vpop.f32.mrb[135].mxu1 }
0x2434   : > { %v9964_v22 = vpop.f32.mrb[136].mxu1 }
0x2435   : > { %v7930_v45 = vpop.f32.mrb[137].mxu1  ;;  %v7952_v32 = vsel %vm290_vm2, %v9964_v22, -inf }
0x2436   : > { %7953 = vmax.xlane.f32.xlu1 %v7952_v32  ;;  %v7949_v25 = vsel %vm290_vm2, %v7930_v45, -inf }
0x2437   : > { %7950 = vmax.xlane.f32.xlu0 %v7949_v25 }
0x2438   : > { %v9967_v42 = vpop.f32.mrb[138].mxu1 }
0x2439   : > { %v7940_v2 = vpop.f32.mrb[139].mxu1  ;;  %v7958_v31 = vsel %vm290_vm2, %v9967_v42, -inf }
0x243a   : > { %7959 = vmax.xlane.f32.xlu1 %v7958_v31  ;;  %v7955_v15 = vsel %vm290_vm2, %v7940_v2, -inf }
0x243b   : > { %7956 = vmax.xlane.f32.xlu0 %v7955_v15 }
0x24c3   : > { %v7954_v21 = vpop.xlane.xlu1 %7953 }
0x24c4   : > { %v7962_v38 = vsub.f32 %v9964_v22, %v7954_v21  ;;  %v7951_v46 = vpop.xlane.xlu0 %7950 }
0x24c5   : > { %v7961_v26 = vsub.f32 %v7930_v45, %v7951_v46 }
0x24c6   : > { %v7967_v56 = vmul.f32 1.442695, %v7962_v38 }
0x24c7   : > { %v7965_v13 = vmul.f32 1.442695, %v7961_v26  ;;  %v7960_v18 = vpop.xlane.xlu1 %7959 }
0x24c8   : > { %10651 = vpow2.f32 %v7967_v56  ;;  %v7964_v35 = vsub.f32 %v9967_v42, %v7960_v18  ;;  %v7957_v37 = vpop.xlane.xlu0 %7956  ;;  %v8289_v18 = vld [vmem:[%s12780_s1 + $0x219] sm:$0x1] }
0x24c9   : > { %10653 = vpow2.f32 %v7965_v13  ;;  %v7963_v44 = vsub.f32 %v7940_v2, %v7957_v37  ;;  %v8306_v2 = vld [vmem:[%s12780_s1 + $0x220] sm:$0xff] }
0x24ca   : > { %v7971_v43 = vmul.f32 1.442695, %v7964_v35 }
0x24cb   : > { %v7969_v14 = vmul.f32 1.442695, %v7963_v44 }
0x24cc   : > { %10655 = vpow2.f32 %v7971_v43 }
0x24cd   : > { %10657 = vpow2.f32 %v7969_v14 }
0x24d2   : > { %v10652_v52 = vpop.eup %10651 }
0x24d3   : > { %v10654_v27 = vpop.eup %10653  ;;  %v7976_v63 = vsel %vm290_vm2, %v10652_v52, 0.0 }
0x24d4   : > { %7977 = vadd.xlane.f32.xlu1 %v7976_v63  ;;  %v7973_v20 = vsel %vm290_vm2, %v10654_v27, 0.0 }
0x24d5   : > { %7974 = vadd.xlane.f32.xlu0 %v7973_v20 }
0x24d6   : > { %v10656_v29 = vpop.eup %10655 }
0x24d7   : > { %v10658_v8 = vpop.eup %10657  ;;  %v7982_v16 = vsel %vm290_vm2, %v10656_v29, 0.0 }
0x24d8   : > { %7983 = vadd.xlane.f32.xlu1 %v7982_v16  ;;  %v7979_v28 = vsel %vm290_vm2, %v10658_v8, 0.0 }
0x24d9   : > { %7980 = vadd.xlane.f32.xlu0 %v7979_v28 }
0x2506   : > { %8168 = vxpose.xlu0.b32.start [1/8] (short) (narrow) %v7225_v17, 24 }
0x250a   : > { %8169 = vxpose.xlu0.b32.cont [2/8] (short) (narrow) %v12637_v48, 24 }
0x250e   : > { %8170 = vxpose.xlu0.b32.cont [3/8] (short) (narrow) %v12646_v62, 24 }
0x2512   : > { %8171 = vxpose.xlu0.b32.cont [4/8] (short) (narrow) %v7690_v23, 24 }
0x2516   : > { %8172 = vxpose.xlu0.b32.cont [5/8] (short) (narrow) %v7298_v12, 24 }
0x251a   : > { %8173 = vxpose.xlu0.b32.cont [6/8] (short) (narrow) %v7453_v30, 24 }
0x251e   : > { %8174 = vxpose.xlu0.b32.cont [7/8] (short) (narrow) %v7608_v0, 24 }
0x2522   : > { %8175 = vxpose.xlu0.b32.end [8/8] (short) (narrow) %v12654_v55, 24 }
0x2561   : > { %v7978_v60 = vpop.xlane.xlu1 %7977 }
0x2562   : > { %10659 = vrcp.f32 %v7978_v60  ;;  %v7975_v61 = vpop.xlane.xlu0 %7974 }
0x2563   : > { %10661 = vrcp.f32 %v7975_v61 }
0x2565   : > { %v7984_v47 = vpop.xlane.xlu1 %7983 }
0x2566   : > { %10663 = vrcp.f32 %v7984_v47  ;;  %v7981_v51 = vpop.xlane.xlu0 %7980 }
0x2567   : > { %10665 = vrcp.f32 %v7981_v51 }
0x256c   : > { %v10660_v4 = vpop.eup %10659 }
0x256d   : > { %v10662_v39 = vpop.eup %10661  ;;  %v7990_v9 = vmul.f32 %v10660_v4, %v10652_v52  ;;  %v8308_v52 = vld [vmem:[%s12780_s1 + $0x21a] sm:$0x1] }
0x256e   : > { %v7989_v53 = vmul.f32 %v10662_v39, %v10654_v27 }
0x2570   : > { %v10664_v48 = vpop.eup %10663  ;;  %9976 = vmatprep.mubr.msk.f32.mxu0 %vm290_vm2, %v7989_v53 }
0x2571   : > { %v10666_v49 = vpop.eup %10665  ;;  %9977 = vmatmul.mubr.msk.f32.vlgmr.msra.gmra.mrb[138].mxu0 %vm290_vm2, %v7990_v9  ;;  %v7992_v41 = vmul.f32 %v10664_v48, %v10656_v29 }
0x2572   : > { %v7991_v62 = vmul.f32 %v10666_v49, %v10658_v8  ;;  %10321 = vmatpush3.bf16.msra.mxu0 %v12261_v58 }
0x2573   : > { %10322 = vmatprep.subr.bf16.mxu0 %v10759_v3 }
0x2574   : > { %9979 = vmatprep.mubr.msk.f32.mxu0 %vm290_vm2, %v7991_v62 }
0x2575   : > { %9980 = vmatmul.mubr.msk.f32.gmra.mrb[140].mxu0 %vm290_vm2, %v7992_v41 }
0x2576   : > { %10324 = vmatpush3.bf16.msra.mxu0 %v12277_v59  ;;  %10015 = vmatprep.mubr.msk.f32.mxu0 %vm10760_vm0, %v10761_v6 }
0x2577   : > { %10325 = vmatprep.subr.bf16.mxu0 %v10759_v3 }
0x257a   : > { %10327 = vmatpush3.bf16.msra.mxu0 %v12287_v50  ;;  %v10692_v50 = vld [vmem:[%s12780_s1 + $0x200] sm:$0xff] }
0x257b   : > { %10328 = vmatprep.subr.bf16.mxu0 %v10759_v3 }
0x257e   : > { %10330 = vmatpush3.bf16.msra.mxu0 %v12297_v19  ;;  %v10693_v19 = vld [vmem:[%s12780_s1 + $0x208] sm:$0xff] }
0x2586   : > { %v8184_v58 = vpop.trf.xlu0 }
0x2587   : > { %10016 = vmatmul.mubr.msk.f32.vlgmr.msra.gmra.mrb[142].mxu0 %vm155_vm1, %v8184_v58 }
0x2588   : > { %10018 = vmatprep.mubr.msk.f32.mxu0 %vm10760_vm0, %v10761_v6 }
0x258a   : > { %v8185_v15 = vpop.trf.xlu0 }
0x258b   : > { %10019 = vmatmul.mubr.msk.f32.gmra.mrb[144].mxu0 %vm155_vm1, %v8185_v15 }
0x258c   : > { %10021 = vmatprep.mubr.msk.f32.mxu0 %vm10760_vm0, %v10761_v6 }
0x258e   : > { %v8186_v21 = vpop.trf.xlu0 }
0x258f   : > { %10022 = vmatmul.mubr.msk.f32.gmra.mrb[146].mxu0 %vm155_vm1, %v8186_v21 }
0x2644   : > { %v9978_v55 = vpop.f32.mrb[138].mxu0 }
0x2645   : > { %v8071_v1 = vpop.f32.mrb[139].mxu0 }
0x2646   : > { %v10314_v59 = vpack.c.bf16 %v9978_v55, %v8071_v1 }
0x2648   : > { %v9981_v54 = vpop.f32.mrb[140].mxu0  ;;  %10315 = vmatpush3.bf16.msra.mxu1 %v10314_v59 }
0x2649   : > { %v8081_v36 = vpop.f32.mrb[141].mxu0  ;;  %10316 = vmatprep.subr.bf16.mxu1 %v10759_v3 }
0x264a   : > { %v10317_v24 = vpack.c.bf16 %v9981_v54, %v8081_v36 }
0x264c   : > { %10318 = vmatpush3.bf16.msra.mxu1 %v10317_v24 }
0x264d   : > { %10331 = vmatprep.subr.bf16.mxu1 %v10759_v3  ;;  %v10694_v3 = vld [vmem:[%s12780_s1 + $0x210] sm:$0xff] }
0x264f   : > { %9991 = vmatmul.mubr.msk.f32.vlgmr.msra.gmra.mrb[140].mxu1 %vm290_vm2, %v10692_v50 }
0x2650   : > { %9993 = vmatprep.mubr.msk.f32.mxu1 %vm10760_vm0, %v10761_v6 }
0x2653   : > { %9994 = vmatmul.mubr.msk.f32.gmra.mrb[142].mxu1 %vm290_vm2, %v10693_v19 }
0x2654   : > { %9996 = vmatprep.mubr.msk.f32.mxu1 %vm10760_vm0, %v10761_v6 }
0x2657   : > { %9997 = vmatmul.mubr.msk.f32.gmra.mrb[144].mxu1 %vm290_vm2, %v10694_v3 }
0x2658   : > { %10028 = vmatprep.mubr.msk.f32.mxu1 %vm10760_vm0, %v10761_v6 }
0x265a   : > { %v8275_v5 = vpop.f32.mrb[142].mxu0 }
0x265b   : > { %v10017_v17 = vpop.f32.mrb[143].mxu0 }
0x265e   : > { %v8280_v37 = vpop.f32.mrb[144].mxu0 }
0x265f   : > { %v10020_v44 = vpop.f32.mrb[145].mxu0 }
0x2662   : > { %v8284_v43 = vpop.f32.mrb[146].mxu0 }
0x2663   : > { %v10023_v14 = vpop.f32.mrb[147].mxu0 }
0x2722   : > { %v8156_v33 = vpop.f32.mrb[140].mxu1 }
0x2723   : > { %v8276_v12 = vadd.f32 %v8275_v5, %v8156_v33  ;;  %v9992_v10 = vpop.f32.mrb[141].mxu1 }
0x2725   : > { %v8287_v30 = vadd.f32 %v8276_v12, %v12326_v40  ;;  %v8307_v40 = vld [vmem:[%s12780_s1 + $0x228] sm:$0x3] }
0x2726   : > { %v8161_v57 = vpop.f32.mrb[142].mxu1  ;;  %v10332_v31 = vpack.c.bf16 %v8307_v40, %v8306_v2 }
0x2727   : > { %v8291_v0 = vsel %vm8290_vm9, %v8287_v30, 0.0  ;;  %v9995_v34 = vpop.f32.mrb[143].mxu1 }
0x2728   : > { %8292 = vadd.xlane.f32.xlu1 %v8291_v0  ;;  %10334 = vmatpush3.bf16.xpose.msk.msra.mxu1 %vm10912_vm3, %v10332_v31 }
0x272a   : > { %v8165_v23 = vpop.f32.mrb[144].mxu1 }
0x272b   : > { %v9998_v11 = vpop.f32.mrb[145].mxu1 }
0x27b5   : > { %v8293_v22 = vpop.xlane.xlu1 %8292 }
0x27b6   : > { %v8294_v45 = vmul.f32 0.03125, %v8293_v22 }
0x27b8   : > { %v8295_v32 = vsub.f32 %v8287_v30, %v8294_v45 }
0x27ba   : > { %v8296_v25 = vmul.f32 %v8295_v32, %v8295_v32  ;;  %v8301_v56 = vmul.f32 %v8295_v32, %v8288_v7 }
0x27bc   : > { %v8297_v42 = vsel %vm8290_vm9, %v8296_v25, 0.0 }
0x27bd   : > { %8298 = vadd.xlane.f32.xlu1 %v8297_v42 }
0x284a   : > { %v8299_v38 = vpop.xlane.xlu1 %8298 }
0x284b   : > { %v8300_v46 = vmul.f32 0.03125, %v8299_v38 }
0x284d   : > { %v8302_v26 = vadd.f32 1e-05, %v8300_v46 }
0x284f   : > { %10667 = vrsqrt.f32 %v8302_v26 }
0x2859   : > { %v10668_v13 = vpop.eup %10667 }
0x285a   : > { %v8304_v6 = vmul.f32 %v10668_v13, %v8301_v56 }
0x285c   : > { %v8305_v35 = vadd.f32 %v8304_v6, %v8289_v18 }
0x285e   : > { %10029 = vmatmul.mubr.msk.f32.vlgmr.msra.gmra.mrb[146].mxu1 %vm290_vm2, %v8305_v35 }
0x2931   : > { %v8384_v27 = vpop.f32.mrb[146].mxu1 }
0x2932   : > { %v8385_v63 = vadd.f32 %v8384_v27, %v8308_v52  ;;  %v10030_v20 = vpop.f32.mrb[147].mxu1 }
0x2934   : > { %8389 = vst.msk [vmem:[%s135_s16] sm:$0x1] %vm8388_vm10, %v8385_v63 }
0x2935   : > { %10708 = shalt.err (!%p10705_p3)
}
0x2936   : > { %s10709_s28 = scalar_lea.hbm %s12737_s23, 16  ;;  %s10713_s3 = scalar_lea.hbm %s12781_s2, 32 }
0x2937   : > { %p10710_p4 = scmp.ne.s32.totalorder %s12737_s23, %s10709_s28  ;;  %p10714_p9 = scmp.lt.u32.totalorder %s12737_s23, %s12781_s2 }
0x2938   : > { %p10715_p10 = scmp.lt.u32.totalorder %s10713_s3, %s10709_s28  ;;  %p10717_p12 = scmp.lt.u32.totalorder %s10709_s28, %s12737_s23 }
0x2939   : > { %p10711_p7 = pnand %p10710_p4, %p10818_p5 }
0x293a   : > { %p10716_p11 = por %p10715_p10, %p10714_p9 }
0x293b   : > { %p10712_p8 = pneg %p10711_p7 }
0x293c   : > { %p10718_p13 = por %p10717_p12, %p10716_p11 }
0x293e   : > { %p10719_p0 = pnand %p10718_p13, %p10712_p8 }
0x2940   : > { %10722 = shalt.err (!%p10719_p0)
}
0x2941   : > { %10336 = dma.vmem_to_hbm [thread:$0]  (%p10818_p5), %s12739_s17, 16, %s12737_s23, %s8391_s24  }
0x2942 PF: > { %p10342_p1 = scmp.ge.s32.totalorder %s10757_s12, 2  ;;  %s8415_s6 = sand.u32 1, %s10745_s9  }
0x2943   : > { %s8416_s7 = scalar_lea.sflag [#allocation3], %s8415_s6 }
0x2944   : > { %p10339_p2 = pnand %p10342_p1, %p10822_p6 }
0x2946   : > { %10740 = dma.done.wait (!%p10339_p2), %s8416_s7, 16  }
0x2947   : > { %10742 = vsyncadd (!%p10339_p2), %s8416_s7, 4294967280  ;;  %p12_p3 = scmp.ge.s32.totalorder %s10805_s15, 4   ;;  %s12788_s9 = smov %s10749_s10 }
0x2948   : > { %s12789_s10 = smov %s10753_s11  ;;  %s12790_s11 = smov %s10816_s18 }
0x2949   : > { %s12791_s12 = smov %s10805_s15  ;;  %14 = sbr.rel (!%p12_p3) target bundleno = 3 (0x3), region = 63 }
0x2950   :  { %8420 = vsyncpa [#allocation3], 1 }
0x2951   :  { %8422 = vsyncpa [#allocation3 + $0x1], 1 }

</bundles_post_ra>
